<compile_context>
chip_gen: v7x
topology: tpu7x:2x2x1
jax: 0.10.0
libtpu: 0.0.40
codegen_flags: <defaults>
</compile_context>

<pallas_src>
import math
import numpy as np
import jax
import jax.numpy as jnp
from jax.experimental import pallas as pl
from jax.experimental.pallas import tpu as pltpu

SCALE = 0.01 ** 0.33                       # 0.01 ** 0.33 factor from the forward pass
INV_SQRT_2PI = 1.0 / math.sqrt(2.0 * math.pi)


def _round_up(x, m):
    return (x + m - 1) // m * m


def _make_kernel(din, wx_out, wy_out, y_off, w_off):
    """Kernel over one row tile.  Head GEMM column layout:
       [0, wx_out)              : f2x block, v-major, fm slots zero-weight/bias-1
       [y_off, y_off+wy_out)    : f2y block, same layout (y_off is 128-aligned)
       [w_off, w_off+4)         : headp columns (rho, ux, uy, theta logits)
    """

    def kernel(x_ref, w0_ref, b0_ref, w1_ref, b1_ref, wh_ref, bh_ref,
               vxe_ref, vye_ref, outx_ref, outy_ref):
        x = x_ref[...]                                              # [tn, din]

        # ---- backbone ----------------------------------------------------
        # TODO(synk): MultiResFCSeq source was not provided; implemented as a
        # sin-activated MLP with layer sizes [xdim+1] + neurons.
        # First layer has K=din (=2): keep it off the MXU -> broadcast FMAs (VPU).
        acc = b0_ref[...] + x[:, 0:1] * w0_ref[0:1, :]
        for d in range(1, din):
            acc = acc + x[:, d:d + 1] * w0_ref[d:d + 1, :]
        h = jnp.sin(acc)                                            # [tn, h0]
        xout = jnp.sin(
            jnp.dot(h, w1_ref[...], preferred_element_type=jnp.float32)
            + b1_ref[...])                                          # [tn, h1]

        # ---- single fused head GEMM (headx | heady | headp) ---------------
        head = (jnp.dot(xout, wh_ref[...], preferred_element_type=jnp.float32)
                + bh_ref[...])                                      # [tn, head_w]
        raw_x = head[:, 0:wx_out]                                   # [tn, nx*(rank+1)]
        raw_y = head[:, y_off:y_off + wy_out]                       # [tn, ny*(rank+1)]
        s0 = head[:, w_off + 0:w_off + 1]                           # rho logit
        ux = head[:, w_off + 1:w_off + 2]
        uy = head[:, w_off + 2:w_off + 3]
        s3 = head[:, w_off + 3:w_off + 4]                           # theta logit

        # maxwellian_LR (D=2): rho = exp(-s0), T = exp(-s3)
        # sqrt(rho)/sqrt(2*pi*T) and -1/(2T) via exp of linear combinations.
        norm = jnp.exp(0.5 * (s3 - s0)) * INV_SQRT_2PI              # [tn, 1]
        neg_half_inv_T = -0.5 * jnp.exp(s3)                         # [tn, 1]

        # fm expanded to the (rank+1)-grouped output lanes (vxe/vye are the
        # velocity grids repeated (rank+1) times) -> pure VPU/EUP elementwise.
        fmx = norm * jnp.exp((ux - vxe_ref[...]) ** 2 * neg_half_inv_T)  # [tn, wx_out]
        fmy = norm * jnp.exp((uy - vye_ref[...]) ** 2 * neg_half_inv_T)  # [tn, wy_out]

        # fm-slot columns of `head` are exactly 1.0 (zero weights, bias 1);
        # f2 columns already carry the 0.01**0.33 scale -> one multiply each.
        outx_ref[...] = fmx * raw_x
        outy_ref[...] = fmy * raw_y

    return kernel


def init_params(key, din, neurons, rank, nx, ny):
    """Deterministic synthetic parameters (PyTorch nn.Linear-style init)."""
    h0, h1 = neurons
    ks = jax.random.split(key, 10)

    def lin(kw, kb, fin, fout):
        bound = 1.0 / math.sqrt(fin)
        w = jax.random.uniform(kw, (fin, fout), jnp.float32, -bound, bound)
        b = jax.random.uniform(kb, (fout,), jnp.float32, -bound, bound)
        return w, b

    w0, b0 = lin(ks[0], ks[1], din, h0)
    w1, b1 = lin(ks[2], ks[3], h0, h1)
    wp, bp = lin(ks[4], ks[5], h1, 4)
    # TODO(synk): __init__ declares headx/heady as Linear(neurons[-1], rank) but
    # forward reshapes their output to (..., n, rank); implemented with output
    # dim n*rank so the reshape is well-defined.
    wx, bx = lin(ks[6], ks[7], h1, nx * rank)
    wy, by = lin(ks[8], ks[9], h1, ny * rank)
    return dict(w0=w0, b0=b0, w1=w1, b1=b1, wp=wp, bp=bp, wx=wx, bx=bx, wy=wy, by=by)


def _build_head_params(params, nx, ny, rank):
    """Fuse headx/heady/headp into one weight matrix whose column layout already
    matches the v-major (rank+1)-grouped output, with the fm slots and the SCALE
    factor folded in."""
    h1 = params["w1"].shape[1]
    rp1 = rank + 1
    wx_out = nx * rp1
    wy_out = ny * rp1
    y_off = _round_up(wx_out, 128)          # keep the y-block slice lane-tile aligned
    w_off = y_off + wy_out
    head_w = w_off + 4

    def block(w, b, n):
        w3 = w.reshape(h1, n, rank)
        b2 = b.reshape(n, rank)
        wk = jnp.concatenate([jnp.zeros((h1, n, 1), jnp.float32), SCALE * w3], axis=2)
        bk = jnp.concatenate([jnp.ones((n, 1), jnp.float32), SCALE * b2], axis=1)
        return wk.reshape(h1, n * rp1), bk.reshape(1, n * rp1)

    wxk, bxk = block(params["wx"], params["bx"], nx)
    wyk, byk = block(params["wy"], params["by"], ny)

    wh = jnp.zeros((h1, head_w), jnp.float32)
    wh = wh.at[:, 0:wx_out].set(wxk)
    wh = wh.at[:, y_off:y_off + wy_out].set(wyk)
    wh = wh.at[:, w_off:w_off + 4].set(params["wp"])
    bh = jnp.zeros((1, head_w), jnp.float32)
    bh = bh.at[:, 0:wx_out].set(bxk)
    bh = bh.at[:, y_off:y_off + wy_out].set(byk)
    bh = bh.at[:, w_off:w_off + 4].set(params["bp"][None, :])
    return wh, bh, wx_out, wy_out, y_off, w_off


def splitnet_forward(x, params, vx, vy, rank, *, tile_n=2048):
    N, din = x.shape
    nx, ny = vx.shape[0], vy.shape[0]
    rp1 = rank + 1

    wh, bh, wx_out, wy_out, y_off, w_off = _build_head_params(params, nx, ny, rank)
    b0 = params["b0"][None, :]
    b1 = params["b1"][None, :]
    vxe = jnp.repeat(vx, rp1)[None, :]                              # [1, nx*(rank+1)]
    vye = jnp.repeat(vy, rp1)[None, :]                              # [1, ny*(rank+1)]

    # ---- row tiling: big tiles; guarantee >= 2 grid steps (v7x megacore) -------
    n8 = _round_up(N, 8)
    eff_tile = min(_round_up(min(tile_n, n8), 8), n8)
    if n8 >= 16:
        eff_tile = min(eff_tile, _round_up((n8 + 1) // 2, 8))
    N_pad = _round_up(N, eff_tile)
    if N_pad != N:
        x = jnp.concatenate([x, jnp.zeros((N_pad - N, din), x.dtype)], axis=0)

    kernel = _make_kernel(din, wx_out, wy_out, y_off, w_off)

    const_inputs = (params["w0"], b0, params["w1"], b1, wh, bh, vxe, vye)
    in_specs = [pl.BlockSpec((eff_tile, din), lambda i: (i, 0))] + \
               [pl.BlockSpec(a.shape, lambda i: (0, 0)) for a in const_inputs]
    out_specs = [pl.BlockSpec((eff_tile, wx_out), lambda i: (i, 0)),
                 pl.BlockSpec((eff_tile, wy_out), lambda i: (i, 0))]

    out_x, out_y = pl.pallas_call(
        kernel,
        out_shape=(jax.ShapeDtypeStruct((N_pad, wx_out), jnp.float32),
                   jax.ShapeDtypeStruct((N_pad, wy_out), jnp.float32)),
        grid=(N_pad // eff_tile,),
        in_specs=in_specs,
        out_specs=out_specs,
        compiler_params=pltpu.CompilerParams(
            dimension_semantics=("parallel",),
            vmem_limit_bytes=32 * 1024 * 1024),
    )(x, *const_inputs)

    # Kernel already wrote v-major (rank+1)-groups: a contiguous reshape is all
    # that is left (bitcast when N is a multiple of the tile; row-slice otherwise).
    yx = out_x[:N].reshape(N, nx, rp1)
    yy = out_y[:N].reshape(N, ny, rp1)
    return yx, yy


def reference_forward(x, params, vx, vy, rank):
    """Pure-JAX transliteration of the PyTorch forward (for verification)."""
    N = x.shape[0]
    nx, ny = vx.shape[0], vy.shape[0]
    xout = jnp.sin(jnp.sin(x @ params["w0"] + params["b0"]) @ params["w1"] + params["b1"])
    www = xout @ params["wp"] + params["bp"]
    rho = jnp.exp(-www[:, 0:1])
    u = www[:, 1:3]
    theta = jnp.exp(-www[:, 3:4])

    def maxwellian_1d(v, r, uu, T):
        return r / jnp.sqrt(2 * np.pi * T) * jnp.exp(-(uu - v[None, :]) ** 2 / (2 * T))

    fmx = maxwellian_1d(vx, jnp.sqrt(rho), u[:, 0:1], theta)[..., None]   # [N, nx, 1]
    fmy = maxwellian_1d(vy, jnp.sqrt(rho), u[:, 1:2], theta)[..., None]   # [N, ny, 1]
    f2x = (xout @ params["wx"] + params["bx"]).reshape(N, nx, rank)
    f2y = (xout @ params["wy"] + params["by"]).reshape(N, ny, rank)
    f2x = SCALE * fmx * f2x
    f2y = SCALE * fmy * f2y
    return (jnp.concatenate([fmx, f2x], axis=-1),
            jnp.concatenate([fmy, f2y], axis=-1))


if __name__ == "__main__":
    key = jax.random.PRNGKey(0)
    k_x, k_p = jax.random.split(key)

    xdim = 1
    din = xdim + 1          # (x, t)
    neurons = [32, 32]
    rank = 4
    nx = ny = 16
    N = 200                 # forces a 2-step grid + row padding path

    vx = jnp.linspace(-5.0, 5.0, nx, dtype=jnp.float32)
    vy = jnp.linspace(-5.0, 5.0, ny, dtype=jnp.float32)
    params = init_params(k_p, din, neurons, rank, nx, ny)
    x = jax.random.uniform(k_x, (N, din), jnp.float32, -1.0, 1.0)

    fwd = jax.jit(splitnet_forward, static_argnames=("rank", "tile_n"))
    yx, yy = fwd(x, params, vx, vy, rank=rank)
    jax.block_until_ready((yx, yy))

    ryx, ryy = reference_forward(x, params, vx, vy, rank)
    np.testing.assert_allclose(np.asarray(yx), np.asarray(ryx), rtol=1e-5, atol=1e-5)
    np.testing.assert_allclose(np.asarray(yy), np.asarray(ryy), rtol=1e-5, atol=1e-5)

    print("KERNEL_OK")
</pallas_src>

<mosaic_0001>
module attributes {stable_mosaic.version = 11 : i64} {
  func.func @kernel(%arg0: i32, %arg1: memref<104x2xf32, #tpu.memory_space<vmem>>, %arg2: memref<2x32xf32, #tpu.memory_space<vmem>>, %arg3: memref<1x32xf32, #tpu.memory_space<vmem>>, %arg4: memref<32x32xf32, #tpu.memory_space<vmem>>, %arg5: memref<1x32xf32, #tpu.memory_space<vmem>>, %arg6: memref<32x212xf32, #tpu.memory_space<vmem>>, %arg7: memref<1x212xf32, #tpu.memory_space<vmem>>, %arg8: memref<1x80xf32, #tpu.memory_space<vmem>>, %arg9: memref<1x80xf32, #tpu.memory_space<vmem>>, %arg10: memref<104x80xf32, #tpu.memory_space<vmem>>, %arg11: memref<104x80xf32, #tpu.memory_space<vmem>>) attributes {dimension_semantics = [#tpu.dimension_semantics<parallel>], iteration_bounds = array<i64: 2>, scalar_prefetch = 0 : i64, scratch_operands = 0 : i64, tpu.core_type = #tpu.core_type<tc>, window_params = [{transform_indices = @transform_0, window_bounds = array<i64: 104, 2>}, {pipeline_mode = #tpu.pipeline_mode<synchronous>, transform_indices = @transform_1, window_bounds = array<i64: 2, 32>}, {pipeline_mode = #tpu.pipeline_mode<synchronous>, transform_indices = @transform_2, window_bounds = array<i64: 1, 32>}, {pipeline_mode = #tpu.pipeline_mode<synchronous>, transform_indices = @transform_3, window_bounds = array<i64: 32, 32>}, {pipeline_mode = #tpu.pipeline_mode<synchronous>, transform_indices = @transform_4, window_bounds = array<i64: 1, 32>}, {pipeline_mode = #tpu.pipeline_mode<synchronous>, transform_indices = @transform_5, window_bounds = array<i64: 32, 212>}, {pipeline_mode = #tpu.pipeline_mode<synchronous>, transform_indices = @transform_6, window_bounds = array<i64: 1, 212>}, {pipeline_mode = #tpu.pipeline_mode<synchronous>, transform_indices = @transform_7, window_bounds = array<i64: 1, 80>}, {pipeline_mode = #tpu.pipeline_mode<synchronous>, transform_indices = @transform_8, window_bounds = array<i64: 1, 80>}, {transform_indices = @transform_9, window_bounds = array<i64: 104, 80>}, {transform_indices = @transform_10, window_bounds = array<i64: 104, 80>}]} {
    %c0 = arith.constant 0 : index
    %c0_0 = arith.constant 0 : index
    %0 = vector.load %arg1[%c0, %c0_0] : memref<104x2xf32, #tpu.memory_space<vmem>>, vector<104x2xf32>
    %c0_1 = arith.constant 0 : index
    %c0_2 = arith.constant 0 : index
    %1 = vector.load %arg3[%c0_1, %c0_2] : memref<1x32xf32, #tpu.memory_space<vmem>>, vector<1x32xf32>
    %2 = vector.extract_strided_slice %0 {offsets = [0, 0], sizes = [104, 1], strides = [1, 1]} : vector<104x2xf32> to vector<104x1xf32>
    %c0_3 = arith.constant 0 : index
    %c0_4 = arith.constant 0 : index
    %3 = vector.load %arg2[%c0_3, %c0_4] : memref<2x32xf32, #tpu.memory_space<vmem>>, vector<1x32xf32>
    %4 = vector.broadcast %2 : vector<104x1xf32> to vector<104x32xf32>
    %5 = vector.broadcast %3 : vector<1x32xf32> to vector<104x32xf32>
    %6 = arith.mulf %4, %5 : vector<104x32xf32>
    %7 = vector.broadcast %1 : vector<1x32xf32> to vector<104x32xf32>
    %8 = arith.addf %7, %6 : vector<104x32xf32>
    %9 = vector.extract_strided_slice %0 {offsets = [0, 1], sizes = [104, 1], strides = [1, 1]} : vector<104x2xf32> to vector<104x1xf32>
    %c1 = arith.constant 1 : index
    %c0_5 = arith.constant 0 : index
    %10 = vector.load %arg2[%c1, %c0_5] : memref<2x32xf32, #tpu.memory_space<vmem>>, vector<1x32xf32>
    %11 = vector.broadcast %9 : vector<104x1xf32> to vector<104x32xf32>
    %12 = vector.broadcast %10 : vector<1x32xf32> to vector<104x32xf32>
    %13 = arith.mulf %11, %12 : vector<104x32xf32>
    %14 = arith.addf %8, %13 : vector<104x32xf32>
    %15 = math.sin %14 : vector<104x32xf32>
    %c0_6 = arith.constant 0 : index
    %c0_7 = arith.constant 0 : index
    %16 = vector.load %arg4[%c0_6, %c0_7] : memref<32x32xf32, #tpu.memory_space<vmem>>, vector<32x32xf32>
    %cst = arith.constant dense<0.000000e+00> : vector<104x32xf32>
    %17 = tpu.matmul %15, %16, %cst {dimension_numbers = #tpu.dot_dimension_numbers<[1], [0], [0], [1], [0, 0, 1, 1], [], []>} : vector<104x32xf32>, vector<32x32xf32>, vector<104x32xf32> -> vector<104x32xf32>
    %c0_8 = arith.constant 0 : index
    %c0_9 = arith.constant 0 : index
    %18 = vector.load %arg5[%c0_8, %c0_9] : memref<1x32xf32, #tpu.memory_space<vmem>>, vector<1x32xf32>
    %19 = vector.broadcast %18 : vector<1x32xf32> to vector<104x32xf32>
    %20 = arith.addf %17, %19 : vector<104x32xf32>
    %21 = math.sin %20 : vector<104x32xf32>
    %c0_10 = arith.constant 0 : index
    %c0_11 = arith.constant 0 : index
    %22 = vector.load %arg6[%c0_10, %c0_11] : memref<32x212xf32, #tpu.memory_space<vmem>>, vector<32x212xf32>
    %cst_12 = arith.constant dense<0.000000e+00> : vector<104x212xf32>
    %23 = tpu.matmul %21, %22, %cst_12 {dimension_numbers = #tpu.dot_dimension_numbers<[1], [0], [0], [1], [0, 0, 1, 1], [], []>} : vector<104x32xf32>, vector<32x212xf32>, vector<104x212xf32> -> vector<104x212xf32>
    %c0_13 = arith.constant 0 : index
    %c0_14 = arith.constant 0 : index
    %24 = vector.load %arg7[%c0_13, %c0_14] : memref<1x212xf32, #tpu.memory_space<vmem>>, vector<1x212xf32>
    %25 = vector.broadcast %24 : vector<1x212xf32> to vector<104x212xf32>
    %26 = arith.addf %23, %25 : vector<104x212xf32>
    %27 = vector.extract_strided_slice %26 {offsets = [0, 0], sizes = [104, 80], strides = [1, 1]} : vector<104x212xf32> to vector<104x80xf32>
    %28 = vector.extract_strided_slice %26 {offsets = [0, 128], sizes = [104, 80], strides = [1, 1]} : vector<104x212xf32> to vector<104x80xf32>
    %29 = vector.extract_strided_slice %26 {offsets = [0, 208], sizes = [104, 1], strides = [1, 1]} : vector<104x212xf32> to vector<104x1xf32>
    %30 = vector.extract_strided_slice %26 {offsets = [0, 209], sizes = [104, 1], strides = [1, 1]} : vector<104x212xf32> to vector<104x1xf32>
    %31 = vector.extract_strided_slice %26 {offsets = [0, 210], sizes = [104, 1], strides = [1, 1]} : vector<104x212xf32> to vector<104x1xf32>
    %32 = vector.extract_strided_slice %26 {offsets = [0, 211], sizes = [104, 1], strides = [1, 1]} : vector<104x212xf32> to vector<104x1xf32>
    %33 = arith.subf %32, %29 : vector<104x1xf32>
    %cst_15 = arith.constant 5.000000e-01 : f32
    %34 = vector.broadcast %cst_15 : f32 to vector<104x1xf32>
    %35 = arith.mulf %34, %33 : vector<104x1xf32>
    %36 = math.exp %35 : vector<104x1xf32>
    %cst_16 = arith.constant 0.398942292 : f32
    %37 = vector.broadcast %cst_16 : f32 to vector<104x1xf32>
    %38 = arith.mulf %36, %37 : vector<104x1xf32>
    %39 = math.exp %32 : vector<104x1xf32>
    %cst_17 = arith.constant -5.000000e-01 : f32
    %40 = vector.broadcast %cst_17 : f32 to vector<104x1xf32>
    %41 = arith.mulf %40, %39 : vector<104x1xf32>
    %c0_18 = arith.constant 0 : index
    %c0_19 = arith.constant 0 : index
    %42 = vector.load %arg8[%c0_18, %c0_19] : memref<1x80xf32, #tpu.memory_space<vmem>>, vector<1x80xf32>
    %43 = vector.broadcast %30 : vector<104x1xf32> to vector<104x80xf32>
    %44 = vector.broadcast %42 : vector<1x80xf32> to vector<104x80xf32>
    %45 = arith.subf %43, %44 : vector<104x80xf32>
    %46 = arith.mulf %45, %45 : vector<104x80xf32>
    %47 = vector.broadcast %41 : vector<104x1xf32> to vector<104x80xf32>
    %48 = arith.mulf %46, %47 : vector<104x80xf32>
    %49 = math.exp %48 : vector<104x80xf32>
    %50 = vector.broadcast %38 : vector<104x1xf32> to vector<104x80xf32>
    %51 = arith.mulf %50, %49 : vector<104x80xf32>
    %c0_20 = arith.constant 0 : index
    %c0_21 = arith.constant 0 : index
    %52 = vector.load %arg9[%c0_20, %c0_21] : memref<1x80xf32, #tpu.memory_space<vmem>>, vector<1x80xf32>
    %53 = vector.broadcast %31 : vector<104x1xf32> to vector<104x80xf32>
    %54 = vector.broadcast %52 : vector<1x80xf32> to vector<104x80xf32>
    %55 = arith.subf %53, %54 : vector<104x80xf32>
    %56 = arith.mulf %55, %55 : vector<104x80xf32>
    %57 = vector.broadcast %41 : vector<104x1xf32> to vector<104x80xf32>
    %58 = arith.mulf %56, %57 : vector<104x80xf32>
    %59 = math.exp %58 : vector<104x80xf32>
    %60 = vector.broadcast %38 : vector<104x1xf32> to vector<104x80xf32>
    %61 = arith.mulf %60, %59 : vector<104x80xf32>
    %62 = arith.mulf %51, %27 : vector<104x80xf32>
    %c0_22 = arith.constant 0 : index
    %c0_23 = arith.constant 0 : index
    %63 = vector.load %arg10[%c0_22, %c0_23] : memref<104x80xf32, #tpu.memory_space<vmem>>, vector<104x80xf32>
    tpu.vector_store %arg10[%c0_22, %c0_23], %62 {strides = array<i32>} : memref<104x80xf32, #tpu.memory_space<vmem>>, vector<104x80xf32>,
    %64 = arith.mulf %61, %28 : vector<104x80xf32>
    %c0_24 = arith.constant 0 : index
    %c0_25 = arith.constant 0 : index
    %65 = vector.load %arg11[%c0_24, %c0_25] : memref<104x80xf32, #tpu.memory_space<vmem>>, vector<104x80xf32>
    tpu.vector_store %arg11[%c0_24, %c0_25], %64 {strides = array<i32>} : memref<104x80xf32, #tpu.memory_space<vmem>>, vector<104x80xf32>,
    return
  }
  func.func @transform_0(%arg0: i32) -> (i32, i32) {
    %c0_i32 = arith.constant 0 : i32
    %c0_i32_0 = arith.constant 0 : i32
    return %arg0, %c0_i32 : i32, i32
  }
  func.func @transform_1(%arg0: i32) -> (i32, i32) {
    %c0_i32 = arith.constant 0 : i32
    %c0_i32_0 = arith.constant 0 : i32
    %c0_i32_1 = arith.constant 0 : i32
    return %c0_i32, %c0_i32_0 : i32, i32
  }
  func.func @transform_2(%arg0: i32) -> (i32, i32) {
    %c0_i32 = arith.constant 0 : i32
    %c0_i32_0 = arith.constant 0 : i32
    %c0_i32_1 = arith.constant 0 : i32
    return %c0_i32, %c0_i32_0 : i32, i32
  }
  func.func @transform_3(%arg0: i32) -> (i32, i32) {
    %c0_i32 = arith.constant 0 : i32
    %c0_i32_0 = arith.constant 0 : i32
    %c0_i32_1 = arith.constant 0 : i32
    return %c0_i32, %c0_i32_0 : i32, i32
  }
  func.func @transform_4(%arg0: i32) -> (i32, i32) {
    %c0_i32 = arith.constant 0 : i32
    %c0_i32_0 = arith.constant 0 : i32
    %c0_i32_1 = arith.constant 0 : i32
    return %c0_i32, %c0_i32_0 : i32, i32
  }
  func.func @transform_5(%arg0: i32) -> (i32, i32) {
    %c0_i32 = arith.constant 0 : i32
    %c0_i32_0 = arith.constant 0 : i32
    %c0_i32_1 = arith.constant 0 : i32
    return %c0_i32, %c0_i32_0 : i32, i32
  }
  func.func @transform_6(%arg0: i32) -> (i32, i32) {
    %c0_i32 = arith.constant 0 : i32
    %c0_i32_0 = arith.constant 0 : i32
    %c0_i32_1 = arith.constant 0 : i32
    return %c0_i32, %c0_i32_0 : i32, i32
  }
  func.func @transform_7(%arg0: i32) -> (i32, i32) {
    %c0_i32 = arith.constant 0 : i32
    %c0_i32_0 = arith.constant 0 : i32
    %c0_i32_1 = arith.constant 0 : i32
    return %c0_i32, %c0_i32_0 : i32, i32
  }
  func.func @transform_8(%arg0: i32) -> (i32, i32) {
    %c0_i32 = arith.constant 0 : i32
    %c0_i32_0 = arith.constant 0 : i32
    %c0_i32_1 = arith.constant 0 : i32
    return %c0_i32, %c0_i32_0 : i32, i32
  }
  func.func @transform_9(%arg0: i32) -> (i32, i32) {
    %c0_i32 = arith.constant 0 : i32
    %c0_i32_0 = arith.constant 0 : i32
    return %arg0, %c0_i32 : i32, i32
  }
  func.func @transform_10(%arg0: i32) -> (i32, i32) {
    %c0_i32 = arith.constant 0 : i32
    %c0_i32_0 = arith.constant 0 : i32
    return %arg0, %c0_i32 : i32, i32
  }
}

</mosaic_0001>

<bundles_post_ra>
// kernel: splitnet_forward.1
= control target key start
LH: loop header
LB: loop body
LE: loop exit
PB: predicated region body
PF: predicated region fallthrough
CT: control target
= control target key end

     0   :  { %s5021_s13 = smov 0   ;;  %s8320_s0 = inlined_call_operand.vmem [shape: f32[208,2], index: 0, kind: input, shape index: {}]   ;;  %s8321_s1 = inlined_call_operand.vmem [shape: f32[2,32], index: 1, kind: input, shape index: {}]   ;;  %s8322_s2 = inlined_call_operand.vmem [shape: f32[1,32], index: 2, kind: input, shape index: {}]   ;;  %s8323_s3 = inlined_call_operand.vmem [shape: f32[32,32], index: 3, kind: input, shape index: {}]   ;;  %s8324_s4 = inlined_call_operand.vmem [shape: f32[1,32], index: 4, kind: input, shape index: {}]   ;;  %s8325_s5 = inlined_call_operand.vmem [shape: f32[32,212], index: 5, kind: input, shape index: {}]   ;;  %s8326_s6 = inlined_call_operand.vmem [shape: f32[1,212], index: 6, kind: input, shape index: {}]   ;;  %s8327_s7 = inlined_call_operand.vmem [shape: f32[1,80], index: 7, kind: input, shape index: {}]   ;;  %s8328_s8 = inlined_call_operand.vmem [shape: f32[1,80], index: 8, kind: input, shape index: {}]   ;;  %s8329_s9 = inlined_call_operand.vmem [shape: f32[208,80], index: 9, kind: output, shape index: {0}]   ;;  %s8330_s10 = inlined_call_operand.vmem [shape: f32[208,80], index: 10, kind: output, shape index: {1}]  }
   0x1 LB: > { %s4366_s14 = sadd.s32 4294967295, %s4949_s13   ;;  %p4370_p0 = scmp.ge.s32.totalorder %s4949_s13, 1  ;;  %s4949_s13 = sphi %s5021_s13, %s21_s13  }
   0x2   : > { %p316_p1 = scmp.lt.s32.totalorder %s4949_s13, 3 }
   0x4   : > { %p317_p2 = pnand %p4370_p0, %p316_p1 }
   0x6   : > { %320 = sbr.rel (%p317_p2) target bundleno = 1357 (0x54d), region = 56 }
   0xd   : > { %s359_s15 = smul.u32 13, %s4366_s14  ;;  %v4951_v0 = vmov 0   ;;  %v4952_v3 = vmov 1   ;;  %v1928_v15 = vld [vmem:[%s8323_s3] sm:$0xff]  ;;  %v1929_v16 = vld [vmem:[%s8323_s3 + $0x8] sm:$0xff]  ;;  %v1930_v17 = vld [vmem:[%s8323_s3 + $0x10] sm:$0xff] }
   0xe   : > { %4719 = vset.pattern.permute.xlu1 %v4951_v0  ;;  %4717 = vset.pattern.permute.xlu0 %v4951_v0  ;;  %v4953_v18 = vmov 0.0|0.0   ;;  %v4577_v19 = vpack.c.bf16 %v1929_v16, %v1928_v15  ;;  %v1931_v20 = vld [vmem:[%s8323_s3 + $0x18] sm:$0xff]  ;;  %vm4954_vm0 = vmmov 0   ;;  %v8331_v21 = vmov 0.0   ;;  %v5068_v23 = vld [vmem:[%s8321_s1] ss:$0 sm:$0xff] }
   0xf   : > { %p360_p3 = scmp.lt.s32.totalorder %s359_s15, 25  ;;  %4576 = vmatprep.subr.bf16.mxu0 %v4953_v18  ;;  %4537 = vmatprep.mubr.msk.f32.mxu0 %vm4954_vm0, %v8331_v21  ;;  %v4580_v22 = vpack.c.bf16 %v1931_v20, %v1930_v17  ;;  %v5074_v27 = vld [vmem:[%s8322_s2] ss:$0 sm:$0xff]  ;;  %v5080_v29 = vld [vmem:[%s8321_s1 + $0x1] ss:$0 sm:$0xff]  ;;  %s4963_s20 = smov 3  }
  0x10   : > { %3584 = vmatprep.mubr.f32.mxu1 %v8331_v21  ;;  %4578 = vmatpush3.bf16.msra.mxu0 %v4577_v19 }
  0x11   : > { %s8703_s15 = smov (!%p360_p3, %s359_s15), 25  ;;  %4579 = vmatprep.subr.bf16.mxu0 %v4953_v18 }
  0x12   : > { %s5029_s16 = sshll.u32 %s8703_s15, 3 }
  0x13   : > { %s5035_s19 = scalar_lea.vmem %s8320_s0, %s5029_s16  ;;  %s8172_s27 = scalar_lea.vmem %s8329_s9, %s5029_s16 }
  0x14   : > { %v378_v1 = vld [vmem:[%s5035_s19 + $0x8] sm:$0xff]  ;;  %v377_v2 = vld [vmem:[%s5035_s19] sm:$0xff]  ;;  %v379_v4 = vld [vmem:[%s5035_s19 + $0x10] sm:$0xff]  ;;  %4581 = vmatpush3.bf16.msra.mxu0 %v4580_v22  ;;  %s8178_s30 = scalar_lea.vmem %s8330_s10, %s5029_s16 }
  0x15   : > { %399 = vperm.xlu1 %4719, %v378_v1   ;;  %394 = vperm.xlu0 %4717, %v377_v2   ;;  %v380_v5 = vld [vmem:[%s5035_s19 + $0x18] sm:$0xff]  ;;  %v381_v6 = vld [vmem:[%s5035_s19 + $0x20] sm:$0xff]  ;;  %v382_v7 = vld [vmem:[%s5035_s19 + $0x28] sm:$0xff] }
  0x16   : > { %v383_v8 = vld [vmem:[%s5035_s19 + $0x30] sm:$0xff]  ;;  %v384_v9 = vld [vmem:[%s5035_s19 + $0x38] sm:$0xff]  ;;  %v385_v10 = vld [vmem:[%s5035_s19 + $0x40] sm:$0xff] }
  0x17   : > { %v386_v11 = vld [vmem:[%s5035_s19 + $0x48] sm:$0xff]  ;;  %v387_v12 = vld [vmem:[%s5035_s19 + $0x50] sm:$0xff]  ;;  %v388_v13 = vld [vmem:[%s5035_s19 + $0x58] sm:$0xff] }
  0x18   : > { %v389_v14 = vld [vmem:[%s5035_s19 + $0x60] sm:$0xff] }
  0x19   : > { %4720 = vset.pattern.permute.xlu1 %v4952_v3  ;;  %4718 = vset.pattern.permute.xlu0 %v4952_v3 }
  0x1a   : > { %499 = vperm.xlu1 %4720, %v378_v1   ;;  %495 = vperm.xlu0 %4718, %v377_v2  }
  0x1e   : > { %4721 = vset.pattern.permute.xlu1 %v4951_v0  ;;  %503 = vperm.xlu0 %4718, %v379_v4  }
  0x1f   : > { %404 = vperm.xlu1 %4721, %v379_v4  }
  0x22   : > { %507 = vperm.xlu0 %4718, %v380_v5  }
  0x23   : > { %409 = vperm.xlu1 %4721, %v380_v5  }
  0x26   : > { %511 = vperm.xlu0 %4718, %v381_v6  }
  0x27   : > { %414 = vperm.xlu1 %4721, %v381_v6  }
  0x2a   : > { %515 = vperm.xlu0 %4718, %v382_v7  }
  0x2b   : > { %419 = vperm.xlu1 %4721, %v382_v7  }
  0x2e   : > { %519 = vperm.xlu0 %4718, %v383_v8  }
  0x2f   : > { %424 = vperm.xlu1 %4721, %v383_v8  }
  0x32   : > { %523 = vperm.xlu0 %4718, %v384_v9  }
  0x33   : > { %429 = vperm.xlu1 %4721, %v384_v9  }
  0x36   : > { %527 = vperm.xlu0 %4718, %v385_v10  }
  0x37   : > { %434 = vperm.xlu1 %4721, %v385_v10  }
  0x3a   : > { %531 = vperm.xlu0 %4718, %v386_v11  }
  0x3b   : > { %439 = vperm.xlu1 %4721, %v386_v11  }
  0x3e   : > { %535 = vperm.xlu0 %4718, %v387_v12  }
  0x3f   : > { %444 = vperm.xlu1 %4721, %v387_v12  }
  0x42   : > { %539 = vperm.xlu0 %4718, %v388_v13  }
  0x43   : > { %449 = vperm.xlu1 %4721, %v388_v13  }
  0x46   : > { %543 = vperm.xlu0 %4718, %v389_v14  }
  0x47   : > { %454 = vperm.xlu1 %4721, %v389_v14  }
  0x94   : > { %v395_v24 = vpop.permute.xlu0 %394  ;;  %v400_v25 = vpop.permute.xlu1 %399 }
  0x95   : > { %v462_v26 = vmul.f32 %v5068_v23, %v400_v25  ;;  %v461_v28 = vmul.f32 %v5068_v23, %v395_v24 }
  0x97   : > { %v481_v32 = vadd.f32 %v5074_v27, %v462_v26  ;;  %v480_v35 = vadd.f32 %v5074_v27, %v461_v28 }
  0x99   : > { %v500_v30 = vpop.permute.xlu1 %499  ;;  %v496_v31 = vpop.permute.xlu0 %495 }
  0x9a   : > { %v551_v33 = vmul.f32 %v5080_v29, %v500_v30  ;;  %v550_v34 = vmul.f32 %v5080_v29, %v496_v31 }
  0x9c   : > { %v5086_v36 = vadd.f32 %v551_v33, %v481_v32  ;;  %v5088_v37 = vadd.f32 %v550_v34, %v480_v35 }
  0x9d   : > { %v504_v38 = vpop.permute.xlu0 %503 }
  0x9e   : > { %v405_v39 = vpop.permute.xlu1 %404  ;;  %v683_v41 = vand.u32 2139095040, %v5086_v36  ;;  %v579_v42 = vand.u32 2139095040, %v5088_v37  ;;  %v552_v45 = vmul.f32 %v5080_v29, %v504_v38  ;;  %v8334_v5 = vand.u32 2147483647, %v5088_v37 }
  0x9f   : > { %v463_v40 = vmul.f32 %v5068_v23, %v405_v39  ;;  %v8333_v14 = vand.u32 2147483647, %v5086_v36 }
  0xa0   : > { %v684_v47 = vshrl.u32 %v683_v41, 23  ;;  %v580_v50 = vshrl.u32 %v579_v42, 23  ;;  %v583_v11 = vand.u32 8388607, %v8334_v5 }
  0xa1   : > { %v482_v43 = vadd.f32 %v5074_v27, %v463_v40  ;;  %v508_v44 = vpop.permute.xlu0 %507  ;;  %v5126_v33 = vand.u32 8388607, %v8333_v14 }
  0xa2   : > { %v410_v46 = vpop.permute.xlu1 %409  ;;  %v4381_v53 = vadd.s32 4294967169, %v684_v47  ;;  %v4377_v56 = vadd.s32 4294967169, %v580_v50  ;;  %v553_v59 = vmul.f32 %v5080_v29, %v508_v44  ;;  %v584_v28 = vor.u32 8388608, %v583_v11 }
  0xa3   : > { %v5095_v48 = vadd.f32 %v552_v45, %v482_v43  ;;  %v464_v49 = vmul.f32 %v5068_v23, %v410_v46 }
  0xa4   : > { %v690_v61 = vadd.s32 1, %v4381_v53  ;;  %v586_v0 = vadd.s32 1, %v4377_v56  ;;  %v5138_v45 = vshll.u32 %v584_v28, 8 }
  0xa5   : > { %v512_v51 = vpop.permute.xlu0 %511  ;;  %v787_v54 = vand.u32 2139095040, %v5095_v48  ;;  %v483_v55 = vadd.f32 %v5074_v27, %v464_v49 }
  0xa6   : > { %v415_v52 = vpop.permute.xlu1 %414  ;;  %v554_v1 = vmul.f32 %v5080_v29, %v512_v51  ;;  %vm691_vm1 = vcmp.gt.s32.totalorder %v690_v61, 0  ;;  %vm587_vm2 = vcmp.gt.s32.totalorder %v586_v0, 0 }
  0xa7   : > { %v465_v57 = vmul.f32 %v5068_v23, %v415_v52  ;;  %v788_v62 = vshrl.u32 %v787_v54, 23  ;;  %v5102_v63 = vadd.f32 %v553_v59, %v483_v55  ;;  %v692_v12 = vsel %vm691_vm1, %v690_v61, 0 }
  0xa8   : > { %v588_v15 = vsel %vm587_vm2, %v586_v0, 0  ;;  %v5117_v24 = vand.u32 31, %v692_v12  ;;  %v5149_v59 = vshrl.u32 %v692_v12, 5 }
  0xa9   : > { %v516_v58 = vpop.permute.xlu0 %515  ;;  %v484_v2 = vadd.f32 %v5074_v27, %v465_v57  ;;  %v4385_v7 = vadd.s32 4294967169, %v788_v62  ;;  %v891_v8 = vand.u32 2139095040, %v5102_v63  ;;  %v5121_v30 = vand.u32 31, %v588_v15 }
  0xaa   : > { %v420_v60 = vpop.permute.xlu1 %419  ;;  %v555_v25 = vmul.f32 %v5080_v29, %v516_v58  ;;  %v5134_v41 = vsub.s32 32, %v5117_v24  ;;  %v8359_v62 = vmov 920167782   ;;  %vm715_vm7 = vcmp.lt.s32.totalorder %v5149_v59, 4 }
  0xab   : > { %v5107_v6 = vadd.f32 %v554_v1, %v484_v2  ;;  %v466_v13 = vmul.f32 %v5068_v23, %v420_v60  ;;  %v794_v16 = vadd.s32 1, %v4385_v7  ;;  %v892_v17 = vshrl.u32 %v891_v8, 23 }
  0xac   : > { %v5141_v46 = vsub.s32 32, %v5121_v30  ;;  %v8339_v60 = vmov 2102212464   ;;  %v707_v0 = vshrl.u32 %v8359_v62, %v5134_v41  ;;  %v5155_v1 = vshrl.u32 %v588_v15, 5 }
  0xad   : > { %v520_v3 = vpop.permute.xlu0 %519  ;;  %8462 = vst [vmem:[#allocation2_spill] sm:$0xff] %v5107_v6  ;;  %v995_v9 = vand.u32 2139095040, %v5107_v6  ;;  %v485_v22 = vadd.f32 %v5074_v27, %v466_v13  ;;  %vm795_vm3 = vcmp.gt.s32.totalorder %v794_v16, 0  ;;  %v4389_v34 = vadd.s32 4294967169, %v892_v17 }
  0xae   : > { %v425_v4 = vpop.permute.xlu1 %424  ;;  %v556_v31 = vmul.f32 %v5080_v29, %v520_v3  ;;  %v796_v47 = vsel %vm795_vm3, %v794_v16, 0  ;;  %v706_v61 = vshll.u32 %v8339_v60, %v5117_v24  ;;  %v8335_v8 = vmov 1326507024  }
  0xaf   : > { %v467_v18 = vmul.f32 %v5068_v23, %v425_v4  ;;  %v996_v20 = vshrl.u32 %v995_v9, 23  ;;  %v5128_v35 = vadd.f32 %v555_v25, %v485_v22  ;;  %v898_v51 = vadd.s32 1, %v4389_v34 }
  0xb0   : > { %v710_v9 = vshrl.u32 %v8335_v8, %v5134_v41  ;;  %v5165_v11 = vand.u32 31, %v796_v47  ;;  %v709_v17 = vshll.u32 %v8359_v62, %v5117_v24  ;;  %v5177_v22 = vor.u32 %v707_v0, %v706_v61 }
  0xb1   : > { %v524_v19 = vpop.permute.xlu0 %523  ;;  %v486_v26 = vadd.f32 %v5074_v27, %v467_v18  ;;  %8463 = vst [vmem:[#allocation3_spill] sm:$0xff] %v5128_v35  ;;  %v4393_v38 = vadd.s32 4294967169, %v996_v20  ;;  %v1099_v42 = vand.u32 2139095040, %v5128_v35  ;;  %vm899_vm4 = vcmp.gt.s32.totalorder %v898_v51, 0 }
  0xb2   : > { %v430_v10 = vpop.permute.xlu1 %429  ;;  %v557_v53 = vmul.f32 %v5080_v29, %v524_v19  ;;  %v602_v18 = vshll.u32 %v8339_v60, %v5121_v30  ;;  %v605_v19 = vshll.u32 %v8359_v62, %v5121_v30  ;;  %v606_v20 = vshrl.u32 %v8335_v8, %v5141_v46 }
  0xb3   : > { %v5130_v39 = vadd.f32 %v556_v31, %v486_v26  ;;  %v468_v40 = vmul.f32 %v5068_v23, %v430_v10  ;;  %v1100_v52 = vshrl.u32 %v1099_v42, 23  ;;  %v1002_v55 = vadd.s32 1, %v4393_v38 }
  0xb4   : > { %v603_v10 = vshrl.u32 %v8359_v62, %v5141_v46  ;;  %v900_v25 = vsel %vm899_vm4, %v898_v51, 0  ;;  %v711_v31 = vor.u32 %v710_v9, %v709_v17  ;;  %vm611_vm8 = vcmp.lt.s32.totalorder %v5155_v1, 4 }
  0xb5   : > { %8464 = vst [vmem:[#allocation4_spill] sm:$0xff] %v5130_v39  ;;  %v528_v43 = vpop.permute.xlu0 %527  ;;  %v1203_v49 = vand.u32 2139095040, %v5130_v39  ;;  %v487_v54 = vadd.f32 %v5074_v27, %v468_v40  ;;  %v4397_v2 = vadd.s32 4294967169, %v1100_v52  ;;  %vm1003_vm5 = vcmp.gt.s32.totalorder %v1002_v55, 0 }
  0xb6   : > { %v435_v32 = vpop.permute.xlu1 %434  ;;  %v558_v57 = vmul.f32 %v5080_v29, %v528_v43  ;;  %v1004_v34 = vsel %vm1003_vm5, %v1002_v55, 0  ;;  %v5183_v40 = vor.u32 %v603_v10, %v602_v18  ;;  %v5193_v51 = vsel %vm715_vm7, %v5177_v22, 920167782 }
  0xb7   : > { %v469_v44 = vmul.f32 %v5068_v23, %v435_v32  ;;  %v1204_v56 = vshrl.u32 %v1203_v49, 23  ;;  %v5157_v4 = vadd.f32 %v557_v53, %v487_v54  ;;  %v1106_v12 = vadd.s32 1, %v4397_v2 }
  0xb8   : > { %v5180_v32 = vsub.s32 32, %v5165_v11  ;;  %v5188_v49 = vand.u32 31, %v900_v25  ;;  %v5195_v52 = vand.u32 31, %v1004_v34  ;;  %v5199_v55 = vsel %vm715_vm7, %v711_v31, 1326507024 }
  0xb9   : > { %v488_v58 = vadd.f32 %v5074_v27, %v469_v44  ;;  %v4401_v3 = vadd.s32 4294967169, %v1204_v56  ;;  %8465 = vst [vmem:[#allocation5_spill] sm:$0xff] %v5157_v4  ;;  %v1307_v13 = vand.u32 2139095040, %v5157_v4  ;;  %vm1107_vm6 = vcmp.gt.s32.totalorder %v1106_v12, 0  ;;  %v532_v54 = vpop.permute.xlu0 %531 }
  0xba   : > { %v440_v16 = vpop.permute.xlu1 %439  ;;  %v607_v44 = vor.u32 %v606_v20, %v605_v19  ;;  %8467 = vst [vmem:[#allocation7_spill] sm:$0xff] %v5195_v52  ;;  %v811_v56 = vshrl.u32 %v8359_v62, %v5180_v32  ;;  %v5207_v61 = vsel %vm611_vm8, %v5183_v40, 920167782  ;;  %v5209_v0 = vshrl.u32 %v796_v47, 5 }
  0xbb   : > { %v5159_v7 = vadd.f32 %v558_v57, %v488_v58  ;;  %v1210_v26 = vadd.s32 1, %v4401_v3  ;;  %v1308_v28 = vshrl.u32 %v1307_v13, 23  ;;  %v470_v38 = vmul.f32 %v5068_v23, %v440_v16 }
  0xbc   : > { %v1108_v57 = vsel %vm1107_vm6, %v1106_v12, 0  ;;  %v814_v2 = vshrl.u32 %v8335_v8, %v5180_v32  ;;  %v810_v9 = vshll.u32 %v8339_v60, %v5165_v11  ;;  %v5216_v10 = vsub.s32 32, %v5188_v49 }
  0xbd   : > { %8466 = vst [vmem:[#allocation6_spill] sm:$0xff] %v5159_v7  ;;  %v1411_v15 = vand.u32 2139095040, %v5159_v7  ;;  %vm1211_vm9 = vcmp.gt.s32.totalorder %v1210_v26, 0  ;;  %v4405_v53 = vadd.s32 4294967169, %v1308_v28  ;;  %v489_v58 = vadd.f32 %v5074_v27, %v470_v38  ;;  %v536_v4 = vpop.permute.xlu0 %535 }
  0xbe   : > { %v1212_v12 = vsel %vm1211_vm9, %v1210_v26, 0  ;;  %v559_v13 = vmul.f32 %v5080_v29, %v532_v54  ;;  %v5222_v16 = vsub.s32 32, %v5195_v52  ;;  %v5224_v47 = vand.u32 31, %v1108_v57 }
  0xbf   : > { %v1412_v42 = vshrl.u32 %v1411_v15, 23  ;;  %v813_v15 = vshll.u32 %v8359_v62, %v5165_v11  ;;  %v1314_v17 = vadd.s32 1, %v4405_v53  ;;  %v5228_v18 = vsel %vm611_vm8, %v607_v44, 1326507024 }
  0xc0   : > { %8468 = vst [vmem:[#allocation8_spill] sm:$0xff] %v5222_v16  ;;  %8469 = vst [vmem:[#allocation9_spill] sm:$0xff] %v5224_v47  ;;  %v5230_v19 = vor.u32 %v811_v56, %v810_v9  ;;  %v5232_v20 = vshrl.u32 %v900_v25, 5  ;;  %v5234_v26 = vadd.f32 %v559_v13, %v489_v58  ;;  %vm819_vm10 = vcmp.lt.s32.totalorder %v5209_v0, 4 }
  0xc1   : > { %v4409_v3 = vadd.s32 4294967169, %v1412_v42  ;;  %v815_v28 = vor.u32 %v814_v2, %v813_v15  ;;  %v5237_v31 = vand.u32 31, %v1212_v12  ;;  %v445_v42 = vpop.permute.xlu1 %444  ;;  %v914_v53 = vshll.u32 %v8339_v60, %v5188_v49 }
  0xc2   : > { %8470 = vst [vmem:[#allocation10_spill] sm:$0xff] %v5232_v20  ;;  %8471 = vst [vmem:[#allocation11_spill] sm:$0xff] %v5234_v26  ;;  %v915_v44 = vshrl.u32 %v8359_v62, %v5216_v10  ;;  %v917_v54 = vshll.u32 %v8359_v62, %v5188_v49  ;;  %v918_v25 = vshrl.u32 %v8335_v8, %v5216_v10  ;;  %v5252_v2 = vsub.s32 32, %v5224_v47 }
  0xc3   : > { %8472 = vst [vmem:[#allocation12_spill] sm:$0xff] %v5237_v31  ;;  %v1418_v38 = vadd.s32 1, %v4409_v3  ;;  %v1019_v56 = vshrl.u32 %v8359_v62, %v5222_v16  ;;  %v1022_v58 = vshrl.u32 %v8335_v8, %v5222_v16  ;;  %vm1315_vm11 = vcmp.gt.s32.totalorder %v1314_v17, 0 }
  0xc4   : > { %8473 = vst [vmem:[#allocation13_spill] sm:$0xff] %v5252_v2  ;;  %v5257_v3 = vsel %vm819_vm10, %v5230_v19, 920167782  ;;  %vm923_vm12 = vcmp.lt.s32.totalorder %v5232_v20, 4  ;;  %v1515_v9 = vand.u32 2139095040, %v5234_v26  ;;  %v471_v13 = vmul.f32 %v5068_v23, %v445_v42 }
  0xc5   : > { %v1018_v15 = vshll.u32 %v8339_v60, %v5195_v52  ;;  %v1021_v21 = vshll.u32 %v8359_v62, %v5195_v52  ;;  %v5267_v14 = vsub.s32 32, %v5237_v31  ;;  %vm1419_vm13 = vcmp.gt.s32.totalorder %v1418_v38, 0 }
  0xc6   : > { %v5271_v5 = vsel %vm819_vm10, %v815_v28, 1326507024  ;;  %v5273_v43 = vor.u32 %v915_v44, %v914_v53  ;;  %v919_v50 = vor.u32 %v918_v25, %v917_v54  ;;  %v1316_v8 = vsel %vm1315_vm11, %v1314_v17, 0 }
  0xc7   : > { %8474 = vst [vmem:[#allocation14_spill] sm:$0xff] %v5267_v14  ;;  %v5275_v26 = vshrl.u32 %v1004_v34, 5  ;;  %v5277_v42 = vor.u32 %v1019_v56, %v1018_v15  ;;  %v1023_v60 = vor.u32 %v1022_v58, %v1021_v21  ;;  %v1123_v7 = vshrl.u32 %v8359_v62, %v5252_v2 }
  0xc8   : > { %8475 = vst [vmem:[#allocation15_spill] sm:$0xff] %v5273_v43  ;;  %v8478_v39 = vmov 1326507024   ;;  %v1420_v52 = vsel %vm1419_vm13, %v1418_v38, 0  ;;  %v1516_v16 = vshrl.u32 %v1515_v9, 23  ;;  %v490_v28 = vadd.f32 %v5074_v27, %v471_v13 }
  0xc9   : > { %8476 = vst [vmem:[#allocation16_spill] sm:$0xff] %v5275_v26  ;;  %8477 = vst [vmem:[#allocation17_spill] sm:$0xff] %v5277_v42  ;;  %v1126_v35 = vshrl.u32 %v8478_v39, %v5252_v2  ;;  %v8479_v53 = vmov 2102212464   ;;  %v1227_v34 = vshrl.u32 %v8359_v62, %v5267_v14  ;;  %v1230_v21 = vshrl.u32 %v8478_v39, %v5267_v14  ;;  %v450_v14 = vpop.permute.xlu1 %449 }
  0xca   : > { %v1122_v44 = vshll.u32 %v8479_v53, %v5224_v47  ;;  %v5290_v17 = vand.u32 31, %v1316_v8  ;;  %v5292_v54 = vshrl.u32 %v1108_v57, 5  ;;  %v1125_v25 = vshll.u32 %v8359_v62, %v5224_v47 }
  0xcb   : > { %v5296_v38 = vshrl.u32 %v1212_v12, 5  ;;  %v560_v56 = vmul.f32 %v5080_v29, %v536_v4  ;;  %v1226_v9 = vshll.u32 %v8479_v53, %v5237_v31  ;;  %v1229_v13 = vshll.u32 %v8359_v62, %v5237_v31 }
  0xcc   : > { %8480 = vst [vmem:[#allocation18_spill] sm:$0xff] %v5290_v17  ;;  %8481 = vst [vmem:[#allocation19_spill] sm:$0xff] %v5292_v54  ;;  %v5299_v58 = vor.u32 %v1123_v7, %v1122_v44  ;;  %v5305_v15 = vand.u32 31, %v1420_v52  ;;  %v5310_v57 = vsel %vm923_vm12, %v5273_v43, 920167782  ;;  %v1127_v12 = vor.u32 %v1126_v35, %v1125_v25  ;;  %v540_v25 = vpop.permute.xlu0 %539 }
  0xcd   : > { %8482 = vst [vmem:[#allocation20_spill] sm:$0xff] %v5296_v38  ;;  %8484 = vst [vmem:[#allocation22_spill] sm:$0xff] %v5310_v57  ;;  %v4413_v47 = vadd.s32 4294967169, %v1516_v16  ;;  %v5312_v2 = vadd.f32 %v560_v56, %v490_v28  ;;  %vm1027_vm14 = vcmp.lt.s32.totalorder %v5275_v26, 4  ;;  %v5315_v4 = vor.u32 %v1227_v34, %v1226_v9 }
  0xce   : > { %8483 = vst [vmem:[#allocation21_spill] sm:$0xff] %v5299_v58  ;;  %v1231_v7 = vor.u32 %v1230_v21, %v1229_v13  ;;  %v5318_v44 = vsub.s32 32, %v5290_v17  ;;  %v5322_v62 = vsel %vm923_vm12, %v919_v50, 1326507024  ;;  %v5327_v31 = vsel %vm1027_vm14, %v5277_v42, 920167782 }
  0xcf   : > { %8485 = vst [vmem:[#allocation23_spill] sm:$0xff] %v5312_v2  ;;  %8486 = vst [vmem:[#allocation24_spill] sm:$0xff] %v5315_v4  ;;  %vm1131_vm15 = vcmp.lt.s32.totalorder %v5292_v54, 4  ;;  %v472_v35 = vmul.f32 %v5068_v23, %v450_v14  ;;  %v5333_v16 = vsel %vm1027_vm14, %v1023_v60, 1326507024  ;;  %vm1235_vm1 = vcmp.lt.s32.totalorder %v5296_v38, 4 }
  0xd0   : > { %8487 = vst [vmem:[#allocation25_spill] sm:$0xff] %v5318_v44  ;;  %8488 = vst [vmem:[#allocation26_spill] sm:$0xff] %v5322_v62  ;;  %v5338_v28 = vsel %vm1131_vm15, %v5299_v58, 920167782  ;;  %v5342_v50 = vsub.s32 32, %v5305_v15  ;;  %v5348_v21 = vshrl.u32 %v1316_v8, 5  ;;  %v1330_v8 = vshll.u32 %v8479_v53, %v5290_v17 }
  0xd1   : > { %8489 = vst [vmem:[#allocation27_spill] sm:$0xff] %v5327_v31  ;;  %8490 = vst [vmem:[#allocation28_spill] sm:$0xff] %v5333_v16  ;;  %v5346_v34 = vsel %vm1131_vm15, %v1127_v12, 1326507024  ;;  %v1522_v14 = vadd.s32 1, %v4413_v47  ;;  %v1619_v60 = vand.u32 2139095040, %v5312_v2  ;;  %v1334_v2 = vshrl.u32 %v8478_v39, %v5318_v44 }
  0xd2   : > { %8491 = vst [vmem:[#allocation29_spill] sm:$0xff] %v5338_v28  ;;  %8492 = vst [vmem:[#allocation30_spill] sm:$0xff] %v5342_v50  ;;  %v5354_v56 = vsel %vm1235_vm1, %v5315_v4, 920167782  ;;  %v5358_v9 = vsel %vm1235_vm1, %v1231_v7, 1326507024  ;;  %v491_v4 = vadd.f32 %v5074_v27, %v472_v35  ;;  %v561_v28 = vmul.f32 %v5080_v29, %v540_v25 }
  0xd3   : > { %8493 = vst [vmem:[#allocation31_spill] sm:$0xff] %v5346_v34  ;;  %8494 = vst [vmem:[#allocation32_spill] sm:$0xff] %v5354_v56  ;;  %v8496_v13 = vmov 920167782   ;;  %v5362_v12 = vshrl.u32 %v1420_v52, 5  ;;  %vm1523_vm2 = vcmp.gt.s32.totalorder %v1522_v14, 0  ;;  %v1434_v6 = vshll.u32 %v8479_v53, %v5305_v15 }
  0xd4   : > { %8495 = vst [vmem:[#allocation33_spill] sm:$0xff] %v5358_v9  ;;  %v1331_v58 = vshrl.u32 %v8496_v13, %v5318_v44  ;;  %v1333_v47 = vshll.u32 %v8496_v13, %v5290_v17  ;;  %v1435_v7 = vshrl.u32 %v8496_v13, %v5342_v50  ;;  %v455_v9 = vpop.permute.xlu1 %454  ;;  %v8375_v56 = vmov 2475754826  }
  0xd5   : > { %v594_v52 = vshrl.u32 %v8375_v56, %v5141_v46  ;;  %v8389_v38 = vmov 2131351028   ;;  %v600_v17 = vshrl.u32 %v8479_v53, %v5141_v46  ;;  %v1438_v44 = vshrl.u32 %v8478_v39, %v5342_v50 }
  0xd6   : > { %v597_v34 = vshrl.u32 %v8389_v38, %v5141_v46  ;;  %v1620_v35 = vshrl.u32 %v1619_v60, 23  ;;  %v5382_v54 = vor.u32 %v1331_v58, %v1330_v8  ;;  %v8385_v31 = vmov 683565275   ;;  %v544_v58 = vpop.permute.xlu0 %543 }
  0xd7   : > { %v593_v56 = vshll.u32 %v8385_v31, %v5121_v30  ;;  %v8497_v42 = vmov 2475754826   ;;  %v599_v26 = vshll.u32 %v8389_v38, %v5121_v30  ;;  %v1437_v60 = vshll.u32 %v8496_v13, %v5305_v15 }
  0xd8   : > { %v596_v16 = vshll.u32 %v8497_v42, %v5121_v30  ;;  %v5394_v50 = vadd.f32 %v561_v28, %v491_v4  ;;  %v473_v25 = vmul.f32 %v5068_v23, %v455_v9  ;;  %v1524_v8 = vsel %vm1523_vm2, %v1522_v14, 0 }
  0xd9   : > { %v595_v43 = vor.u32 %v594_v52, %v593_v56  ;;  %v601_v62 = vor.u32 %v600_v17, %v599_v26  ;;  %v1335_v57 = vor.u32 %v1334_v2, %v1333_v47  ;;  %vm1339_vm3 = vcmp.lt.s32.totalorder %v5348_v21, 4 }
  0xda   : > { %8498 = vst [vmem:[#allocation34_spill] sm:$0xff] %v5394_v50  ;;  %v598_v31 = vor.u32 %v597_v34, %v596_v16  ;;  %v5398_v20 = vor.u32 %v1435_v7, %v1434_v6  ;;  %v4417_v30 = vadd.s32 4294967169, %v1620_v35  ;;  %v5403_v38 = vsel %vm1339_vm3, %v5382_v54, 920167782 }
  0xdb   : > { %v1439_v4 = vor.u32 %v1438_v44, %v1437_v60  ;;  %vm8402_vm4 = vcmp.lt.s32.totalorder %v5362_v12, 4  ;;  %v562_v23 = vmul.f32 %v5080_v29, %v544_v58  ;;  %v5407_v28 = vand.u32 31, %v1524_v8 }
  0xdc   : > { %v1723_v26 = vand.u32 2139095040, %v5394_v50  ;;  %v492_v2 = vadd.f32 %v5074_v27, %v473_v25  ;;  %vm608_vm5 = vcmp.lt.s32.totalorder %v5155_v1, 1  ;;  %v8499_v6 = vmov 683565275  }
  0xdd   : > { %v592_v17 = vshrl.u32 %v8499_v6, %v5141_v46  ;;  %vm610_vm6 = vcmp.lt.s32.totalorder %v5155_v1, 3  ;;  %v613_v44 = vsel %vm611_vm8, %v601_v62, 2102212464  ;;  %v616_v16 = vsel %vm608_vm5, %v595_v43, %v598_v31 }
  0xde   : > { %v5421_v29 = vsel %vm1339_vm3, %v1335_v57, 1326507024  ;;  %v5426_v27 = vsel %vm8402_vm4, %v5398_v20, 920167782  ;;  %v1626_v34 = vadd.s32 1, %v4417_v30  ;;  %v618_v46 = vsel %vm610_vm6, %v601_v62, %v5207_v61 }
  0xdf   : > { %v5433_v14 = vsel %vm8402_vm4, %v1439_v4, 1326507024  ;;  %vm609_vm8 = vcmp.lt.s32.totalorder %v5155_v1, 2  ;;  %v612_v57 = vsel %vm608_vm5, %v592_v17, %v595_v43  ;;  %v614_v56 = vsel %vm610_vm6, %v598_v31, %v613_v44 }
  0xe0   : > { %v5441_v9 = vsub.s32 32, %v5407_v28  ;;  %v1724_v47 = vshrl.u32 %v1723_v26, 23  ;;  %v5443_v7 = vadd.f32 %v562_v23, %v492_v2  ;;  %v619_v52 = vsel %vm609_vm8, %v616_v16, %v618_v46 }
  0xe1   : > { %v5445_v61 = vshrl.u32 %v1524_v8, 5  ;;  %v1538_v35 = vshll.u32 %v8479_v53, %v5407_v28  ;;  %v620_v60 = vsel %vm608_vm5, %v598_v31, %v601_v62  ;;  %v622_v43 = vsel %vm610_vm6, %v5183_v40, %v5228_v18 }
  0xe2   : > { %8500 = vst [vmem:[#allocation35_spill] sm:$0xff] %v5443_v7  ;;  %v5457_v58 = vshll.u32 %v8496_v13, %v5407_v28  ;;  %vm1627_vm9 = vcmp.gt.s32.totalorder %v1626_v34, 0  ;;  %v615_v25 = vsel %vm609_vm8, %v612_v57, %v614_v56  ;;  %v623_v30 = vsel %vm609_vm8, %v620_v60, %v622_v43 }
  0xe3   : > { %8501 = vst [vmem:[#allocation36_spill] sm:$0xff] %v5445_v61  ;;  %v5460_v8 = vmul.u32.u64.low %v5138_v45, %v623_v30  ;;  %v5461_v4 = vmul.u32.u64.high %v5138_v45, %v623_v30, %v5460_v8  ;;  %v5464_v23 = vmul.u32.u64.low %v5138_v45, %v619_v52  ;;  %v5465_v26 = vmul.u32.u64.high %v5138_v45, %v619_v52, %v5464_v23 }
  0xe4   : > { %v1539_v62 = vshrl.u32 %v8496_v13, %v5441_v9  ;;  %v5472_v1 = vshrl.u32 %v8478_v39, %v5441_v9  ;;  %v4421_v40 = vadd.s32 4294967169, %v1724_v47  ;;  %v1827_v18 = vand.u32 2139095040, %v5443_v7 }
  0xe5   : > { %v1628_v31 = vsel %vm1627_vm9, %v1626_v34, 0  ;;  %v697_v2 = vshll.u32 %v8499_v6, %v5117_v24  ;;  %v698_v17 = vshrl.u32 %v8497_v42, %v5134_v41  ;;  %v8502_v44 = vmov 2131351028  }
  0xe6   : > { %v701_v16 = vshrl.u32 %v8502_v44, %v5134_v41  ;;  %v631_v46 = vmul.u32 %v5138_v45, %v615_v25  ;;  %v700_v57 = vshll.u32 %v8497_v42, %v5117_v24  ;;  %v703_v56 = vshll.u32 %v8502_v44, %v5117_v24 }
  0xe7   : > { %v704_v34 = vshrl.u32 %v8479_v53, %v5134_v41  ;;  %vm633_vm11 = vc.u32 %v5461_v4, %v5464_v23  ;;  %v634_v47 = vadd.s32 1, %v5465_v26  ;;  %v696_v52 = vshrl.u32 %v8499_v6, %v5134_v41 }
  0xe8   : > { %v699_v60 = vor.u32 %v698_v17, %v697_v2  ;;  %v702_v43 = vor.u32 %v701_v16, %v700_v57  ;;  %vm712_vm13 = vcmp.lt.s32.totalorder %v5149_v59, 1  ;;  %vm714_vm2 = vcmp.lt.s32.totalorder %v5149_v59, 3 }
  0xe9   : > { %v705_v45 = vor.u32 %v704_v34, %v703_v56  ;;  %v635_v24 = vsel %vm633_vm11, %v634_v47, %v5465_v26  ;;  %vm713_vm5 = vcmp.lt.s32.totalorder %v5149_v59, 2  ;;  %v726_v30 = vsel %vm714_vm2, %v5177_v22, %v5199_v55 }
  0xea   : > { %v716_v25 = vsel %vm712_vm13, %v696_v52, %v699_v60  ;;  %v636_v8 = vadd.s32 %v635_v24, %v631_v46  ;;  %v720_v41 = vsel %vm712_vm13, %v699_v60, %v702_v43  ;;  %v8503_v26 = vor.u32 8388608, %v5126_v33 }
  0xeb   : > { %v717_v7 = vsel %vm715_vm7, %v705_v45, 2102212464  ;;  %v722_v2 = vsel %vm714_vm2, %v705_v45, %v5193_v51  ;;  %v724_v57 = vsel %vm712_vm13, %v702_v43, %v705_v45  ;;  %vm8401_vm6 = vcmp.lt.s32.totalorder %v5445_v61, 4 }
  0xec   : > { %v718_v17 = vsel %vm714_vm2, %v702_v43, %v717_v7  ;;  %v723_v16 = vsel %vm713_vm5, %v720_v41, %v722_v2  ;;  %v728_v56 = vshll.u32 %v8503_v26, 8  ;;  %v5507_v34 = vshrl.u32 %v1628_v31, 5 }
  0xed   : > { %v5509_v22 = vand.u32 31, %v1628_v31  ;;  %v637_v55 = vadd.s32 536870912, %v636_v8  ;;  %v727_v46 = vsel %vm713_vm5, %v724_v57, %v726_v30  ;;  %v5520_v60 = vadd.s32 1, %v4421_v40 }
  0xee   : > { %v5513_v47 = vmul.u32.u64.low %v728_v56, %v727_v46  ;;  %v5514_v51 = vmul.u32.u64.high %v728_v56, %v727_v46, %v5513_v47  ;;  %v5516_v7 = vmul.u32.u64.low %v728_v56, %v723_v16  ;;  %v5517_v52 = vmul.u32.u64.high %v728_v56, %v723_v16, %v5516_v7 }
  0xef   : > { %8504 = vst [vmem:[#allocation37_spill] sm:$0xff] %v5509_v22  ;;  %v1828_v33 = vshrl.u32 %v1827_v18, 23  ;;  %v638_v43 = vshrl.u32 %v637_v55, 30  ;;  %v719_v45 = vsel %vm713_vm5, %v716_v25, %v718_v17  ;;  %vm578_vm7 = vcmp.lt.s32.totalorder %v5088_v37, 0 }
  0xf0   : > { %v5525_v31 = vor.u32 %v1539_v62, %v1538_v35  ;;  %v1543_v24 = vor.u32 %v5472_v1, %v5457_v58  ;;  %v802_v30 = vshrl.u32 %v8497_v42, %v5180_v32  ;;  %v805_v41 = vshrl.u32 %v8502_v44, %v5180_v32 }
  0xf1   : > { %v639_v40 = vshll.u32 %v638_v43, 30  ;;  %v8506_v18 = vand.u32 2147483647, %v5095_v48  ;;  %v801_v59 = vshll.u32 %v8499_v6, %v5165_v11  ;;  %v804_v35 = vshll.u32 %v8497_v42, %v5165_v11 }
  0xf2   : > { %8505 = vst [vmem:[#allocation38_spill] sm:$0xff] %v5525_v31  ;;  %v735_v62 = vmul.u32 %v728_v56, %v719_v45  ;;  %vm737_vm8 = vc.u32 %v5514_v51, %v5516_v7  ;;  %v738_v58 = vadd.s32 1, %v5517_v52  ;;  %v807_v1 = vshll.u32 %v8502_v44, %v5165_v11 }
  0xf3   : > { %v791_v2 = vand.u32 8388607, %v8506_v18  ;;  %v8507_v25 = vand.u32 2147483647, %v5088_v37  ;;  %v5550_v16 = vsub.s32 %v636_v8, %v639_v40  ;;  %v803_v57 = vor.u32 %v802_v30, %v801_v59 }
  0xf4   : > { %v806_v26 = vor.u32 %v805_v41, %v804_v35  ;;  %v808_v56 = vshrl.u32 %v8479_v53, %v5180_v32  ;;  %v5555_v55 = vsub.s32 32, %v5509_v22  ;;  %v5559_v46 = vshll.u32 %v8479_v53, %v5509_v22 }
  0xf5   : > { %vm5546_vm9 = vcmp.le.f32.partialorder %v8507_v25, 0.7853982  ;;  %v662_v11 = vsub.s32 4, %v638_v43  ;;  %v739_v47 = vsel %vm737_vm8, %v738_v58, %v5517_v52  ;;  %v642_v45 = vsub.s32 0, %v5550_v16 }
  0xf6   : > { %8510 = vst [vmem:[#allocation39_spill] sm:$0xff] %v5555_v55  ;;  %v740_v18 = vadd.s32 %v739_v47, %v735_v62  ;;  %v792_v8 = vor.u32 8388608, %v791_v2  ;;  %v809_v40 = vor.u32 %v808_v56, %v807_v1  ;;  %v5566_v30 = vsel %vm8401_vm6, %v5525_v31, 920167782 }
  0xf7   : > { %8511 = vst [vmem:[#allocation40_spill] sm:$0xff] %v5566_v30  ;;  %v5570_v41 = vsel %vm8401_vm6, %v1543_v24, 1326507024  ;;  %v5574_v59 = vshll.u32 %v8496_v13, %v5509_v22  ;;  %vm816_vm11 = vcmp.lt.s32.totalorder %v5209_v0, 1  ;;  %v4378_v52 = vmin.u32 %v642_v45, %v5550_v16 }
  0xf8   : > { %8512 = vst [vmem:[#allocation41_spill] sm:$0xff] %v5570_v41  ;;  %v741_v35 = vadd.s32 536870912, %v740_v18  ;;  %vm818_vm13 = vcmp.lt.s32.totalorder %v5209_v0, 3  ;;  %v824_v2 = vsel %vm816_vm11, %v803_v57, %v806_v26  ;;  %vm1731_vm2 = vcmp.gt.s32.totalorder %v5520_v60, 0 }
  0xf9   : > { %v826_v24 = vsel %vm818_vm13, %v809_v40, %v5257_v3  ;;  %v828_v62 = vsel %vm816_vm11, %v806_v26, %v809_v40  ;;  %v830_v58 = vsel %vm818_vm13, %v5230_v19, %v5271_v5  ;;  %v644_v1 = vclz %v4378_v52 }
  0xfa   : > { %v663_v25 = vsel %vm578_vm7, %v662_v11, %v638_v43  ;;  %vm817_vm5 = vcmp.lt.s32.totalorder %v5209_v0, 2  ;;  %v832_v56 = vshll.u32 %v792_v8, 8  ;;  %v742_v47 = vshrl.u32 %v741_v35, 30 }
  0xfb   : > { %v821_v45 = vsel %vm819_vm10, %v809_v40, 2102212464  ;;  %v827_v3 = vsel %vm817_vm5, %v824_v2, %v826_v24  ;;  %v831_v50 = vsel %vm817_vm5, %v828_v62, %v830_v58  ;;  %v4379_v22 = vadd.s32 4294967294, %v644_v1 }
  0xfc   : > { %v800_v5 = vshrl.u32 %v8499_v6, %v5180_v32  ;;  %v5602_v19 = vmul.u32.u64.low %v832_v56, %v831_v50  ;;  %v5603_v52 = vmul.u32.u64.high %v832_v56, %v831_v50, %v5602_v19  ;;  %v665_v43 = vsel %vm5546_vm9, 0, %v663_v25 }
  0xfd   : > { %v743_v11 = vshll.u32 %v742_v47, 30  ;;  %v5607_v8 = vmul.u32.u64.low %v832_v56, %v827_v3  ;;  %v5608_v35 = vmul.u32.u64.high %v832_v56, %v827_v3, %v5607_v8  ;;  %v4425_v40 = vadd.s32 4294967169, %v1828_v33 }
  0xfe   : > { %vm4380_vm10 = vcmp.lt.s32.totalorder %v4379_v22, 0  ;;  %v820_v2 = vsel %vm816_vm11, %v800_v5, %v803_v57  ;;  %v822_v24 = vsel %vm818_vm13, %v806_v26, %v821_v45  ;;  %v5617_v32 = vshrl.u32 %v8496_v13, %v5555_v55 }
  0xff   : > { %v1732_v50 = vsel %vm1731_vm2, %v5520_v60, 0  ;;  %v647_v62 = vsel %vm4380_vm10, 0, %v4379_v22  ;;  %v5622_v58 = vsub.s32 %v740_v18, %v743_v11  ;;  %vm682_vm8 = vcmp.lt.s32.totalorder %v5086_v36, 0 }
 0x100   : > { %v632_v33 = vadd.s32 %v5464_v23, %v5461_v4  ;;  %v648_v57 = vsub.s32 32, %v647_v62  ;;  %v652_v1 = vsub.s32 4294967266, %v647_v62  ;;  %v669_v25 = vadd.s32 3, %v665_v43 }
 0x101   : > { %v746_v26 = vsub.s32 0, %v5622_v58  ;;  %v823_v45 = vsel %vm817_vm5, %v820_v2, %v822_v24  ;;  %vm841_vm11 = vc.u32 %v5603_v52, %v5607_v8  ;;  %v649_v60 = vshll.u32 %v5550_v16, %v647_v62 }
 0x102   : > { %v650_v18 = vshrl.u32 %v632_v33, %v648_v57  ;;  %v653_v3 = vadd.s32 127, %v652_v1  ;;  %v842_v5 = vadd.s32 1, %v5608_v35  ;;  %v5637_v4 = vshrl.u32 %v8478_v39, %v5555_v55 }
 0x103   : > { %v5639_v23 = vshrl.u32 %v1732_v50, 5  ;;  %v5641_v19 = vand.u32 31, %v1732_v50  ;;  %v4382_v0 = vmin.u32 %v746_v26, %v5622_v58  ;;  %v839_v2 = vmul.u32 %v832_v56, %v823_v45 }
 0x104   : > { %v651_v43 = vor.u32 %v650_v18, %v649_v60  ;;  %v654_v11 = vshll.u32 %v653_v3, 23  ;;  %v843_v24 = vsel %vm841_vm11, %v842_v5, %v5608_v35  ;;  %v5645_v16 = vadd.s32 1, %v4425_v40 }
 0x105   : > { %8513 = vst [vmem:[#allocation42_spill] sm:$0xff] %v5639_v23  ;;  %8514 = vst [vmem:[#allocation43_spill] sm:$0xff] %v5641_v19  ;;  %v736_v62 = vadd.s32 %v5516_v7, %v5514_v51  ;;  %v748_v33 = vclz %v4382_v0  ;;  %v766_v57 = vsub.s32 4, %v742_v47  ;;  %v5649_v22 = vand.u32 3, %v669_v25 }
 0x106   : > { %v655_v1 = vor.u32 4788187, %v654_v11  ;;  %v844_v23 = vadd.s32 %v843_v24, %v839_v2  ;;  %v8515_v50 = vand.u32 2147483647, %v5102_v63  ;;  %v658_v26 = vcvt.s32.f32 %v651_v43 }
 0x107   : > { %v4383_v60 = vadd.s32 4294967294, %v748_v33  ;;  %v906_v56 = vshrl.u32 %v8497_v42, %v5216_v10  ;;  %v909_v35 = vshrl.u32 %v8502_v44, %v5216_v10  ;;  %v911_v51 = vshll.u32 %v8502_v44, %v5188_v49 }
 0x108   : > { %v895_v55 = vand.u32 8388607, %v8515_v50  ;;  %v656_v40 = vand.u32 2147483647, %v655_v1  ;;  %v845_v45 = vadd.s32 536870912, %v844_v23  ;;  %v912_v7 = vshrl.u32 %v8479_v53, %v5216_v10 }
 0x109   : > { %vm4384_vm13 = vcmp.lt.s32.totalorder %v4383_v60, 0  ;;  %v5663_v25 = vsel %vm682_vm8, %v766_v57, %v742_v47  ;;  %v905_v18 = vshll.u32 %v8499_v6, %v5188_v49  ;;  %v908_v3 = vshll.u32 %v8497_v42, %v5188_v49 }
 0x10a   : > { %v659_v5 = vmul.f32 %v658_v26, %v656_v40  ;;  %v751_v0 = vsel %vm4384_vm13, 0, %v4383_v60  ;;  %v846_v43 = vshrl.u32 %v845_v45, 30  ;;  %v913_v11 = vor.u32 %v912_v7, %v911_v51  ;;  %v8519_v45 = vld [vmem:[#allocation10_spill] sm:$0xff] }
 0x10b   : > { %v8516_v2 = vand.u32 2147483647, %v5086_v36  ;;  %v752_v33 = vsub.s32 32, %v751_v0  ;;  %v756_v1 = vsub.s32 4294967266, %v751_v0  ;;  %vm786_vm5 = vcmp.lt.s32.totalorder %v5095_v48, 0 }
 0x10c   : > { %v907_v47 = vor.u32 %v906_v56, %v905_v18  ;;  %v910_v57 = vor.u32 %v909_v35, %v908_v3  ;;  %v660_v50 = vxor.u32 2147483648, %v659_v5  ;;  %v847_v31 = vshll.u32 %v846_v43, 30  ;;  %v8520_v3 = vld [vmem:[#allocation22_spill] sm:$0xff] }
 0x10d   : > { %vm5671_vm2 = vcmp.le.f32.partialorder %v8516_v2, 0.7853982  ;;  %v896_v41 = vor.u32 8388608, %v895_v55  ;;  %v904_v49 = vshrl.u32 %v8499_v6, %v5216_v10  ;;  %v753_v26 = vshll.u32 %v5622_v58, %v751_v0 }
 0x10e   : > { %v754_v60 = vshrl.u32 %v736_v62, %v752_v33  ;;  %v757_v40 = vadd.s32 127, %v756_v1  ;;  %vm920_vm10 = vcmp.lt.s32.totalorder %v8519_v45, 1  ;;  %v661_v51 = vsel %vm578_vm7, %v660_v50, %v659_v5 }
 0x10f   : > { %v5682_v7 = vsub.s32 %v844_v23, %v847_v31  ;;  %vm921_vm11 = vcmp.lt.s32.totalorder %v8519_v45, 2  ;;  %v925_v56 = vsel %vm923_vm12, %v913_v11, 2102212464  ;;  %v664_v10 = vsel %vm5546_vm9, %v5088_v37, %v661_v51 }
 0x110   : > { %v755_v55 = vor.u32 %v754_v60, %v753_v26  ;;  %v758_v58 = vshll.u32 %v757_v40, 23  ;;  %v928_v62 = vsel %vm920_vm10, %v907_v47, %v910_v57  ;;  %4734 = vcosq.f32 %v664_v10  ;;  %v8521_v26 = vld [vmem:[#allocation26_spill] sm:$0xff]  ;;  %v8522_v60 = vld [vmem:[#allocation15_spill] sm:$0xff] }
 0x111   : > { %v850_v35 = vsub.s32 0, %v5682_v7  ;;  %v870_v18 = vsub.s32 4, %v846_v43  ;;  %vm922_vm7 = vcmp.lt.s32.totalorder %v8519_v45, 3  ;;  %4736 = vsinq.f32 %v664_v10 }
 0x112   : > { %v759_v31 = vor.u32 4788187, %v758_v58  ;;  %v924_v23 = vsel %vm920_vm10, %v904_v49, %v907_v47  ;;  %v930_v5 = vsel %vm922_vm7, %v913_v11, %v8520_v3  ;;  %v926_v0 = vsel %vm922_vm7, %v910_v57, %v925_v56 }
 0x113   : > { %v4386_v17 = vmin.u32 %v850_v35, %v5682_v7  ;;  %v931_v2 = vsel %vm921_vm11, %v928_v62, %v930_v5  ;;  %v932_v33 = vsel %vm920_vm10, %v910_v57, %v913_v11  ;;  %v762_v50 = vcvt.s32.f32 %v755_v55 }
 0x114   : > { %v760_v1 = vand.u32 2147483647, %v759_v31  ;;  %v934_v40 = vsel %vm922_vm7, %v8522_v60, %v8521_v26  ;;  %v936_v51 = vshll.u32 %v896_v41, 8  ;;  %v769_v47 = vsel %vm5671_vm2, 0, %v5663_v25  ;;  %v8526_v26 = vld [vmem:[#allocation2_spill] sm:$0xff] }
 0x115   : > { %v8523_v49 = vand.u32 2147483647, %v5095_v48  ;;  %v852_v10 = vclz %v4386_v17  ;;  %v871_v11 = vsel %vm786_vm5, %v870_v18, %v846_v43  ;;  %v935_v55 = vsel %vm921_vm11, %v932_v33, %v934_v40 }
 0x116   : > { %v763_v57 = vmul.f32 %v762_v50, %v760_v1  ;;  %v5717_v58 = vmul.u32.u64.low %v936_v51, %v931_v2  ;;  %v5718_v41 = vmul.u32.u64.high %v936_v51, %v931_v2, %v5717_v58  ;;  %vm1939_vm9 = vcmask 261120  }
 0x117   : > { %vm5709_vm12 = vcmp.le.f32.partialorder %v8523_v49, 0.7853982  ;;  %v4387_v25 = vadd.s32 4294967294, %v852_v10  ;;  %v927_v62 = vsel %vm921_vm11, %v924_v23, %v926_v0  ;;  %vm668_vm13 = vweird.f32 %v5088_v37 }
 0x118   : > { %v5723_v35 = vmul.u32.u64.low %v936_v51, %v935_v55  ;;  %v5724_v31 = vmul.u32.u64.high %v936_v51, %v935_v55, %v5723_v35  ;;  %vm671_vm10 = vcmp.lt.s32.totalorder %v5649_v22, 2  ;;  %vm672_vm7 = vcmp.eq.s32.totalorder %v5649_v22, 0 }
 0x119   : > { %vm675_vm6 = vcmp.eq.s32.totalorder %v5649_v22, 2  ;;  %v764_v43 = vxor.u32 2147483648, %v763_v57  ;;  %v773_v18 = vadd.s32 3, %v769_v47  ;;  %v840_v3 = vadd.s32 %v5607_v8, %v5603_v52 }
 0x11a   : > { %vm4388_vm4 = vcmp.lt.s32.totalorder %v4387_v25, 0  ;;  %v873_v45 = vsel %vm5709_vm12, 0, %v871_v11  ;;  %v943_v17 = vmul.u32 %v936_v51, %v927_v62  ;;  %v946_v0 = vadd.s32 1, %v5718_v41  ;;  %v4735_v2 = vpop.eup %4734 }
 0x11b   : > { %v765_v23 = vsel %vm682_vm8, %v764_v43, %v763_v57  ;;  %v855_v5 = vsel %vm4388_vm4, 0, %v4387_v25  ;;  %v8404_v52 = vand.u32 2147483647, %v8526_v26  ;;  %v4737_v8 = vpop.eup %4736  ;;  %v676_v60 = vxor.u32 2147483648, %v4735_v2 }
 0x11c   : > { %v768_v33 = vsel %vm5671_vm2, %v5086_v36, %v765_v23  ;;  %v856_v1 = vsub.s32 32, %v855_v5  ;;  %v860_v50 = vsub.s32 4294967266, %v855_v5  ;;  %v857_v40 = vshll.u32 %v5682_v7, %v855_v5 }
 0x11d   : > { %4738 = vcosq.f32 %v768_v33  ;;  %vm945_vm4 = vc.u32 %v5724_v31, %v5717_v58  ;;  %v673_v51 = vxor.u32 2147483648, %v4737_v8  ;;  %v677_v24 = vsel %vm675_vm6, %v676_v60, %v4737_v8 }
 0x11e   : > { %4740 = vsinq.f32 %v768_v33  ;;  %v858_v47 = vshrl.u32 %v840_v3, %v856_v1  ;;  %v861_v49 = vadd.s32 127, %v860_v50  ;;  %v774_v10 = vand.u32 3, %v773_v18  ;;  %v8527_v3 = vld [vmem:[#allocation8_spill] sm:$0xff] }
 0x11f   : > { %v877_v11 = vadd.s32 3, %v873_v45  ;;  %v947_v57 = vsel %vm945_vm4, %v946_v0, %v5718_v41  ;;  %v674_v55 = vsel %vm672_vm7, %v4735_v2, %v673_v51  ;;  %v999_v43 = vand.u32 8388607, %v8404_v52  ;;  %v8528_v0 = vld [vmem:[#allocation7_spill] sm:$0xff] }
 0x120   : > { %v859_v25 = vor.u32 %v858_v47, %v857_v40  ;;  %v862_v62 = vshll.u32 %v861_v49, 23  ;;  %v948_v7 = vadd.s32 %v947_v57, %v943_v17  ;;  %v678_v35 = vsel %vm671_vm10, %v674_v55, %v677_v24  ;;  %v8530_v55 = vld [vmem:[#allocation16_spill] sm:$0xff] }
 0x121   : > { %v1010_v23 = vshrl.u32 %v8497_v42, %v8527_v3  ;;  %v1013_v18 = vshrl.u32 %v8502_v44, %v8527_v3  ;;  %v679_v41 = vsel %vm668_vm13, nan, %v678_v35  ;;  %v1012_v17 = vshll.u32 %v8497_v42, %v8528_v0 }
 0x122   : > { %v863_v45 = vor.u32 4788187, %v862_v62  ;;  %v949_v5 = vadd.s32 536870912, %v948_v7  ;;  %4538 = vmatmul.mubr.msk.f32.vlgmr.msra.gmra.mrb[0].mxu0 %vm1939_vm9, %v679_v41  ;;  %vm775_vm6 = vcmp.lt.s32.totalorder %v774_v10, 2  ;;  %vm776_vm8 = vcmp.eq.s32.totalorder %v774_v10, 0 }
 0x123   : > { %v1009_v22 = vshll.u32 %v8499_v6, %v8528_v0  ;;  %v1015_v2 = vshll.u32 %v8502_v44, %v8528_v0  ;;  %v1016_v33 = vshrl.u32 %v8479_v53, %v8527_v3  ;;  %v8529_v37 = vmov 0.0  }
 0x124   : > { %4540 = vmatprep.mubr.msk.f32.mxu0 %vm4954_vm0, %v8529_v37  ;;  %vm772_vm2 = vweird.f32 %v5086_v36  ;;  %v864_v1 = vand.u32 2147483647, %v863_v45  ;;  %v866_v50 = vcvt.s32.f32 %v859_v25  ;;  %v950_v8 = vshrl.u32 %v949_v5, 30  ;;  %v8531_v25 = vld [vmem:[#allocation28_spill] sm:$0xff] }
 0x125   : > { %v1014_v60 = vor.u32 %v1013_v18, %v1012_v17  ;;  %vm779_vm11 = vcmp.eq.s32.totalorder %v774_v10, 2  ;;  %vm890_vm13 = vcmp.lt.s32.totalorder %v5102_v63, 0  ;;  %v1000_v40 = vor.u32 8388608, %v999_v43  ;;  %v8532_v18 = vld [vmem:[#allocation17_spill] sm:$0xff]  ;;  %v8533_v17 = vld [vmem:[#allocation27_spill] sm:$0xff] }
 0x126   : > { %v1011_v51 = vor.u32 %v1010_v23, %v1009_v22  ;;  %v1017_v47 = vor.u32 %v1016_v33, %v1015_v2  ;;  %v867_v49 = vmul.f32 %v866_v50, %v864_v1  ;;  %v5772_v24 = vand.u32 3, %v877_v11 }
 0x127   : > { %v951_v57 = vshll.u32 %v950_v8, 30  ;;  %vm1026_vm10 = vcmp.lt.s32.totalorder %v8530_v55, 3  ;;  %v4739_v62 = vpop.eup %4738  ;;  %v1008_v35 = vshrl.u32 %v8499_v6, %v8527_v3  ;;  %vm1024_vm7 = vcmp.lt.s32.totalorder %v8530_v55, 1 }
 0x128   : > { %vm1025_vm4 = vcmp.lt.s32.totalorder %v8530_v55, 2  ;;  %v1038_v43 = vsel %vm1026_vm10, %v8532_v18, %v8531_v25  ;;  %v4741_v23 = vpop.eup %4740  ;;  %v780_v41 = vxor.u32 2147483648, %v4739_v62  ;;  %v868_v11 = vxor.u32 2147483648, %v867_v49 }
 0x129   : > { %v5783_v45 = vsub.s32 %v948_v7, %v951_v57  ;;  %v1036_v5 = vsel %vm1024_vm7, %v1014_v60, %v1017_v47  ;;  %v777_v0 = vxor.u32 2147483648, %v4741_v23  ;;  %v1032_v3 = vsel %vm1024_vm7, %v1011_v51, %v1014_v60 }
 0x12a   : > { %v1034_v22 = vsel %vm1026_vm10, %v1017_v47, %v8533_v17  ;;  %v1040_v2 = vshll.u32 %v1000_v40, 8  ;;  %v781_v33 = vsel %vm779_vm11, %v780_v41, %v4741_v23  ;;  %v869_v1 = vsel %vm786_vm5, %v868_v11, %v867_v49  ;;  %v8535_v17 = vld [vmem:[#allocation3_spill] sm:$0xff] }
 0x12b   : > { %v954_v7 = vsub.s32 0, %v5783_v45  ;;  %v974_v50 = vsub.s32 4, %v950_v8  ;;  %v778_v57 = vsel %vm776_vm8, %v4739_v62, %v777_v0  ;;  %v872_v25 = vsel %vm5709_vm12, %v5095_v48, %v869_v1  ;;  %v8539_v1 = vld [vmem:[#allocation13_spill] sm:$0xff] }
 0x12c   : > { %v1029_v18 = vsel %vm1027_vm14, %v1017_v47, 2102212464  ;;  %v1039_v40 = vsel %vm1025_vm4, %v1036_v5, %v1038_v43  ;;  %v782_v23 = vsel %vm775_vm6, %v778_v57, %v781_v33  ;;  %4742 = vcosq.f32 %v872_v25 }
 0x12d   : > { %v4390_v49 = vmin.u32 %v954_v7, %v5783_v45  ;;  %v1035_v41 = vsel %vm1025_vm4, %v1032_v3, %v1034_v22  ;;  %v783_v62 = vsel %vm772_vm2, nan, %v782_v23  ;;  %4744 = vsinq.f32 %v872_v25 }
 0x12e   : > { %v5810_v56 = vmul.u32.u64.low %v1040_v2, %v1039_v40  ;;  %v5811_v11 = vmul.u32.u64.high %v1040_v2, %v1039_v40, %v5810_v56  ;;  %4541 = vmatmul.mubr.msk.f32.gmra.mrb[2].mxu0 %vm1939_vm9, %v783_v62  ;;  %v5816_v10 = vsel %vm890_vm13, %v974_v50, %v950_v8  ;;  %v1028_v43 = vsel %vm1024_vm7, %v1008_v35, %v1011_v51  ;;  %v8540_v50 = vld [vmem:[#allocation9_spill] sm:$0xff] }
 0x12f   : > { %v956_v47 = vclz %v4390_v49  ;;  %v1030_v5 = vsel %vm1026_vm10, %v1014_v60, %v1029_v18  ;;  %v5824_v36 = vor.u32 %v5617_v32, %v5559_v46  ;;  %4543 = vmatprep.mubr.msk.f32.mxu0 %vm4954_vm0, %v8529_v37  ;;  %v8403_v8 = vand.u32 2147483647, %v8535_v17 }
 0x130   : > { %v5828_v0 = vmul.u32.u64.low %v1040_v2, %v1035_v41  ;;  %v5829_v3 = vmul.u32.u64.high %v1040_v2, %v1035_v41, %v5828_v0  ;;  %vm883_vm14 = vcmp.eq.s32.totalorder %v5772_v24, 2  ;;  %v8536_v60 = vand.u32 2147483647, %v5102_v63 }
 0x131   : > { %8534 = vst [vmem:[#allocation10_spill] sm:$0xff] %v5824_v36  ;;  %v4391_v46 = vadd.s32 4294967294, %v956_v47  ;;  %vm880_vm12 = vcmp.eq.s32.totalorder %v5772_v24, 0  ;;  %v944_v32 = vadd.s32 %v5717_v58, %v5724_v31  ;;  %v1031_v33 = vsel %vm1025_vm4, %v1028_v43, %v1030_v5 }
 0x132   : > { %vm5838_vm5 = vcmp.le.f32.partialorder %v8536_v60, 0.7853982  ;;  %v1114_v7 = vshrl.u32 %v8497_v42, %v8539_v1  ;;  %vm879_vm6 = vcmp.lt.s32.totalorder %v5772_v24, 2  ;;  %vm1049_vm2 = vc.u32 %v5811_v11, %v5828_v0 }
 0x133   : > { %v977_v35 = vsel %vm5838_vm5, 0, %v5816_v10  ;;  %vm4392_vm8 = vcmp.lt.s32.totalorder %v4391_v46, 0  ;;  %v1113_v57 = vshll.u32 %v8499_v6, %v8540_v50  ;;  %v1117_v58 = vshrl.u32 %v8502_v44, %v8539_v1 }
 0x134   : > { %vm876_vm11 = vweird.f32 %v5095_v48  ;;  %v959_v31 = vsel %vm4392_vm8, 0, %v4391_v46  ;;  %v1050_v55 = vadd.s32 1, %v5829_v3  ;;  %v1103_v25 = vand.u32 8388607, %v8403_v8 }
 0x135   : > { %v1116_v18 = vshll.u32 %v8497_v42, %v8540_v50  ;;  %v960_v40 = vsub.s32 32, %v959_v31  ;;  %v964_v23 = vsub.s32 4294967266, %v959_v31  ;;  %v1047_v49 = vmul.u32 %v1040_v2, %v1031_v33  ;;  %v8541_v33 = vld [vmem:[#allocation19_spill] sm:$0xff] }
 0x136   : > { %v1115_v41 = vor.u32 %v1114_v7, %v1113_v57  ;;  %v1051_v62 = vsel %vm1049_vm2, %v1050_v55, %v5829_v3  ;;  %v1119_v47 = vshll.u32 %v8502_v44, %v8540_v50  ;;  %v1120_v10 = vshrl.u32 %v8479_v53, %v8539_v1  ;;  %v4743_v43 = vpop.eup %4742 }
 0x137   : > { %v1118_v56 = vor.u32 %v1117_v58, %v1116_v18  ;;  %v961_v5 = vshll.u32 %v5783_v45, %v959_v31  ;;  %v962_v60 = vshrl.u32 %v944_v32, %v960_v40  ;;  %v965_v46 = vadd.s32 127, %v964_v23  ;;  %v4745_v22 = vpop.eup %4744  ;;  %v8543_v23 = vld [vmem:[#allocation31_spill] sm:$0xff] }
 0x138   : > { %v1052_v8 = vadd.s32 %v1051_v62, %v1047_v49  ;;  %v884_v52 = vxor.u32 2147483648, %v4743_v43  ;;  %v1104_v30 = vor.u32 8388608, %v1103_v25  ;;  %v1121_v2 = vor.u32 %v1120_v10, %v1119_v47  ;;  %v8544_v49 = vld [vmem:[#allocation21_spill] sm:$0xff] }
 0x139   : > { %vm1128_vm10 = vcmp.lt.s32.totalorder %v8541_v33, 1  ;;  %v881_v3 = vxor.u32 2147483648, %v4745_v22  ;;  %v963_v7 = vor.u32 %v962_v60, %v961_v5  ;;  %v966_v57 = vshll.u32 %v965_v46, 23 }
 0x13a   : > { %v1053_v58 = vadd.s32 536870912, %v1052_v8  ;;  %vm1651_vm7 = vcmp.lt.s32.totalorder %v5507_v34, 4  ;;  %v885_v50 = vsel %vm883_vm14, %v884_v52, %v4745_v22  ;;  %vm1129_vm4 = vcmp.lt.s32.totalorder %v8541_v33, 2  ;;  %v8542_v22 = vld [vmem:[#allocation29_spill] sm:$0xff] }
 0x13b   : > { %vm1130_vm8 = vcmp.lt.s32.totalorder %v8541_v33, 3  ;;  %v1136_v45 = vsel %vm1128_vm10, %v1115_v41, %v1118_v56  ;;  %v882_v32 = vsel %vm880_vm12, %v4743_v43, %v881_v3  ;;  %v967_v31 = vor.u32 4788187, %v966_v57 }
 0x13c   : > { %v1054_v55 = vshrl.u32 %v1053_v58, 30  ;;  %v1140_v25 = vsel %vm1128_vm10, %v1118_v56, %v1121_v2  ;;  %v886_v18 = vsel %vm879_vm6, %v882_v32, %v885_v50  ;;  %v1133_v52 = vsel %vm1131_vm15, %v1121_v2, 2102212464 }
 0x13d   : > { %v1138_v40 = vsel %vm1130_vm8, %v1121_v2, %v8542_v22  ;;  %v1142_v62 = vsel %vm1130_vm8, %v8544_v49, %v8543_v23  ;;  %v887_v47 = vsel %vm876_vm11, nan, %v886_v18  ;;  %v968_v10 = vand.u32 2147483647, %v967_v31 }
 0x13e   : > { %v970_v43 = vcvt.s32.f32 %v963_v7  ;;  %v1055_v5 = vshll.u32 %v1054_v55, 30  ;;  %v5897_v24 = vsub.s32 32, %v5641_v19  ;;  %4544 = vmatmul.mubr.msk.f32.gmra.mrb[4].mxu0 %vm1939_vm9, %v887_v47  ;;  %v1112_v60 = vshrl.u32 %v8499_v6, %v8539_v1 }
 0x13f   : > { %v1143_v46 = vsel %vm1129_vm4, %v1140_v25, %v1142_v62  ;;  %v1144_v2 = vshll.u32 %v1104_v30, 8  ;;  %4546 = vmatprep.mubr.msk.f32.mxu0 %vm4954_vm0, %v8529_v37  ;;  %v981_v3 = vadd.s32 3, %v977_v35  ;;  %v1139_v7 = vsel %vm1129_vm4, %v1136_v45, %v1138_v40 }
 0x140   : > { %v971_v48 = vmul.f32 %v970_v43, %v968_v10  ;;  %v5906_v57 = vsub.s32 %v1052_v8, %v1055_v5  ;;  %v1132_v58 = vsel %vm1128_vm10, %v1112_v60, %v1115_v41  ;;  %v1134_v1 = vsel %vm1130_vm8, %v1118_v56, %v1133_v52  ;;  %v8545_v56 = vld [vmem:[#allocation4_spill] sm:$0xff]  ;;  %v8561_v10 = vld [vmem:[#allocation25_spill] sm:$0xff] }
 0x141   : > { %v5914_v50 = vmul.u32.u64.low %v1144_v2, %v1143_v46  ;;  %v5915_v32 = vmul.u32.u64.high %v1144_v2, %v1143_v46, %v5914_v50  ;;  %v5919_v30 = vshll.u32 %v8479_v53, %v5641_v19  ;;  %v1078_v35 = vsub.s32 4, %v1054_v55 }
 0x142   : > { %v972_v31 = vxor.u32 2147483648, %v971_v48  ;;  %v1058_v8 = vsub.s32 0, %v5906_v57  ;;  %v5924_v45 = vshll.u32 %v8496_v13, %v5641_v19  ;;  %v8405_v18 = vand.u32 2147483647, %v8545_v56 }
 0x143   : > { %v5926_v25 = vmul.u32.u64.low %v1144_v2, %v1139_v7  ;;  %v5927_v41 = vmul.u32.u64.high %v1144_v2, %v1139_v7, %v5926_v25  ;;  %v5934_v52 = vsel %vm1651_vm7, %v5824_v36, 920167782  ;;  %v1135_v23 = vsel %vm1129_vm4, %v1132_v58, %v1134_v1  ;;  %v8551_v7 = vld [vmem:[#allocation14_spill] sm:$0xff] }
 0x144   : > { %8546 = vst [vmem:[#allocation22_spill] sm:$0xff] %v5934_v52  ;;  %v973_v22 = vsel %vm890_vm13, %v972_v31, %v971_v48  ;;  %v4394_v40 = vmin.u32 %v1058_v8, %v5906_v57  ;;  %v5944_v62 = vand.u32 3, %v981_v3  ;;  %v8547_v47 = vand.u32 2147483647, %v8526_v26  ;;  %v8550_v48 = vld [vmem:[#allocation12_spill] sm:$0xff] }
 0x145   : > { %v976_v49 = vsel %vm5838_vm5, %v5102_v63, %v973_v22  ;;  %vm994_vm14 = vcmp.lt.s32.totalorder %v8526_v26, 0  ;;  %vm1153_vm13 = vc.u32 %v5915_v32, %v5926_v25  ;;  %v1151_v51 = vmul.u32 %v1144_v2, %v1135_v23 }
 0x146   : > { %vm5948_vm15 = vcmp.le.f32.partialorder %v8547_v47, 0.7853982  ;;  %4746 = vcosq.f32 %v976_v49  ;;  %v1060_v43 = vclz %v4394_v40  ;;  %v5955_v33 = vsel %vm994_vm14, %v1078_v35, %v1054_v55 }
 0x147   : > { %4748 = vsinq.f32 %v976_v49  ;;  %v1154_v5 = vadd.s32 1, %v5927_v41  ;;  %v1207_v60 = vand.u32 8388607, %v8405_v18  ;;  %v1217_v3 = vshll.u32 %v8499_v6, %v8550_v48 }
 0x148   : > { %v4395_v46 = vadd.s32 4294967294, %v1060_v43  ;;  %v1218_v58 = vshrl.u32 %v8497_v42, %v8551_v7  ;;  %v1221_v55 = vshrl.u32 %v8502_v44, %v8551_v7  ;;  %v1220_v2 = vshll.u32 %v8497_v42, %v8550_v48 }
 0x149   : > { %v1155_v1 = vsel %vm1153_vm13, %v1154_v5, %v5927_v41  ;;  %v1223_v50 = vshll.u32 %v8502_v44, %v8550_v48  ;;  %v1224_v31 = vshrl.u32 %v8479_v53, %v8551_v7  ;;  %vm987_vm5 = vcmp.eq.s32.totalorder %v5944_v62, 2  ;;  %v8552_v48 = vld [vmem:[#allocation20_spill] sm:$0xff] }
 0x14a   : > { %v1048_v8 = vadd.s32 %v5828_v0, %v5811_v11  ;;  %vm4396_vm12 = vcmp.lt.s32.totalorder %v4395_v46, 0  ;;  %v1081_v35 = vsel %vm5948_vm15, 0, %v5955_v33  ;;  %v1156_v41 = vadd.s32 %v1155_v1, %v1151_v51 }
 0x14b   : > { %vm1835_vm6 = vcmp.gt.s32.totalorder %v5645_v16, 0  ;;  %vm984_vm2 = vcmp.eq.s32.totalorder %v5944_v62, 0  ;;  %v1063_v22 = vsel %vm4396_vm12, 0, %v4395_v46  ;;  %v1219_v40 = vor.u32 %v1218_v58, %v1217_v3 }
 0x14c   : > { %v1222_v23 = vor.u32 %v1221_v55, %v1220_v2  ;;  %v1225_v49 = vor.u32 %v1224_v31, %v1223_v50  ;;  %vm983_vm11 = vcmp.lt.s32.totalorder %v5944_v62, 2  ;;  %v1064_v47 = vsub.s32 32, %v1063_v22  ;;  %v8553_v55 = vld [vmem:[#allocation32_spill] sm:$0xff] }
 0x14d   : > { %v1068_v43 = vsub.s32 4294967266, %v1063_v22  ;;  %v1157_v5 = vadd.s32 536870912, %v1156_v41  ;;  %v1216_v11 = vshrl.u32 %v8499_v6, %v8551_v7  ;;  %v1208_v0 = vor.u32 8388608, %v1207_v60  ;;  %v8554_v7 = vld [vmem:[#allocation33_spill] sm:$0xff]  ;;  %v8555_v2 = vld [vmem:[#allocation24_spill] sm:$0xff] }
 0x14e   : > { %vm1232_vm10 = vcmp.lt.s32.totalorder %v8552_v48, 1  ;;  %vm1233_vm4 = vcmp.lt.s32.totalorder %v8552_v48, 2  ;;  %vm1234_vm8 = vcmp.lt.s32.totalorder %v8552_v48, 3  ;;  %v1065_v33 = vshll.u32 %v5906_v57, %v1063_v22  ;;  %v8557_v48 = vld [vmem:[#allocation5_spill] sm:$0xff] }
 0x14f   : > { %v1066_v51 = vshrl.u32 %v1048_v8, %v1064_v47  ;;  %v1069_v46 = vadd.s32 127, %v1068_v43  ;;  %v1158_v3 = vshrl.u32 %v1157_v5, 30  ;;  %v1240_v58 = vsel %vm1232_vm10, %v1219_v40, %v1222_v23 }
 0x150   : > { %v1242_v1 = vsel %vm1234_vm8, %v1225_v49, %v8553_v55  ;;  %v1244_v60 = vsel %vm1232_vm10, %v1222_v23, %v1225_v49  ;;  %v1246_v50 = vsel %vm1234_vm8, %v8555_v2, %v8554_v7  ;;  %v4747_v31 = vpop.eup %4746  ;;  %v1237_v47 = vsel %vm1235_vm1, %v1225_v49, 2102212464 }
 0x151   : > { %v1067_v57 = vor.u32 %v1066_v51, %v1065_v33  ;;  %v1070_v8 = vshll.u32 %v1069_v46, 23  ;;  %v1159_v22 = vshll.u32 %v1158_v3, 30  ;;  %v4749_v43 = vpop.eup %4748  ;;  %v988_v5 = vxor.u32 2147483648, %v4747_v31 }
 0x152   : > { %v1236_v55 = vsel %vm1232_vm10, %v1216_v11, %v1219_v40  ;;  %v1247_v18 = vsel %vm1233_vm4, %v1244_v60, %v1246_v50  ;;  %v1248_v19 = vshll.u32 %v1208_v0, 8  ;;  %v985_v36 = vxor.u32 2147483648, %v4749_v43 }
 0x153   : > { %v1071_v52 = vor.u32 4788187, %v1070_v8  ;;  %v6007_v61 = vsub.s32 %v1156_v41, %v1159_v22  ;;  %v1243_v33 = vsel %vm1233_vm4, %v1240_v58, %v1242_v1  ;;  %v989_v51 = vsel %vm987_vm5, %v988_v5, %v4749_v43 }
 0x154   : > { %v1238_v49 = vsel %vm1234_vm8, %v1222_v23, %v1237_v47  ;;  %v6015_v46 = vmul.u32.u64.low %v1248_v19, %v1247_v18  ;;  %v6016_v7 = vmul.u32.u64.high %v1248_v19, %v1247_v18, %v6015_v46  ;;  %v986_v40 = vsel %vm984_vm2, %v4747_v31, %v985_v36 }
 0x155   : > { %v1072_v11 = vand.u32 2147483647, %v1071_v52  ;;  %v1074_v0 = vcvt.s32.f32 %v1067_v57  ;;  %v1162_v41 = vsub.s32 0, %v6007_v61  ;;  %vm980_vm1 = vweird.f32 %v5102_v63 }
 0x156   : > { %v990_v58 = vsel %vm983_vm11, %v986_v40, %v989_v51  ;;  %v6024_v1 = vmul.u32.u64.low %v1248_v19, %v1243_v33  ;;  %v6025_v60 = vmul.u32.u64.high %v1248_v19, %v1243_v33, %v6024_v1  ;;  %v6031_v18 = vsel %vm1835_vm6, %v5645_v16, 0 }
 0x157   : > { %v991_v23 = vsel %vm980_vm1, nan, %v990_v58  ;;  %v1075_v36 = vmul.f32 %v1074_v0, %v1072_v11  ;;  %v4398_v52 = vmin.u32 %v1162_v41, %v6007_v61  ;;  %v8556_v2 = vor.u32 %v5637_v4, %v5574_v59 }
 0x158   : > { %v6043_v62 = vshrl.u32 %v8496_v13, %v5897_v24  ;;  %4547 = vmatmul.mubr.msk.f32.gmra.mrb[6].mxu0 %vm1939_vm9, %v991_v23  ;;  %v1085_v50 = vadd.s32 3, %v1081_v35  ;;  %v1239_v16 = vsel %vm1233_vm4, %v1236_v55, %v1238_v49  ;;  %v1182_v59 = vsub.s32 4, %v1158_v3 }
 0x159   : > { %v6039_v63 = vsel %vm1651_vm7, %v8556_v2, 1326507024  ;;  %4549 = vmatprep.mubr.msk.f32.mxu0 %vm4954_vm0, %v8529_v37  ;;  %v1076_v31 = vxor.u32 2147483648, %v1075_v36  ;;  %v1164_v57 = vclz %v4398_v52  ;;  %vm1257_vm13 = vc.u32 %v6016_v7, %v6024_v1 }
 0x15a   : > { %v6054_v4 = vshrl.u32 %v8478_v39, %v5897_v24  ;;  %v6057_v8 = vshrl.u32 %v6031_v18, 5  ;;  %v1258_v35 = vadd.s32 1, %v6025_v60  ;;  %v1304_v22 = vand.u32 2147483647, %v8557_v48 }
 0x15b   : > { %v1077_v47 = vsel %vm994_vm14, %v1076_v31, %v1075_v36  ;;  %v8558_v43 = vand.u32 2147483647, %v8535_v17  ;;  %vm1098_vm12 = vcmp.lt.s32.totalorder %v8535_v17, 0  ;;  %v4399_v55 = vadd.s32 4294967294, %v1164_v57 }
 0x15c   : > { %v1255_v33 = vmul.u32 %v1248_v19, %v1239_v16  ;;  %v1080_v51 = vsel %vm5948_vm15, %v8526_v26, %v1077_v47  ;;  %v6073_v49 = vand.u32 3, %v1085_v50  ;;  %v1152_v46 = vadd.s32 %v5926_v25, %v5915_v32  ;;  %v8562_v32 = vld [vmem:[#allocation18_spill] sm:$0xff] }
 0x15d   : > { %vm6065_vm5 = vcmp.le.f32.partialorder %v8558_v43, 0.7853982  ;;  %v1259_v40 = vsel %vm1257_vm13, %v1258_v35, %v6025_v60  ;;  %4750 = vcosq.f32 %v1080_v51  ;;  %vm4400_vm14 = vcmp.lt.s32.totalorder %v4399_v55, 0 }
 0x15e   : > { %v1183_v11 = vsel %vm1098_vm12, %v1182_v59, %v1158_v3  ;;  %v1260_v0 = vadd.s32 %v1259_v40, %v1255_v33  ;;  %4752 = vsinq.f32 %v1080_v51  ;;  %v1167_v41 = vsel %vm4400_vm14, 0, %v4399_v55 }
 0x15f   : > { %v1311_v19 = vand.u32 8388607, %v1304_v22  ;;  %v1322_v58 = vshrl.u32 %v8497_v42, %v8561_v10  ;;  %v1168_v23 = vsub.s32 32, %v1167_v41  ;;  %v1172_v36 = vsub.s32 4294967266, %v1167_v41 }
 0x160   : > { %v1261_v52 = vadd.s32 536870912, %v1260_v0  ;;  %v1321_v25 = vshll.u32 %v8499_v6, %v8562_v32  ;;  %v1324_v60 = vshll.u32 %v8497_v42, %v8562_v32  ;;  %v1325_v3 = vshrl.u32 %v8502_v44, %v8561_v10 }
 0x161   : > { %v1327_v2 = vshll.u32 %v8502_v44, %v8562_v32  ;;  %v1328_v50 = vshrl.u32 %v8479_v53, %v8561_v10  ;;  %v1169_v16 = vshll.u32 %v6007_v61, %v1167_v41  ;;  %v1170_v31 = vshrl.u32 %v1152_v46, %v1168_v23 }
 0x162   : > { %v1173_v57 = vadd.s32 127, %v1172_v36  ;;  %v6095_v59 = vshrl.u32 %v1261_v52, 30  ;;  %vm1088_vm15 = vcmp.eq.s32.totalorder %v6073_v49, 0  ;;  %v1323_v35 = vor.u32 %v1322_v58, %v1321_v25 }
 0x163   : > { %v1326_v47 = vor.u32 %v1325_v3, %v1324_v60  ;;  %v1329_v43 = vor.u32 %v1328_v50, %v1327_v2  ;;  %vm1087_vm6 = vcmp.lt.s32.totalorder %v6073_v49, 2  ;;  %vm1091_vm2 = vcmp.eq.s32.totalorder %v6073_v49, 2 }
 0x164   : > { %v1171_v55 = vor.u32 %v1170_v31, %v1169_v16  ;;  %v1174_v33 = vshll.u32 %v1173_v57, 23  ;;  %v1263_v51 = vshll.u32 %v6095_v59, 30  ;;  %v1185_v61 = vsel %vm6065_vm5, 0, %v1183_v11 }
 0x165   : > { %v1312_v46 = vor.u32 8388608, %v1311_v19  ;;  %v1320_v40 = vshrl.u32 %v8499_v6, %v8561_v10  ;;  %vm1336_vm11 = vcmp.lt.s32.totalorder %v5348_v21, 1  ;;  %vm1338_vm10 = vcmp.lt.s32.totalorder %v5348_v21, 3 }
 0x166   : > { %v1175_v41 = vor.u32 4788187, %v1174_v33  ;;  %v6106_v58 = vsub.s32 %v1260_v0, %v1263_v51  ;;  %v1348_v23 = vsel %vm1336_vm11, %v1326_v47, %v1329_v43  ;;  %vm1337_vm4 = vcmp.lt.s32.totalorder %v5348_v21, 2 }
 0x167   : > { %v1340_v36 = vsel %vm1336_vm11, %v1320_v40, %v1323_v35  ;;  %v1341_v52 = vsel %vm1339_vm3, %v1329_v43, 2102212464  ;;  %v1350_v11 = vsel %vm1338_vm10, %v5382_v54, %v5421_v29  ;;  %v4751_v19 = vpop.eup %4750  ;;  %v1178_v32 = vcvt.s32.f32 %v1171_v55 }
 0x168   : > { %v1176_v10 = vand.u32 2147483647, %v1175_v41  ;;  %v1266_v0 = vsub.s32 0, %v6106_v58  ;;  %v1344_v25 = vsel %vm1336_vm11, %v1323_v35, %v1326_v47  ;;  %v4753_v60 = vpop.eup %4752  ;;  %v1092_v3 = vxor.u32 2147483648, %v4751_v19 }
 0x169   : > { %v1346_v2 = vsel %vm1338_vm10, %v1329_v43, %v5403_v38  ;;  %v1351_v50 = vsel %vm1337_vm4, %v1348_v23, %v1350_v11  ;;  %v1352_v16 = vshll.u32 %v1312_v46, 8  ;;  %v1089_v31 = vxor.u32 2147483648, %v4753_v60 }
 0x16a   : > { %v1179_v57 = vmul.f32 %v1178_v32, %v1176_v10  ;;  %v4402_v54 = vmin.u32 %v1266_v0, %v6106_v58  ;;  %v1342_v29 = vsel %vm1338_vm10, %v1326_v47, %v1341_v52  ;;  %v1093_v35 = vsel %vm1091_vm2, %v1092_v3, %v4753_v60 }
 0x16b   : > { %v1189_v55 = vadd.s32 3, %v1185_v61  ;;  %v6127_v33 = vmul.u32.u64.low %v1352_v16, %v1351_v50  ;;  %v6128_v51 = vmul.u32.u64.high %v1352_v16, %v1351_v50, %v6127_v33  ;;  %v1090_v38 = vsel %vm1088_vm15, %v4751_v19, %v1089_v31 }
 0x16c   : > { %v1180_v43 = vxor.u32 2147483648, %v1179_v57  ;;  %v1268_v40 = vclz %v4402_v54  ;;  %v1347_v46 = vsel %vm1337_vm4, %v1344_v25, %v1346_v2  ;;  %vm1084_vm3 = vweird.f32 %v8526_v26  ;;  %v8566_v26 = vld [vmem:[#allocation6_spill] sm:$0xff] }
 0x16d   : > { %v1094_v47 = vsel %vm1087_vm6, %v1090_v38, %v1093_v35  ;;  %v1286_v41 = vsub.s32 4, %v6095_v59  ;;  %v1343_v61 = vsel %vm1337_vm4, %v1340_v36, %v1342_v29  ;;  %v8563_v11 = vand.u32 2147483647, %v8545_v56  ;;  %v8567_v54 = vld [vmem:[#allocation30_spill] sm:$0xff] }
 0x16e   : > { %v1095_v23 = vsel %vm1084_vm3, nan, %v1094_v47  ;;  %v1181_v52 = vsel %vm1098_vm12, %v1180_v43, %v1179_v57  ;;  %v4403_v10 = vadd.s32 4294967294, %v1268_v40  ;;  %v1408_v32 = vand.u32 2147483647, %v8566_v26 }
 0x16f   : > { %vm6144_vm8 = vcmp.le.f32.partialorder %v8563_v11, 0.7853982  ;;  %4550 = vmatmul.mubr.msk.f32.gmra.mrb[8].mxu0 %vm1939_vm9, %v1095_v23  ;;  %v1184_v21 = vsel %vm6065_vm5, %v8535_v17, %v1181_v52  ;;  %vm1202_vm1 = vcmp.lt.s32.totalorder %v8545_v56, 0  ;;  %v6160_v0 = vand.u32 3, %v1189_v55 }
 0x170   : > { %v6154_v49 = vmul.u32.u64.low %v1352_v16, %v1347_v46  ;;  %v6155_v36 = vmul.u32.u64.high %v1352_v16, %v1347_v46, %v6154_v49  ;;  %4552 = vmatprep.mubr.msk.f32.mxu0 %vm4954_vm0, %v8529_v37  ;;  %4754 = vcosq.f32 %v1184_v21  ;;  %v1256_v25 = vadd.s32 %v6024_v1, %v6016_v7 }
 0x171   : > { %vm4404_vm13 = vcmp.lt.s32.totalorder %v4403_v10, 0  ;;  %4756 = vsinq.f32 %v1184_v21  ;;  %v1287_v5 = vsel %vm1202_vm1, %v1286_v41, %v6095_v59  ;;  %v1359_v3 = vmul.u32 %v1352_v16, %v1343_v61 }
 0x172   : > { %v1271_v60 = vsel %vm4404_vm13, 0, %v4403_v10  ;;  %vm1361_vm5 = vc.u32 %v6128_v51, %v6154_v49  ;;  %v1415_v31 = vand.u32 8388607, %v1408_v32  ;;  %v1362_v7 = vadd.s32 1, %v6155_v36 }
 0x173   : > { %v1272_v2 = vsub.s32 32, %v1271_v60  ;;  %v1276_v50 = vsub.s32 4294967266, %v1271_v60  ;;  %v1273_v57 = vshll.u32 %v6106_v58, %v1271_v60  ;;  %v1425_v1 = vshll.u32 %v8499_v6, %v5305_v15 }
 0x174   : > { %v1426_v29 = vshrl.u32 %v8497_v42, %v8567_v54  ;;  %vm1195_vm12 = vcmp.eq.s32.totalorder %v6160_v0, 2  ;;  %v1428_v35 = vshll.u32 %v8497_v42, %v5305_v15  ;;  %v1429_v55 = vshrl.u32 %v8502_v44, %v8567_v54 }
 0x175   : > { %v1274_v59 = vshrl.u32 %v1256_v25, %v1272_v2  ;;  %v1277_v16 = vadd.s32 127, %v1276_v50  ;;  %vm1192_vm14 = vcmp.eq.s32.totalorder %v6160_v0, 0  ;;  %v1363_v58 = vsel %vm1361_vm5, %v1362_v7, %v6155_v36 }
 0x176   : > { %v1427_v33 = vor.u32 %v1426_v29, %v1425_v1  ;;  %v1431_v38 = vshll.u32 %v8502_v44, %v5305_v15  ;;  %v1432_v43 = vshrl.u32 %v8479_v53, %v8567_v54  ;;  %vm1191_vm15 = vcmp.lt.s32.totalorder %v6160_v0, 2 }
 0x177   : > { %v1275_v40 = vor.u32 %v1274_v59, %v1273_v57  ;;  %v1278_v46 = vshll.u32 %v1277_v16, 23  ;;  %v1364_v47 = vadd.s32 %v1363_v58, %v1359_v3  ;;  %v1430_v41 = vor.u32 %v1429_v55, %v1428_v35 }
 0x178   : > { %vm1188_vm6 = vweird.f32 %v8535_v17  ;;  %v1289_v61 = vsel %vm6144_vm8, 0, %v1287_v5  ;;  %v1416_v23 = vor.u32 8388608, %v1415_v31  ;;  %v1424_v52 = vshrl.u32 %v8499_v6, %v8567_v54 }
 0x179   : > { %v1433_v11 = vor.u32 %v1432_v43, %v1431_v38  ;;  %v1279_v15 = vor.u32 4788187, %v1278_v46  ;;  %v1365_v10 = vadd.s32 536870912, %v1364_v47  ;;  %vm1440_vm2 = vcmp.lt.s32.totalorder %v5362_v12, 1 }
 0x17a   : > { %vm1442_vm11 = vcmp.lt.s32.totalorder %v5362_v12, 3  ;;  %v1448_v21 = vsel %vm1440_vm2, %v1427_v33, %v1430_v41  ;;  %v4755_v5 = vpop.eup %4754  ;;  %v1282_v2 = vcvt.s32.f32 %v1275_v40  ;;  %vm1441_vm10 = vcmp.lt.s32.totalorder %v5362_v12, 2 }
 0x17b   : > { %v1450_v36 = vsel %vm1442_vm11, %v1433_v11, %v5426_v27  ;;  %v1452_v25 = vsel %vm1440_vm2, %v1430_v41, %v1433_v11  ;;  %v1454_v60 = vsel %vm1442_vm11, %v5398_v20, %v5433_v14  ;;  %v1280_v3 = vand.u32 2147483647, %v1279_v15  ;;  %v4757_v31 = vpop.eup %4756 }
 0x17c   : > { %v1366_v50 = vshrl.u32 %v1365_v10, 30  ;;  %v1196_v57 = vxor.u32 2147483648, %v4755_v5  ;;  %vm8568_vm4 = vcmp.lt.s32.totalorder %v5362_v12, 4  ;;  %v1455_v27 = vsel %vm1441_vm10, %v1452_v25, %v1454_v60 }
 0x17d   : > { %v1445_v7 = vsel %vm8568_vm4, %v1433_v11, 2102212464  ;;  %v1456_v1 = vshll.u32 %v1416_v23, 8  ;;  %v1193_v54 = vxor.u32 2147483648, %v4757_v31  ;;  %v1283_v29 = vmul.f32 %v1282_v2, %v1280_v3 }
 0x17e   : > { %v1367_v59 = vshll.u32 %v1366_v50, 30  ;;  %v1451_v20 = vsel %vm1441_vm10, %v1448_v21, %v1450_v36  ;;  %v1197_v14 = vsel %vm1195_vm12, %v1196_v57, %v4757_v31  ;;  %v1444_v16 = vsel %vm1440_vm2, %v1424_v52, %v1427_v33 }
 0x17f   : > { %v6218_v35 = vmul.u32.u64.low %v1456_v1, %v1455_v27  ;;  %v6219_v55 = vmul.u32.u64.high %v1456_v1, %v1455_v27, %v6218_v35  ;;  %v1194_v58 = vsel %vm1192_vm14, %v4755_v5, %v1193_v54  ;;  %v1284_v38 = vxor.u32 2147483648, %v1283_v29  ;;  %v8581_v5 = vld [vmem:[#allocation39_spill] sm:$0xff] }
 0x180   : > { %v6223_v43 = vsub.s32 %v1364_v47, %v1367_v59  ;;  %v1446_v40 = vsel %vm1442_vm11, %v1430_v41, %v1445_v7  ;;  %v1198_v46 = vsel %vm1191_vm15, %v1194_v58, %v1197_v14  ;;  %v1293_v23 = vadd.s32 3, %v1289_v61 }
 0x181   : > { %v6229_v11 = vmul.u32.u64.low %v1456_v1, %v1451_v20  ;;  %v6230_v15 = vmul.u32.u64.high %v1456_v1, %v1451_v20, %v6229_v11  ;;  %v6234_v33 = vand.u32 31, %v6031_v18  ;;  %v1199_v52 = vsel %vm1188_vm6, nan, %v1198_v46 }
 0x182   : > { %v1285_v47 = vsel %vm1202_vm1, %v1284_v38, %v1283_v29  ;;  %v1370_v10 = vsub.s32 0, %v6223_v43  ;;  %v6243_v0 = vor.u32 %v6043_v62, %v5919_v30  ;;  %4553 = vmatmul.mubr.msk.f32.gmra.mrb[10].mxu0 %vm1939_vm9, %v1199_v52  ;;  %v1390_v18 = vsub.s32 4, %v1366_v50  ;;  %v8569_v30 = vld [vmem:[#allocation11_spill] sm:$0xff] }
 0x183   : > { %v1288_v41 = vsel %vm6144_vm8, %v8545_v56, %v1285_v47  ;;  %v1447_v17 = vsel %vm1441_vm10, %v1444_v16, %v1446_v40  ;;  %4555 = vmatprep.mubr.msk.f32.mxu0 %vm4954_vm0, %v8529_v37  ;;  %vm1465_vm3 = vc.u32 %v6219_v55, %v6229_v11  ;;  %v1512_v62 = vand.u32 2147483647, %v8569_v30 }
 0x184   : > { %4758 = vcosq.f32 %v1288_v41  ;;  %v4406_v61 = vmin.u32 %v1370_v10, %v6223_v43  ;;  %v1751_v21 = vor.u32 %v6054_v4, %v5924_v45  ;;  %v1294_v19 = vand.u32 3, %v1293_v23 }
 0x185   : > { %4760 = vsinq.f32 %v1288_v41  ;;  %v1466_v36 = vadd.s32 1, %v6230_v15  ;;  %v6261_v12 = vsub.s32 32, %v6234_v33  ;;  %vm1306_vm8 = vcmp.lt.s32.totalorder %v8557_v48, 0 }
 0x186   : > { %v1372_v25 = vclz %v4406_v61  ;;  %v1463_v60 = vmul.u32 %v1456_v1, %v1447_v17  ;;  %vm6266_vm1 = vcmp.le.f32.partialorder %v1304_v22, 0.7853982  ;;  %v1391_v3 = vsel %vm1306_vm8, %v1390_v18, %v1366_v50 }
 0x187   : > { %v1467_v2 = vsel %vm1465_vm3, %v1466_v36, %v6230_v15  ;;  %v1519_v31 = vand.u32 8388607, %v1512_v62  ;;  %v1529_v27 = vshll.u32 %v8499_v6, %v5407_v28  ;;  %v1530_v1 = vshrl.u32 %v8497_v42, %v5441_v9  ;;  %v8574_v36 = vld [vmem:[#allocation40_spill] sm:$0xff] }
 0x188   : > { %v4407_v57 = vadd.s32 4294967294, %v1372_v25  ;;  %v1468_v7 = vadd.s32 %v1467_v2, %v1463_v60  ;;  %vm1296_vm13 = vcmp.eq.s32.totalorder %v1294_v19, 0  ;;  %v1532_v22 = vshll.u32 %v8497_v42, %v5407_v28 }
 0x189   : > { %v1533_v50 = vshrl.u32 %v8502_v44, %v5441_v9  ;;  %v1535_v54 = vshll.u32 %v8502_v44, %v5407_v28  ;;  %v1536_v29 = vshrl.u32 %v8479_v53, %v5441_v9  ;;  %vm1295_vm5 = vcmp.lt.s32.totalorder %v1294_v19, 2 }
 0x18a   : > { %vm1299_vm12 = vcmp.eq.s32.totalorder %v1294_v19, 2  ;;  %v1360_v59 = vadd.s32 %v6154_v49, %v6128_v51  ;;  %vm4408_vm14 = vcmp.lt.s32.totalorder %v4407_v57, 0  ;;  %v1469_v20 = vadd.s32 536870912, %v1468_v7  ;;  %v8572_v49 = vld [vmem:[#allocation36_spill] sm:$0xff] }
 0x18b   : > { %vm1292_vm15 = vweird.f32 %v8545_v56  ;;  %v1375_v14 = vsel %vm4408_vm14, 0, %v4407_v57  ;;  %v1531_v16 = vor.u32 %v1530_v1, %v1529_v27  ;;  %v1534_v35 = vor.u32 %v1533_v50, %v1532_v22 }
 0x18c   : > { %v1537_v58 = vor.u32 %v1536_v29, %v1535_v54  ;;  %v1376_v38 = vsub.s32 32, %v1375_v14  ;;  %v1380_v40 = vsub.s32 4294967266, %v1375_v14  ;;  %v1393_v28 = vsel %vm6266_vm1, 0, %v1391_v3 }
 0x18d   : > { %v6292_v46 = vshrl.u32 %v1469_v20, 30  ;;  %v1377_v23 = vshll.u32 %v6223_v43, %v1375_v14  ;;  %v1520_v15 = vor.u32 8388608, %v1519_v31  ;;  %v1528_v51 = vshrl.u32 %v8499_v6, %v5441_v9  ;;  %v8576_v20 = vld [vmem:[#allocation38_spill] sm:$0xff] }
 0x18e   : > { %vm1544_vm6 = vcmp.lt.s32.totalorder %v8572_v49, 1  ;;  %v4759_v52 = vpop.eup %4758  ;;  %v1378_v47 = vshrl.u32 %v1360_v59, %v1376_v38  ;;  %v1381_v10 = vadd.s32 127, %v1380_v40  ;;  %vm1546_vm2 = vcmp.lt.s32.totalorder %v8572_v49, 3  ;;  %v8575_v59 = vld [vmem:[#allocation41_spill] sm:$0xff] }
 0x18f   : > { %v1471_v41 = vshll.u32 %v6292_v46, 30  ;;  %v4761_v18 = vpop.eup %4760  ;;  %v1300_v17 = vxor.u32 2147483648, %v4759_v52  ;;  %vm8573_vm11 = vcmp.lt.s32.totalorder %v8572_v49, 4  ;;  %v1552_v43 = vsel %vm1544_vm6, %v1531_v16, %v1534_v35 }
 0x190   : > { %v1549_v61 = vsel %vm8573_vm11, %v1537_v58, 2102212464  ;;  %v1554_v9 = vsel %vm1546_vm2, %v1537_v58, %v8574_v36  ;;  %v1297_v25 = vxor.u32 2147483648, %v4761_v18  ;;  %v1379_v60 = vor.u32 %v1378_v47, %v1377_v23 }
 0x191   : > { %v1382_v3 = vshll.u32 %v1381_v10, 23  ;;  %v6307_v2 = vsub.s32 %v1468_v7, %v1471_v41  ;;  %v1301_v31 = vsel %vm1299_vm12, %v1300_v17, %v4761_v18  ;;  %vm1545_vm10 = vcmp.lt.s32.totalorder %v8572_v49, 2  ;;  %v8577_v17 = vld [vmem:[#allocation23_spill] sm:$0xff] }
 0x192   : > { %v1548_v57 = vsel %vm1544_vm6, %v1528_v51, %v1531_v16  ;;  %v1556_v27 = vsel %vm1544_vm6, %v1534_v35, %v1537_v58  ;;  %v1298_v1 = vsel %vm1296_vm13, %v4759_v52, %v1297_v25  ;;  %v1555_v54 = vsel %vm1545_vm10, %v1552_v43, %v1554_v9 }
 0x193   : > { %v1383_v22 = vor.u32 4788187, %v1382_v3  ;;  %v1474_v50 = vsub.s32 0, %v6307_v2  ;;  %v1302_v7 = vsel %vm1295_vm5, %v1298_v1, %v1301_v31  ;;  %v1550_v29 = vsel %vm1546_vm2, %v1534_v35, %v1549_v61 }
 0x194   : > { %v1558_v14 = vsel %vm1546_vm2, %v8576_v20, %v8575_v59  ;;  %v1560_v16 = vshll.u32 %v1520_v15, 8  ;;  %v1303_v58 = vsel %vm1292_vm15, nan, %v1302_v7  ;;  %v1386_v40 = vcvt.s32.f32 %v1379_v60 }
 0x195   : > { %v1384_v38 = vand.u32 2147483647, %v1383_v22  ;;  %v4410_v23 = vmin.u32 %v1474_v50, %v6307_v2  ;;  %4556 = vmatmul.mubr.msk.f32.gmra.mrb[12].mxu0 %vm1939_vm9, %v1303_v58  ;;  %v1397_v19 = vadd.s32 3, %v1393_v28  ;;  %v1559_v51 = vsel %vm1545_vm10, %v1556_v27, %v1558_v14 }
 0x196   : > { %v6332_v35 = vmul.u32.u64.low %v1560_v16, %v1555_v54  ;;  %v6333_v52 = vmul.u32.u64.high %v1560_v16, %v1555_v54, %v6332_v35  ;;  %v6338_v15 = vshll.u32 %v8479_v53, %v6234_v33  ;;  %v6342_v56 = vshll.u32 %v8496_v13, %v6234_v33  ;;  %4558 = vmatprep.mubr.msk.f32.mxu0 %vm4954_vm0, %v8529_v37  ;;  %v8580_v54 = vld [vmem:[#allocation37_spill] sm:$0xff] }
 0x197   : > { %v1387_v47 = vmul.f32 %v1386_v40, %v1384_v38  ;;  %v1476_v28 = vclz %v4410_v23  ;;  %v1551_v10 = vsel %vm1545_vm10, %v1548_v57, %v1550_v29  ;;  %v1616_v61 = vand.u32 2147483647, %v8577_v17 }
 0x198   : > { %v6348_v41 = vmul.u32.u64.low %v1560_v16, %v1559_v51  ;;  %v6349_v18 = vmul.u32.u64.high %v1560_v16, %v1559_v51, %v6348_v41  ;;  %v6354_v43 = vshrl.u32 %v8496_v13, %v6261_v12  ;;  %v6358_v36 = vshrl.u32 %v8478_v39, %v6261_v12 }
 0x199   : > { %v1388_v9 = vxor.u32 2147483648, %v1387_v47  ;;  %v4411_v25 = vadd.s32 4294967294, %v1476_v28  ;;  %v6360_v60 = vand.u32 3, %v1397_v19  ;;  %vm1410_vm4 = vcmp.lt.s32.totalorder %v8566_v26, 0 }
 0x19a   : > { %v1464_v49 = vadd.s32 %v6229_v11, %v6219_v55  ;;  %v1570_v3 = vadd.s32 1, %v6333_v52  ;;  %vm6370_vm3 = vcmp.le.f32.partialorder %v1408_v32, 0.7853982  ;;  %v1494_v27 = vsub.s32 4, %v6292_v46 }
 0x19b   : > { %v1389_v31 = vsel %vm1306_vm8, %v1388_v9, %v1387_v47  ;;  %vm4412_vm13 = vcmp.lt.s32.totalorder %v4411_v25, 0  ;;  %v1567_v1 = vmul.u32 %v1560_v16, %v1551_v10  ;;  %vm1569_vm5 = vc.u32 %v6349_v18, %v6332_v35 }
 0x19c   : > { %v1392_v22 = vsel %vm6266_vm1, %v8557_v48, %v1389_v31  ;;  %v1479_v55 = vsel %vm4412_vm13, 0, %v4411_v25  ;;  %v1623_v11 = vand.u32 8388607, %v1616_v61  ;;  %v1633_v7 = vshll.u32 %v8499_v6, %v8580_v54  ;;  %v8582_v31 = vld [vmem:[#allocation22_spill] sm:$0xff] }
 0x19d   : > { %4762 = vcosq.f32 %v1392_v22  ;;  %v1480_v32 = vsub.s32 32, %v1479_v55  ;;  %v1484_v50 = vsub.s32 4294967266, %v1479_v55  ;;  %v1481_v29 = vshll.u32 %v6307_v2, %v1479_v55 }
 0x19e   : > { %4764 = vsinq.f32 %v1392_v22  ;;  %v1571_v59 = vsel %vm1569_vm5, %v1570_v3, %v6333_v52  ;;  %v1634_v20 = vshrl.u32 %v8497_v42, %v8581_v5  ;;  %v1636_v38 = vshll.u32 %v8497_v42, %v8580_v54 }
 0x19f   : > { %v1482_v14 = vshrl.u32 %v1464_v49, %v1480_v32  ;;  %v1485_v16 = vadd.s32 127, %v1484_v50  ;;  %v1572_v58 = vadd.s32 %v1571_v59, %v1567_v1  ;;  %v1637_v23 = vshrl.u32 %v8502_v44, %v8581_v5  ;;  %v8583_v50 = vld [vmem:[#allocation42_spill] sm:$0xff] }
 0x1a0   : > { %v1635_v40 = vor.u32 %v1634_v20, %v1633_v7  ;;  %v1639_v19 = vshll.u32 %v8502_v44, %v8580_v54  ;;  %v1640_v2 = vshrl.u32 %v8479_v53, %v8581_v5  ;;  %v1495_v47 = vsel %vm1410_vm4, %v1494_v27, %v6292_v46  ;;  %v8584_v7 = vld [vmem:[#allocation10_spill] sm:$0xff] }
 0x1a1   : > { %v1483_v51 = vor.u32 %v1482_v14, %v1481_v29  ;;  %v1486_v52 = vshll.u32 %v1485_v16, 23  ;;  %v1573_v28 = vadd.s32 536870912, %v1572_v58  ;;  %vm1400_vm8 = vcmp.eq.s32.totalorder %v6360_v60, 0 }
 0x1a2   : > { %vm1403_vm1 = vcmp.eq.s32.totalorder %v6360_v60, 2  ;;  %v1624_v10 = vor.u32 8388608, %v1623_v11  ;;  %v1638_v41 = vor.u32 %v1637_v23, %v1636_v38  ;;  %v1641_v9 = vor.u32 %v1640_v2, %v1639_v19 }
 0x1a3   : > { %v1487_v25 = vor.u32 4788187, %v1486_v52  ;;  %v6401_v49 = vshrl.u32 %v1573_v28, 30  ;;  %vm1648_vm12 = vcmp.lt.s32.totalorder %v5507_v34, 1  ;;  %vm1650_vm14 = vcmp.lt.s32.totalorder %v5507_v34, 3 }
 0x1a4   : > { %v1497_v3 = vsel %vm6370_vm3, 0, %v1495_v47  ;;  %v1656_v46 = vsel %vm1648_vm12, %v1635_v40, %v1638_v41  ;;  %v1658_v27 = vsel %vm1650_vm14, %v1641_v9, %v8582_v31  ;;  %v1660_v1 = vsel %vm1648_vm12, %v1638_v41, %v1641_v9 }
 0x1a5   : > { %v1488_v22 = vand.u32 2147483647, %v1487_v25  ;;  %v1490_v55 = vcvt.s32.f32 %v1483_v51  ;;  %v1575_v11 = vshll.u32 %v6401_v49, 30  ;;  %v1632_v32 = vshrl.u32 %v8499_v6, %v8581_v5 }
 0x1a6   : > { %vm1755_vm15 = vcmp.lt.s32.totalorder %v8583_v50, 4  ;;  %vm1649_vm6 = vcmp.lt.s32.totalorder %v5507_v34, 2  ;;  %v1653_v54 = vsel %vm1651_vm7, %v1641_v9, 2102212464  ;;  %v1662_v29 = vsel %vm1650_vm14, %v8584_v7, %v6039_v63 }
 0x1a7   : > { %v1664_v59 = vshll.u32 %v1624_v10, 8  ;;  %v4763_v20 = vpop.eup %4762  ;;  %v1491_v14 = vmul.f32 %v1490_v55, %v1488_v22  ;;  %v6425_v16 = vsub.s32 %v1572_v58, %v1575_v11  ;;  %v1659_v5 = vsel %vm1649_vm6, %v1656_v46, %v1658_v27 }
 0x1a8   : > { %v1663_v38 = vsel %vm1649_vm6, %v1660_v1, %v1662_v29  ;;  %v4765_v23 = vpop.eup %4764  ;;  %v1404_v19 = vxor.u32 2147483648, %v4763_v20  ;;  %v1652_v2 = vsel %vm1648_vm12, %v1632_v32, %v1635_v40  ;;  %v1654_v58 = vsel %vm1650_vm14, %v1638_v41, %v1653_v54 }
 0x1a9   : > { %v6433_v51 = vmul.u32.u64.low %v1664_v59, %v1663_v38  ;;  %v6434_v52 = vmul.u32.u64.high %v1664_v59, %v1663_v38, %v6433_v51  ;;  %v1401_v63 = vxor.u32 2147483648, %v4765_v23  ;;  %v1492_v47 = vxor.u32 2147483648, %v1491_v14 }
 0x1aa   : > { %v1578_v28 = vsub.s32 0, %v6425_v16  ;;  %v1405_v10 = vsel %vm1403_vm1, %v1404_v19, %v4765_v23  ;;  %v1501_v9 = vadd.s32 3, %v1497_v3  ;;  %vm1399_vm7 = vcmp.lt.s32.totalorder %v6360_v60, 2 }
 0x1ab   : > { %v6441_v25 = vmul.u32.u64.low %v1664_v59, %v1659_v5  ;;  %v6442_v46 = vmul.u32.u64.high %v1664_v59, %v1659_v5, %v6441_v25  ;;  %v1402_v40 = vsel %vm1400_vm8, %v4763_v20, %v1401_v63  ;;  %v1493_v31 = vsel %vm1410_vm4, %v1492_v47, %v1491_v14  ;;  %v8585_v14 = vld [vmem:[#allocation34_spill] sm:$0xff] }
 0x1ac   : > { %v4414_v27 = vmin.u32 %v1578_v28, %v6425_v16  ;;  %vm1396_vm2 = vweird.f32 %v8557_v48  ;;  %v1406_v41 = vsel %vm1399_vm7, %v1402_v40, %v1405_v10  ;;  %v1496_v3 = vsel %vm6370_vm3, %v8566_v26, %v1493_v31 }
 0x1ad   : > { %v1655_v1 = vsel %vm1649_vm6, %v1652_v2, %v1654_v58  ;;  %v1407_v22 = vsel %vm1396_vm2, nan, %v1406_v41  ;;  %4766 = vcosq.f32 %v1496_v3  ;;  %vm1673_vm11 = vc.u32 %v6434_v52, %v6441_v25 }
 0x1ae   : > { %v1580_v55 = vclz %v4414_v27  ;;  %4559 = vmatmul.mubr.msk.f32.gmra.mrb[14].mxu0 %vm1939_vm9, %v1407_v22  ;;  %4768 = vsinq.f32 %v1496_v3  ;;  %v6460_v60 = vand.u32 3, %v1501_v9  ;;  %v1598_v48 = vsub.s32 4, %v6401_v49 }
 0x1af   : > { %v1674_v11 = vadd.s32 1, %v6442_v46  ;;  %v1761_v34 = vsel %vm1755_vm15, %v6243_v0, 920167782  ;;  %v6472_v57 = vsel %vm1755_vm15, %v1751_v21, 1326507024  ;;  %4561 = vmatprep.mubr.msk.f32.mxu0 %vm4954_vm0, %v8529_v37  ;;  %v1671_v54 = vmul.u32 %v1664_v59, %v1655_v1 }
 0x1b0   : > { %v4415_v32 = vadd.s32 4294967294, %v1580_v55  ;;  %v6478_v7 = vor.u32 %v6354_v43, %v6338_v15  ;;  %v1855_v29 = vor.u32 %v6358_v36, %v6342_v56  ;;  %v1720_v45 = vand.u32 2147483647, %v8585_v14 }
 0x1b1   : > { %v1675_v20 = vsel %vm1673_vm11, %v1674_v11, %v6442_v46  ;;  %vm6486_vm10 = vcmp.le.f32.partialorder %v1512_v62, 0.7853982  ;;  %vm1514_vm4 = vcmp.lt.s32.totalorder %v8569_v30, 0  ;;  %vm1504_vm13 = vcmp.eq.s32.totalorder %v6460_v60, 0 }
 0x1b2   : > { %vm4416_vm3 = vcmp.lt.s32.totalorder %v4415_v32, 0  ;;  %v1676_v21 = vadd.s32 %v1675_v20, %v1671_v54  ;;  %vm1507_vm5 = vcmp.eq.s32.totalorder %v6460_v60, 2  ;;  %v1568_v15 = vadd.s32 %v6332_v35, %v6349_v18  ;;  %v8588_v18 = vld [vmem:[#allocation43_spill] sm:$0xff] }
 0x1b3   : > { %v1583_v43 = vsel %vm4416_vm3, 0, %v4415_v32  ;;  %v1599_v59 = vsel %vm1514_vm4, %v1598_v48, %v6401_v49  ;;  %vm1503_vm8 = vcmp.lt.s32.totalorder %v6460_v60, 2  ;;  %v1738_v23 = vshrl.u32 %v8497_v42, %v5897_v24 }
 0x1b4   : > { %v1584_v62 = vsub.s32 32, %v1583_v43  ;;  %v1588_v5 = vsub.s32 4294967266, %v1583_v43  ;;  %v1677_v38 = vadd.s32 536870912, %v1676_v21  ;;  %vm1500_vm1 = vweird.f32 %v8566_v26 }
 0x1b5   : > { %v1727_v19 = vand.u32 8388607, %v1720_v45  ;;  %v1741_v35 = vshrl.u32 %v8502_v44, %v5897_v24  ;;  %v1743_v2 = vshll.u32 %v8502_v44, %v8588_v18  ;;  %v1744_v49 = vshrl.u32 %v8479_v53, %v5897_v24 }
 0x1b6   : > { %v1585_v51 = vshll.u32 %v6425_v16, %v1583_v43  ;;  %v1586_v63 = vshrl.u32 %v1568_v15, %v1584_v62  ;;  %v1589_v47 = vadd.s32 127, %v1588_v5  ;;  %v6511_v28 = vshrl.u32 %v1677_v38, 30 }
 0x1b7   : > { %v1601_v58 = vsel %vm6486_vm10, 0, %v1599_v59  ;;  %v1737_v10 = vshll.u32 %v8499_v6, %v8588_v18  ;;  %v1740_v9 = vshll.u32 %v8497_v42, %v8588_v18  ;;  %v1745_v46 = vor.u32 %v1744_v49, %v1743_v2  ;;  %v4767_v40 = vpop.eup %4766 }
 0x1b8   : > { %vm1859_vm12 = vcmp.lt.s32.totalorder %v6057_v8, 4  ;;  %v1587_v31 = vor.u32 %v1586_v63, %v1585_v51  ;;  %v1590_v27 = vshll.u32 %v1589_v47, 23  ;;  %v1679_v16 = vshll.u32 %v6511_v28, 30  ;;  %v4769_v3 = vpop.eup %4768 }
 0x1b9   : > { %v1736_v41 = vshrl.u32 %v8499_v6, %v5897_v24  ;;  %v1508_v1 = vxor.u32 2147483648, %v4767_v40  ;;  %v1728_v22 = vor.u32 8388608, %v1727_v19  ;;  %v1739_v55 = vor.u32 %v1738_v23, %v1737_v10 }
 0x1ba   : > { %v1742_v48 = vor.u32 %v1741_v35, %v1740_v9  ;;  %v1505_v11 = vxor.u32 2147483648, %v4769_v3  ;;  %v1591_v32 = vor.u32 4788187, %v1590_v27  ;;  %v6523_v54 = vsub.s32 %v1676_v21, %v1679_v16 }
 0x1bb   : > { %vm1752_vm14 = vcmp.lt.s32.totalorder %v8583_v50, 1  ;;  %v1509_v20 = vsel %vm1507_vm5, %v1508_v1, %v4769_v3  ;;  %vm1753_vm6 = vcmp.lt.s32.totalorder %v8583_v50, 2  ;;  %vm1754_vm7 = vcmp.lt.s32.totalorder %v8583_v50, 3 }
 0x1bc   : > { %v1757_v24 = vsel %vm1755_vm15, %v1745_v46, 2102212464  ;;  %v1506_v15 = vsel %vm1504_vm13, %v4767_v40, %v1505_v11  ;;  %v1592_v43 = vand.u32 2147483647, %v1591_v32  ;;  %v1594_v59 = vcvt.s32.f32 %v1587_v31 }
 0x1bd   : > { %v1682_v21 = vsub.s32 0, %v6523_v54  ;;  %v1510_v62 = vsel %vm1503_vm8, %v1506_v15, %v1509_v20  ;;  %v1760_v5 = vsel %vm1752_vm14, %v1739_v55, %v1742_v48  ;;  %v1762_v38 = vsel %vm1754_vm7, %v1745_v46, %v1761_v34 }
 0x1be   : > { %v1764_v23 = vsel %vm1752_vm14, %v1742_v48, %v1745_v46  ;;  %v1511_v19 = vsel %vm1500_vm1, nan, %v1510_v62  ;;  %v1595_v35 = vmul.f32 %v1594_v59, %v1592_v43  ;;  %v1766_v60 = vsel %vm1754_vm7, %v6243_v0, %v6472_v57 }
 0x1bf   : > { %v4418_v18 = vmin.u32 %v1682_v21, %v6523_v54  ;;  %4562 = vmatmul.mubr.msk.f32.gmra.mrb[16].mxu0 %vm1939_vm9, %v1511_v19  ;;  %v1605_v2 = vadd.s32 3, %v1601_v58  ;;  %v1756_v34 = vsel %vm1752_vm14, %v1736_v41, %v1739_v55  ;;  %v1758_v49 = vsel %vm1754_vm7, %v1742_v48, %v1757_v24  ;;  %v8589_v58 = vld [vmem:[#allocation35_spill] sm:$0xff] }
 0x1c0   : > { %v1767_v26 = vsel %vm1753_vm6, %v1764_v23, %v1766_v60  ;;  %4564 = vmatprep.mubr.msk.f32.mxu0 %vm4954_vm0, %v8529_v37  ;;  %v1596_v51 = vxor.u32 2147483648, %v1595_v35  ;;  %v1763_v0 = vsel %vm1753_vm6, %v1760_v5, %v1762_v38  ;;  %v1768_v57 = vshll.u32 %v1728_v22, 8 }
 0x1c1   : > { %v1684_v63 = vclz %v4418_v18  ;;  %v1865_v47 = vsel %vm1859_vm12, %v6478_v7, 920167782  ;;  %v1824_v10 = vand.u32 2147483647, %v8589_v58  ;;  %v1759_v16 = vsel %vm1753_vm6, %v1756_v34, %v1758_v49 }
 0x1c2   : > { %v1597_v9 = vsel %vm1514_vm4, %v1596_v51, %v1595_v35  ;;  %v6567_v40 = vmul.u32.u64.low %v1768_v57, %v1767_v26  ;;  %v6568_v31 = vmul.u32.u64.high %v1768_v57, %v1767_v26, %v6567_v40  ;;  %v1869_v1 = vsel %vm1859_vm12, %v1855_v29, 1326507024 }
 0x1c3   : > { %v4419_v46 = vadd.s32 4294967294, %v1684_v63  ;;  %v1600_v27 = vsel %vm6486_vm10, %v8569_v30, %v1597_v9  ;;  %v6575_v41 = vmul.u32.u64.low %v1768_v57, %v1763_v0  ;;  %v6576_v3 = vmul.u32.u64.high %v1768_v57, %v1763_v0, %v6575_v41 }
 0x1c4   : > { %4770 = vcosq.f32 %v1600_v27  ;;  %v6584_v22 = vand.u32 3, %v1605_v2  ;;  %v1672_v4 = vadd.s32 %v6441_v25, %v6434_v52  ;;  %v1842_v55 = vshrl.u32 %v8497_v42, %v6261_v12 }
 0x1c5   : > { %vm4420_vm15 = vcmp.lt.s32.totalorder %v4419_v46, 0  ;;  %4772 = vsinq.f32 %v1600_v27  ;;  %v1775_v32 = vmul.u32 %v1768_v57, %v1759_v16  ;;  %v1831_v56 = vand.u32 8388607, %v1824_v10 }
 0x1c6   : > { %v1687_v50 = vsel %vm4420_vm15, 0, %v4419_v46  ;;  %vm1777_vm2 = vc.u32 %v6568_v31, %v6575_v41  ;;  %v1778_v29 = vadd.s32 1, %v6576_v3  ;;  %v1841_v52 = vshll.u32 %v8499_v6, %v6234_v33 }
 0x1c7   : > { %v1688_v48 = vsub.s32 32, %v1687_v50  ;;  %v1692_v11 = vsub.s32 4294967266, %v1687_v50  ;;  %v1689_v36 = vshll.u32 %v6523_v54, %v1687_v50  ;;  %vm1611_vm11 = vcmp.eq.s32.totalorder %v6584_v22, 2 }
 0x1c8   : > { %v1844_v24 = vshll.u32 %v8497_v42, %v6234_v33  ;;  %v1845_v15 = vshrl.u32 %v8502_v44, %v6261_v12  ;;  %vm1608_vm10 = vcmp.eq.s32.totalorder %v6584_v22, 0  ;;  %v1779_v54 = vsel %vm1777_vm2, %v1778_v29, %v6576_v3 }
 0x1c9   : > { %v1690_v25 = vshrl.u32 %v1672_v4, %v1688_v48  ;;  %v1693_v20 = vadd.s32 127, %v1692_v11  ;;  %v1843_v43 = vor.u32 %v1842_v55, %v1841_v52  ;;  %v1847_v59 = vshll.u32 %v8502_v44, %v6234_v33 }
 0x1ca   : > { %v1848_v21 = vshrl.u32 %v8479_v53, %v6261_v12  ;;  %vm1607_vm4 = vcmp.lt.s32.totalorder %v6584_v22, 2  ;;  %vm1618_vm3 = vcmp.lt.s32.totalorder %v8577_v17, 0  ;;  %v1780_v38 = vadd.s32 %v1779_v54, %v1775_v32 }
 0x1cb   : > { %v1691_v62 = vor.u32 %v1690_v25, %v1689_v36  ;;  %v1694_v5 = vshll.u32 %v1693_v20, 23  ;;  %v1846_v23 = vor.u32 %v1845_v15, %v1844_v24  ;;  %vm1604_vm13 = vweird.f32 %v8569_v30 }
 0x1cc   : > { %v1702_v19 = vsub.s32 4, %v6511_v28  ;;  %v1832_v35 = vor.u32 8388608, %v1831_v56  ;;  %v1840_v18 = vshrl.u32 %v8499_v6, %v6261_v12  ;;  %v1849_v33 = vor.u32 %v1848_v21, %v1847_v59 }
 0x1cd   : > { %v1695_v60 = vor.u32 4788187, %v1694_v5  ;;  %v1781_v2 = vadd.s32 536870912, %v1780_v38  ;;  %vm1856_vm5 = vcmp.lt.s32.totalorder %v6057_v8, 1  ;;  %vm1858_vm8 = vcmp.lt.s32.totalorder %v6057_v8, 3 }
 0x1ce   : > { %v1864_v34 = vsel %vm1856_vm5, %v1843_v43, %v1846_v23  ;;  %v1866_v49 = vsel %vm1858_vm8, %v1849_v33, %v1865_v47  ;;  %v1868_v26 = vsel %vm1856_vm5, %v1846_v23, %v1849_v33  ;;  %v1870_v12 = vsel %vm1858_vm8, %v6478_v7, %v1869_v1  ;;  %v4771_v51 = vpop.eup %4770 }
 0x1cf   : > { %v1696_v63 = vand.u32 2147483647, %v1695_v60  ;;  %v1698_v0 = vcvt.s32.f32 %v1691_v62  ;;  %v6626_v57 = vshrl.u32 %v1781_v2, 30  ;;  %vm1857_vm1 = vcmp.lt.s32.totalorder %v6057_v8, 2  ;;  %v4773_v9 = vpop.eup %4772 }
 0x1d0   : > { %v1612_v46 = vxor.u32 2147483648, %v4771_v51  ;;  %v1861_v40 = vsel %vm1859_vm12, %v1849_v33, 2102212464  ;;  %v1871_v47 = vsel %vm1857_vm1, %v1868_v26, %v1870_v12  ;;  %v1872_v27 = vshll.u32 %v1832_v35, 8 }
 0x1d1   : > { %v1609_v16 = vxor.u32 2147483648, %v4773_v9  ;;  %v1699_v3 = vmul.f32 %v1698_v0, %v1696_v63  ;;  %v1783_v7 = vshll.u32 %v6626_v57, 30  ;;  %v1867_v1 = vsel %vm1857_vm1, %v1864_v34, %v1866_v49 }
 0x1d2   : > { %v1613_v4 = vsel %vm1611_vm11, %v1612_v46, %v4773_v9  ;;  %v1860_v50 = vsel %vm1856_vm5, %v1840_v18, %v1843_v43  ;;  %v6640_v55 = vmul.u32.u64.low %v1872_v27, %v1871_v47  ;;  %v6641_v48 = vmul.u32.u64.high %v1872_v27, %v1871_v47, %v6640_v55 }
 0x1d3   : > { %v1610_v11 = vsel %vm1608_vm10, %v4771_v51, %v1609_v16  ;;  %v1700_v32 = vxor.u32 2147483648, %v1699_v3  ;;  %v1784_v56 = vsub.s32 %v1780_v38, %v1783_v7  ;;  %v1862_v36 = vsel %vm1858_vm8, %v1846_v23, %v1861_v40 }
 0x1d4   : > { %v1614_v29 = vsel %vm1607_vm4, %v1610_v11, %v1613_v4  ;;  %v1703_v52 = vsel %vm1618_vm3, %v1702_v19, %v6511_v28  ;;  %v6652_v25 = vmul.u32.u64.low %v1872_v27, %v1867_v1  ;;  %v6653_v20 = vmul.u32.u64.high %v1872_v27, %v1867_v1, %v6652_v25 }
 0x1d5   : > { %v1615_v24 = vsel %vm1604_vm13, nan, %v1614_v29  ;;  %vm6660_vm12 = vcmp.le.f32.partialorder %v1616_v61, 0.7853982  ;;  %v1701_v22 = vsel %vm1618_vm3, %v1700_v32, %v1699_v3  ;;  %v1786_v54 = vsub.s32 0, %v1784_v56 }
 0x1d6   : > { %4565 = vmatmul.mubr.msk.f32.gmra.mrb[18].mxu0 %vm1939_vm9, %v1615_v24  ;;  %v1704_v28 = vsel %vm6660_vm12, %v8577_v17, %v1701_v22  ;;  %v1863_v30 = vsel %vm1857_vm1, %v1860_v50, %v1862_v36  ;;  %v1705_v61 = vsel %vm6660_vm12, 0, %v1703_v52  ;;  %vm1881_vm14 = vc.u32 %v6641_v48, %v6652_v25 }
 0x1d7   : > { %4567 = vmatprep.mubr.msk.f32.mxu0 %vm4954_vm0, %v8529_v37  ;;  %4774 = vcosq.f32 %v1704_v28  ;;  %v4422_v43 = vmin.u32 %v1786_v54, %v1784_v56  ;;  %v1882_v59 = vadd.s32 1, %v6653_v20  ;;  %v1879_v62 = vmul.u32 %v1872_v27, %v1863_v30 }
 0x1d8   : > { %4776 = vsinq.f32 %v1704_v28  ;;  %v1709_v5 = vadd.s32 3, %v1705_v61  ;;  %v1776_v33 = vadd.s32 %v6575_v41, %v6568_v31  ;;  %vm1708_vm11 = vweird.f32 %v8577_v17 }
 0x1d9   : > { %v1788_v21 = vclz %v4422_v43  ;;  %v1883_v8 = vsel %vm1881_vm14, %v1882_v59, %v6653_v20  ;;  %v1806_v32 = vsub.s32 4, %v6626_v57  ;;  %vm1722_vm10 = vcmp.lt.s32.totalorder %v8585_v14, 0 }
 0x1da   : > { %v1884_v23 = vadd.s32 %v1883_v8, %v1879_v62  ;;  %v1710_v35 = vand.u32 3, %v1709_v5  ;;  %vm1721_vm4 = vcmp.le.f32.partialorder %v1720_v45, 0.7853982  ;;  %v1880_v15 = vadd.s32 %v6652_v25, %v6641_v48 }
 0x1db   : > { %v4423_v38 = vadd.s32 4294967294, %v1788_v21  ;;  %v1807_v52 = vsel %vm1722_vm10, %v1806_v32, %v6626_v57  ;;  %vm6700_vm8 = vcmp.le.f32.partialorder %v1824_v10, 0.7853982  ;;  %vm1826_vm1 = vcmp.lt.s32.totalorder %v8589_v58, 0 }
 0x1dc   : > { %v1885_v19 = vadd.s32 536870912, %v1884_v23  ;;  %vm1715_vm7 = vcmp.eq.s32.totalorder %v1710_v35, 2  ;;  %vm1712_vm15 = vcmp.eq.s32.totalorder %v1710_v35, 0  ;;  %vm1711_vm2 = vcmp.lt.s32.totalorder %v1710_v35, 2 }
 0x1dd   : > { %vm4424_vm6 = vcmp.lt.s32.totalorder %v4423_v38, 0  ;;  %v1809_v28 = vsel %vm1721_vm4, 0, %v1807_v52  ;;  %vm1812_vm14 = vweird.f32 %v8585_v14 }
 0x1de   : > { %v1791_v18 = vsel %vm4424_vm6, 0, %v4423_v38  ;;  %v6682_v34 = vshrl.u32 %v1885_v19, 30  ;;  %v1813_v59 = vadd.s32 3, %v1809_v28 }
 0x1df   : > { %v1792_v60 = vsub.s32 32, %v1791_v18  ;;  %v1796_v2 = vsub.s32 4294967266, %v1791_v18  ;;  %v1793_v26 = vshll.u32 %v1784_v56, %v1791_v18 }
 0x1e0   : > { %v1887_v63 = vshll.u32 %v6682_v34, 30  ;;  %v1814_v57 = vand.u32 3, %v1813_v59  ;;  %v1910_v19 = vsub.s32 4, %v6682_v34 }
 0x1e1   : > { %v4775_v49 = vpop.eup %4774  ;;  %v1794_v12 = vshrl.u32 %v1776_v33, %v1792_v60  ;;  %v1797_v51 = vadd.s32 127, %v1796_v2 }
 0x1e2   : > { %v4777_v0 = vpop.eup %4776  ;;  %v1716_v9 = vxor.u32 2147483648, %v4775_v49  ;;  %v1888_v27 = vsub.s32 %v1884_v23, %v1887_v63  ;;  %vm1819_vm13 = vcmp.eq.s32.totalorder %v1814_v57, 2  ;;  %vm1816_vm5 = vcmp.eq.s32.totalorder %v1814_v57, 0 }
 0x1e3   : > { %v1713_v46 = vxor.u32 2147483648, %v4777_v0  ;;  %v1795_v40 = vor.u32 %v1794_v12, %v1793_v26  ;;  %v1798_v47 = vshll.u32 %v1797_v51, 23  ;;  %vm1815_vm12 = vcmp.lt.s32.totalorder %v1814_v57, 2  ;;  %v6709_v12 = vld [vmem:[%s8324_s4] ss:$0 sm:$0xff] }
 0x1e4   : > { %v1717_v16 = vsel %vm1715_vm7, %v1716_v9, %v4777_v0  ;;  %v1890_v3 = vsub.s32 0, %v1888_v27  ;;  %v1911_v26 = vsel %vm1826_vm1, %v1910_v19, %v6682_v34 }
 0x1e5   : > { %v1714_v31 = vsel %vm1712_vm15, %v4775_v49, %v1713_v46  ;;  %v1799_v41 = vor.u32 4788187, %v1798_v47  ;;  %v1802_v50 = vcvt.s32.f32 %v1795_v40  ;;  %v1913_v34 = vsel %vm6700_vm8, 0, %v1911_v26 }
 0x1e6   : > { %v1718_v7 = vsel %vm1711_vm2, %v1714_v31, %v1717_v16  ;;  %v4426_v55 = vmin.u32 %v1890_v3, %v1888_v27  ;;  %v1917_v47 = vadd.s32 3, %v1913_v34  ;;  %vm1916_vm15 = vweird.f32 %v8589_v58 }
 0x1e7   : > { %v1719_v1 = vsel %vm1708_vm11, nan, %v1718_v7  ;;  %v1800_v4 = vand.u32 2147483647, %v1799_v41 }
 0x1e8   : > { %4568 = vmatmul.mubr.msk.f32.gmra.mrb[20].mxu0 %vm1939_vm9, %v1719_v1  ;;  %v1892_v56 = vclz %v4426_v55  ;;  %v1918_v41 = vand.u32 3, %v1917_v47 }
 0x1e9   : > { %4570 = vmatprep.mubr.msk.f32.mxu0 %vm4954_vm0, %v8529_v37  ;;  %v1803_v11 = vmul.f32 %v1802_v50, %v1800_v4 }
 0x1ea   : > { %v4427_v29 = vadd.s32 4294967294, %v1892_v56  ;;  %vm1920_vm7 = vcmp.eq.s32.totalorder %v1918_v41, 0  ;;  %vm1919_vm2 = vcmp.lt.s32.totalorder %v1918_v41, 2 }
 0x1eb   : > { %v1804_v36 = vxor.u32 2147483648, %v1803_v11 }
 0x1ec   : > { %vm4428_vm3 = vcmp.lt.s32.totalorder %v4427_v29, 0 }
 0x1ed   : > { %v1805_v17 = vsel %vm1722_vm10, %v1804_v36, %v1803_v11  ;;  %v1895_v24 = vsel %vm4428_vm3, 0, %v4427_v29 }
 0x1ee   : > { %v1808_v20 = vsel %vm1721_vm4, %v8585_v14, %v1805_v17  ;;  %v1896_v22 = vsub.s32 32, %v1895_v24  ;;  %v1900_v54 = vsub.s32 4294967266, %v1895_v24  ;;  %v1897_v30 = vshll.u32 %v1888_v27, %v1895_v24 }
 0x1ef   : > { %4778 = vcosq.f32 %v1808_v20 }
 0x1f0   : > { %4780 = vsinq.f32 %v1808_v20  ;;  %v1898_v61 = vshrl.u32 %v1880_v15, %v1896_v22  ;;  %v1901_v43 = vadd.s32 127, %v1900_v54 }
 0x1f2   : > { %v1899_v45 = vor.u32 %v1898_v61, %v1897_v30  ;;  %v1902_v21 = vshll.u32 %v1901_v43, 23 }
 0x1f4   : > { %v1903_v62 = vor.u32 4788187, %v1902_v21  ;;  %v1906_v8 = vcvt.s32.f32 %v1899_v45 }
 0x1f5   : > { %v2045_v0 = vpop.f32.mrb[0].mxu0 }
 0x1f6   : > { %v1904_v5 = vand.u32 2147483647, %v1903_v62  ;;  %v6719_v9 = vadd.f32 %v6709_v12, %v2045_v0  ;;  %v4539_v46 = vpop.f32.mrb[1].mxu0 }
 0x1f8   : > { %v1907_v23 = vmul.f32 %v1906_v8, %v1904_v5  ;;  %v2109_v14 = vand.u32 2147483647, %v6719_v9  ;;  %v2112_v40 = vand.u32 2139095040, %v6719_v9 }
 0x1f9   : > { %v4779_v38 = vpop.eup %4778 }
 0x1fa   : > { %v4781_v35 = vpop.eup %4780  ;;  %v1820_v48 = vxor.u32 2147483648, %v4779_v38  ;;  %v1908_v18 = vxor.u32 2147483648, %v1907_v23  ;;  %v2113_v27 = vshrl.u32 %v2112_v40, 23  ;;  %v2116_v16 = vand.u32 8388607, %v2109_v14 }
 0x1fb   : > { %v1817_v25 = vxor.u32 2147483648, %v4781_v35 }
 0x1fc   : > { %v1821_v33 = vsel %vm1819_vm13, %v1820_v48, %v4781_v35  ;;  %v1909_v49 = vsel %vm1826_vm1, %v1908_v18, %v1907_v23  ;;  %v4443_v31 = vadd.s32 4294967169, %v2113_v27  ;;  %v2117_v1 = vor.u32 8388608, %v2116_v16 }
 0x1fd   : > { %v1818_v2 = vsel %vm1816_vm5, %v4779_v38, %v1817_v25  ;;  %v1912_v10 = vsel %vm6700_vm8, %v8589_v58, %v1909_v49 }
 0x1fe   : > { %v1822_v51 = vsel %vm1815_vm12, %v1818_v2, %v1821_v33  ;;  %4782 = vcosq.f32 %v1912_v10  ;;  %v2119_v3 = vadd.s32 1, %v4443_v31  ;;  %v2157_v20 = vshll.u32 %v2117_v1, 8 }
 0x1ff   : > { %v1823_v63 = vsel %vm1812_vm14, nan, %v1822_v51  ;;  %4784 = vsinq.f32 %v1912_v10 }
 0x200   : > { %4571 = vmatmul.mubr.msk.f32.gmra.mrb[22].mxu0 %vm1939_vm9, %v1823_v63  ;;  %vm2120_vm6 = vcmp.gt.s32.totalorder %v2119_v3, 0 }
 0x201   : > { %4573 = vmatprep.mubr.msk.f32.mxu0 %vm4954_vm0, %v8529_v37  ;;  %v2050_v55 = vpop.f32.mrb[2].mxu0  ;;  %vm1923_vm0 = vcmp.eq.s32.totalorder %v1918_v41, 2  ;;  %v2121_v32 = vsel %vm2120_vm6, %v2119_v3, 0 }
 0x202   : > { %v6728_v56 = vadd.f32 %v6709_v12, %v2050_v55  ;;  %v4542_v36 = vpop.f32.mrb[3].mxu0  ;;  %v2123_v17 = vand.u32 31, %v2121_v32  ;;  %v2122_v15 = vshrl.u32 %v2121_v32, 5 }
 0x204   : > { %v2124_v22 = vsub.s32 32, %v2123_v17  ;;  %v2213_v54 = vand.u32 2147483647, %v6728_v56  ;;  %v2126_v30 = vshll.u32 %v8499_v6, %v2123_v17  ;;  %v2129_v61 = vshll.u32 %v8497_v42, %v2123_v17 }
 0x205   : > { %v2216_v43 = vand.u32 2139095040, %v6728_v56  ;;  %v2132_v45 = vshll.u32 %v8502_v44, %v2123_v17  ;;  %v2135_v62 = vshll.u32 %v8479_v53, %v2123_v17  ;;  %v2138_v5 = vshll.u32 %v8496_v13, %v2123_v17 }
 0x206   : > { %v2127_v59 = vshrl.u32 %v8497_v42, %v2124_v22  ;;  %v2130_v58 = vshrl.u32 %v8502_v44, %v2124_v22  ;;  %v2133_v21 = vshrl.u32 %v8479_v53, %v2124_v22  ;;  %v2136_v57 = vshrl.u32 %v8496_v13, %v2124_v22 }
 0x207   : > { %v2139_v8 = vshrl.u32 %v8478_v39, %v2124_v22  ;;  %v2125_v38 = vshrl.u32 %v8499_v6, %v2124_v22  ;;  %vm2141_vm11 = vcmp.lt.s32.totalorder %v2122_v15, 1  ;;  %vm2144_vm10 = vcmp.lt.s32.totalorder %v2122_v15, 4 }
 0x208   : > { %v4783_v7 = vpop.eup %4782  ;;  %v2128_v23 = vor.u32 %v2127_v59, %v2126_v30  ;;  %v2131_v19 = vor.u32 %v2130_v58, %v2129_v61  ;;  %v2134_v35 = vor.u32 %v2133_v21, %v2132_v45  ;;  %v2137_v48 = vor.u32 %v2136_v57, %v2135_v62 }
 0x209   : > { %v4785_v4 = vpop.eup %4784  ;;  %v1924_v50 = vxor.u32 2147483648, %v4783_v7  ;;  %v2140_v25 = vor.u32 %v2139_v8, %v2138_v5  ;;  %vm2142_vm4 = vcmp.lt.s32.totalorder %v2122_v15, 2  ;;  %vm2143_vm3 = vcmp.lt.s32.totalorder %v2122_v15, 3 }
 0x20a   : > { %v1921_v11 = vxor.u32 2147483648, %v4785_v4  ;;  %v2146_v18 = vsel %vm2144_vm10, %v2134_v35, 2102212464  ;;  %v2149_v33 = vsel %vm2141_vm11, %v2128_v23, %v2131_v19  ;;  %v2153_v60 = vsel %vm2141_vm11, %v2131_v19, %v2134_v35 }
 0x20b   : > { %v1925_v29 = vsel %vm1923_vm0, %v1924_v50, %v4785_v4  ;;  %v2150_v2 = vsel %vm2144_vm10, %v2137_v48, 920167782  ;;  %v2154_v49 = vsel %vm2144_vm10, %v2140_v25, 1326507024  ;;  %v2217_v26 = vshrl.u32 %v2216_v43, 23 }
 0x20c   : > { %v1922_v52 = vsel %vm1920_vm7, %v4783_v7, %v1921_v11  ;;  %v2145_v51 = vsel %vm2141_vm11, %v2125_v38, %v2128_v23  ;;  %v2147_v10 = vsel %vm2143_vm3, %v2131_v19, %v2146_v18  ;;  %v2151_v63 = vsel %vm2143_vm3, %v2134_v35, %v2150_v2 }
 0x20d   : > { %v1926_v24 = vsel %vm1919_vm2, %v1922_v52, %v1925_v29  ;;  %v2155_v0 = vsel %vm2143_vm3, %v2137_v48, %v2154_v49  ;;  %v2152_v34 = vsel %vm2142_vm4, %v2149_v33, %v2151_v63  ;;  %v4447_v40 = vadd.s32 4294967169, %v2217_v26 }
 0x20e   : > { %v1927_v28 = vsel %vm1916_vm15, nan, %v1926_v24  ;;  %v2156_v46 = vsel %vm2142_vm4, %v2153_v60, %v2155_v0  ;;  %v2220_v47 = vand.u32 8388607, %v2213_v54  ;;  %v2148_v1 = vsel %vm2142_vm4, %v2145_v51, %v2147_v10 }
 0x20f   : > { %4574 = vmatmul.mubr.msk.f32.gmra.mrb[24].mxu0 %vm1939_vm9, %v1927_v28  ;;  %v6749_v27 = vmul.u32.u64.low %v2157_v20, %v2156_v46  ;;  %v6750_v16 = vmul.u32.u64.high %v2157_v20, %v2156_v46, %v6749_v27  ;;  %v6752_v31 = vmul.u32.u64.low %v2157_v20, %v2152_v34  ;;  %v6753_v41 = vmul.u32.u64.high %v2157_v20, %v2152_v34, %v6752_v31 }
 0x210   : > { %v2223_v3 = vadd.s32 1, %v4447_v40  ;;  %v2221_v50 = vor.u32 8388608, %v2220_v47  ;;  %v2164_v36 = vmul.u32 %v2157_v20, %v2148_v1 }
 0x211   : > { %v2055_v7 = vpop.f32.mrb[4].mxu0  ;;  %vm2166_vm5 = vc.u32 %v6750_v16, %v6752_v31  ;;  %v2167_v55 = vadd.s32 1, %v6753_v41 }
 0x212   : > { %v4545_v4 = vpop.f32.mrb[5].mxu0  ;;  %vm2224_vm13 = vcmp.gt.s32.totalorder %v2223_v3, 0  ;;  %v6761_v32 = vadd.f32 %v6709_v12, %v2055_v7  ;;  %v2261_v22 = vshll.u32 %v2221_v50, 8 }
 0x213   : > { %v2225_v11 = vsel %vm2224_vm13, %v2223_v3, 0  ;;  %v2168_v17 = vsel %vm2166_vm5, %v2167_v55, %v6753_v41 }
 0x214   : > { %v2227_v29 = vand.u32 31, %v2225_v11  ;;  %v2169_v52 = vadd.s32 %v2168_v17, %v2164_v36  ;;  %v2226_v24 = vshrl.u32 %v2225_v11, 5  ;;  %v2320_v43 = vand.u32 2139095040, %v6761_v32 }
 0x215   : > { %v2317_v11 = vand.u32 2147483647, %v6761_v32 }
 0x216   : > { %v2228_v15 = vsub.s32 32, %v2227_v29  ;;  %v2230_v28 = vshll.u32 %v8499_v6, %v2227_v29  ;;  %v2233_v30 = vshll.u32 %v8497_v42, %v2227_v29  ;;  %v2236_v61 = vshll.u32 %v8502_v44, %v2227_v29 }
 0x217   : > { %v2170_v59 = vadd.s32 536870912, %v2169_v52  ;;  %v2239_v45 = vshll.u32 %v8479_v53, %v2227_v29  ;;  %v2242_v57 = vshll.u32 %v8496_v13, %v2227_v29  ;;  %vm2245_vm8 = vcmp.lt.s32.totalorder %v2226_v24, 1 }
 0x218   : > { %v2231_v58 = vshrl.u32 %v8497_v42, %v2228_v15  ;;  %v2234_v20 = vshrl.u32 %v8502_v44, %v2228_v15  ;;  %v2237_v21 = vshrl.u32 %v8479_v53, %v2228_v15  ;;  %v2240_v62 = vshrl.u32 %v8496_v13, %v2228_v15 }
 0x219   : > { %v2243_v5 = vshrl.u32 %v8478_v39, %v2228_v15  ;;  %v6775_v8 = vshrl.u32 %v2170_v59, 30  ;;  %v2229_v19 = vshrl.u32 %v8499_v6, %v2228_v15  ;;  %vm2247_vm1 = vcmp.lt.s32.totalorder %v2226_v24, 3 }
 0x21a   : > { %v2232_v38 = vor.u32 %v2231_v58, %v2230_v28  ;;  %v2235_v23 = vor.u32 %v2234_v20, %v2233_v30  ;;  %v2238_v35 = vor.u32 %v2237_v21, %v2236_v61  ;;  %v2241_v48 = vor.u32 %v2240_v62, %v2239_v45 }
 0x21b   : > { %v2244_v25 = vor.u32 %v2243_v5, %v2242_v57  ;;  %v2172_v18 = vshll.u32 %v6775_v8, 30  ;;  %vm2248_vm12 = vcmp.lt.s32.totalorder %v2226_v24, 4  ;;  %vm2246_vm14 = vcmp.lt.s32.totalorder %v2226_v24, 2 }
 0x21c   : > { %v2253_v33 = vsel %vm2245_vm8, %v2232_v38, %v2235_v23  ;;  %v2250_v60 = vsel %vm2248_vm12, %v2238_v35, 2102212464  ;;  %v2254_v2 = vsel %vm2248_vm12, %v2241_v48, 920167782  ;;  %v2257_v49 = vsel %vm2245_vm8, %v2235_v23, %v2238_v35 }
 0x21d   : > { %v2258_v26 = vsel %vm2248_vm12, %v2244_v25, 1326507024  ;;  %v6781_v51 = vsub.s32 %v2169_v52, %v2172_v18  ;;  %v2255_v10 = vsel %vm2247_vm1, %v2238_v35, %v2254_v2  ;;  %v2249_v0 = vsel %vm2245_vm8, %v2229_v19, %v2232_v38 }
 0x21e   : > { %v2259_v63 = vsel %vm2247_vm1, %v2241_v48, %v2258_v26  ;;  %v2256_v34 = vsel %vm2246_vm14, %v2253_v33, %v2255_v10  ;;  %v2321_v40 = vshrl.u32 %v2320_v43, 23  ;;  %v2251_v27 = vsel %vm2247_vm1, %v2235_v23, %v2250_v60 }
 0x21f   : > { %v2260_v46 = vsel %vm2246_vm14, %v2257_v49, %v2259_v63  ;;  %v2175_v47 = vsub.s32 0, %v6781_v51  ;;  %v6791_v7 = vmul.u32.u64.low %v2261_v22, %v2256_v34  ;;  %v6792_v1 = vmul.u32.u64.high %v2261_v22, %v2256_v34, %v6791_v7 }
 0x220   : > { %v6788_v41 = vmul.u32.u64.low %v2261_v22, %v2260_v46  ;;  %v6789_v3 = vmul.u32.u64.high %v2261_v22, %v2260_v46, %v6788_v41  ;;  %v4451_v4 = vadd.s32 4294967169, %v2321_v40  ;;  %v2252_v55 = vsel %vm2246_vm14, %v2249_v0, %v2251_v27 }
 0x221   : > { %v4444_v50 = vmin.u32 %v2175_v47, %v6781_v51  ;;  %v2271_v29 = vadd.s32 1, %v6792_v1  ;;  %v2268_v52 = vmul.u32 %v2261_v22, %v2252_v55  ;;  %v2324_v28 = vand.u32 8388607, %v2317_v11 }
 0x222   : > { %v2327_v36 = vadd.s32 1, %v4451_v4  ;;  %vm2270_vm6 = vc.u32 %v6789_v3, %v6791_v7 }
 0x223   : > { %v2177_v17 = vclz %v4444_v50  ;;  %v2272_v15 = vsel %vm2270_vm6, %v2271_v29, %v6792_v1  ;;  %v2325_v21 = vor.u32 8388608, %v2324_v28 }
 0x224   : > { %vm2328_vm0 = vcmp.gt.s32.totalorder %v2327_v36, 0  ;;  %v2273_v61 = vadd.s32 %v2272_v15, %v2268_v52 }
 0x225   : > { %v2329_v24 = vsel %vm2328_vm0, %v2327_v36, 0  ;;  %v4445_v20 = vadd.s32 4294967294, %v2177_v17  ;;  %v2365_v46 = vshll.u32 %v2325_v21, 8 }
 0x226   : > { %v2331_v30 = vand.u32 31, %v2329_v24  ;;  %v2274_v45 = vadd.s32 536870912, %v2273_v61  ;;  %v2330_v19 = vshrl.u32 %v2329_v24, 5 }
 0x227   : > { %vm4446_vm7 = vcmp.lt.s32.totalorder %v4445_v20, 0 }
 0x228   : > { %v2332_v59 = vsub.s32 32, %v2331_v30  ;;  %v6805_v5 = vshrl.u32 %v2274_v45, 30  ;;  %v2334_v22 = vshll.u32 %v8499_v6, %v2331_v30  ;;  %v2337_v38 = vshll.u32 %v8497_v42, %v2331_v30 }
 0x229   : > { %v2340_v35 = vshll.u32 %v8502_v44, %v2331_v30  ;;  %v2343_v48 = vshll.u32 %v8479_v53, %v2331_v30  ;;  %v2346_v26 = vshll.u32 %v8496_v13, %v2331_v30  ;;  %v2180_v0 = vsel %vm4446_vm7, 0, %v4445_v20 }
 0x22a   : > { %v2335_v62 = vshrl.u32 %v8497_v42, %v2332_v59  ;;  %v2338_v57 = vshrl.u32 %v8502_v44, %v2332_v59  ;;  %v2341_v23 = vshrl.u32 %v8479_v53, %v2332_v59  ;;  %v2344_v25 = vshrl.u32 %v8496_v13, %v2332_v59 }
 0x22b   : > { %v2060_v43 = vpop.f32.mrb[6].mxu0  ;;  %v2276_v18 = vshll.u32 %v6805_v5, 30  ;;  %v2347_v10 = vshrl.u32 %v8478_v39, %v2332_v59  ;;  %vm2349_vm15 = vcmp.lt.s32.totalorder %v2330_v19, 1  ;;  %vm2351_vm2 = vcmp.lt.s32.totalorder %v2330_v19, 3 }
 0x22c   : > { %v4548_v58 = vpop.f32.mrb[7].mxu0  ;;  %v2336_v33 = vor.u32 %v2335_v62, %v2334_v22  ;;  %v2339_v60 = vor.u32 %v2338_v57, %v2337_v38  ;;  %v2342_v2 = vor.u32 %v2341_v23, %v2340_v35  ;;  %v2345_v49 = vor.u32 %v2344_v25, %v2343_v48 }
 0x22d   : > { %v6816_v63 = vsub.s32 %v2273_v61, %v2276_v18  ;;  %v2348_v34 = vor.u32 %v2347_v10, %v2346_v26  ;;  %vm2352_vm11 = vcmp.lt.s32.totalorder %v2330_v19, 4  ;;  %v2333_v55 = vshrl.u32 %v8499_v6, %v2332_v59 }
 0x22e   : > { %v2357_v47 = vsel %vm2349_vm15, %v2336_v33, %v2339_v60  ;;  %v2354_v27 = vsel %vm2352_vm11, %v2342_v2, 2102212464  ;;  %v2358_v41 = vsel %vm2352_vm11, %v2345_v49, 920167782  ;;  %v2361_v1 = vsel %vm2349_vm15, %v2339_v60, %v2342_v2 }
 0x22f   : > { %v2279_v40 = vsub.s32 0, %v6816_v63  ;;  %v2362_v4 = vsel %vm2352_vm11, %v2348_v34, 1326507024  ;;  %vm2350_vm10 = vcmp.lt.s32.totalorder %v2330_v19, 2  ;;  %v2359_v36 = vsel %vm2351_vm2, %v2342_v2, %v2358_v41 }
 0x230   : > { %v2185_v29 = vsub.s32 4294967266, %v2180_v0  ;;  %v2360_v17 = vsel %vm2350_vm10, %v2357_v47, %v2359_v36  ;;  %v2363_v52 = vsel %vm2351_vm2, %v2345_v49, %v2362_v4  ;;  %v6827_v24 = vadd.f32 %v6709_v12, %v2060_v43 }
 0x231   : > { %v4448_v50 = vmin.u32 %v2279_v40, %v6816_v63  ;;  %v2353_v28 = vsel %vm2349_vm15, %v2333_v55, %v2336_v33  ;;  %v2355_v30 = vsel %vm2351_vm2, %v2339_v60, %v2354_v27  ;;  %v2364_v61 = vsel %vm2350_vm10, %v2361_v1, %v2363_v52 }
 0x232   : > { %8594 = vst [vmem:[#allocation26_spill] sm:$0xff] %v6827_v24  ;;  %v6832_v58 = vmul.u32.u64.low %v2365_v46, %v2364_v61  ;;  %v6833_v59 = vmul.u32.u64.high %v2365_v46, %v2364_v61, %v6832_v58  ;;  %v6835_v20 = vmul.u32.u64.low %v2365_v46, %v2360_v17  ;;  %v6836_v45 = vmul.u32.u64.high %v2365_v46, %v2360_v17, %v6835_v20 }
 0x233   : > { %v2281_v15 = vclz %v4448_v50  ;;  %v2181_v62 = vsub.s32 32, %v2180_v0  ;;  %v2424_v57 = vand.u32 2139095040, %v6827_v24  ;;  %v2186_v43 = vadd.s32 127, %v2185_v29 }
 0x234   : > { %v2356_v22 = vsel %vm2350_vm10, %v2353_v28, %v2355_v30  ;;  %v2421_v38 = vand.u32 2147483647, %v6827_v24  ;;  %v2165_v23 = vadd.s32 %v6752_v31, %v6750_v16  ;;  %vm2374_vm4 = vc.u32 %v6833_v59, %v6835_v20 }
 0x235   : > { %v4449_v21 = vadd.s32 4294967294, %v2281_v15  ;;  %v2375_v35 = vadd.s32 1, %v6836_v45  ;;  %v2372_v25 = vmul.u32 %v2365_v46, %v2356_v22  ;;  %v2425_v18 = vshrl.u32 %v2424_v57, 23 }
 0x236   : > { %v2183_v48 = vshrl.u32 %v2165_v23, %v2181_v62  ;;  %v2182_v33 = vshll.u32 %v6781_v51, %v2180_v0  ;;  %v2187_v60 = vshll.u32 %v2186_v43, 23  ;;  %v2428_v2 = vand.u32 8388607, %v2421_v38 }
 0x237   : > { %vm4450_vm3 = vcmp.lt.s32.totalorder %v4449_v21, 0  ;;  %v2376_v19 = vsel %vm2374_vm4, %v2375_v35, %v6836_v45  ;;  %v4455_v31 = vadd.s32 4294967169, %v2425_v18  ;;  %v2269_v50 = vadd.s32 %v6791_v7, %v6789_v3 }
 0x238   : > { %v6851_v26 = vsel %vm4450_vm3, 0, %v4449_v21  ;;  %v2377_v16 = vadd.s32 %v2376_v19, %v2372_v25  ;;  %v6856_v40 = vor.u32 %v2183_v48, %v2182_v33  ;;  %v6858_v51 = vor.u32 4788187, %v2187_v60 }
 0x239   : > { %v2431_v47 = vadd.s32 1, %v4455_v31  ;;  %v2285_v0 = vsub.s32 32, %v6851_v26  ;;  %v2289_v27 = vsub.s32 4294967266, %v6851_v26  ;;  %v2429_v1 = vor.u32 8388608, %v2428_v2 }
 0x23a   : > { %v2378_v46 = vadd.s32 536870912, %v2377_v16  ;;  %v2191_v36 = vcvt.s32.f32 %v6856_v40  ;;  %v2189_v52 = vand.u32 2147483647, %v6858_v51  ;;  %v2286_v15 = vshll.u32 %v6816_v63, %v6851_v26 }
 0x23b   : > { %vm2432_vm13 = vcmp.gt.s32.totalorder %v2431_v47, 0  ;;  %v2287_v28 = vshrl.u32 %v2269_v50, %v2285_v0  ;;  %v2290_v30 = vadd.s32 127, %v2289_v27  ;;  %v6874_v45 = vshll.u32 %v2429_v1, 8 }
 0x23c   : > { %v6862_v41 = vshrl.u32 %v2378_v46, 30  ;;  %v2433_v55 = vsel %vm2432_vm13, %v2431_v47, 0  ;;  %vm2111_vm7 = vcmp.lt.s32.totalorder %v6719_v9, 0  ;;  %vm6966_vm4 = vcmp.le.f32.partialorder %v2109_v14, 0.7853982 }
 0x23d   : > { %v2435_v17 = vand.u32 31, %v2433_v55  ;;  %v2434_v3 = vshrl.u32 %v2433_v55, 5  ;;  %v2291_v33 = vshll.u32 %v2290_v30, 23  ;;  %vm8447_vm13 = vcmp.lt.s32.totalorder %v6728_v56, 0 }
 0x23e   : > { %v2380_v29 = vshll.u32 %v6862_v41, 30 }
 0x23f   : > { %v2436_v58 = vsub.s32 32, %v2435_v17  ;;  %v2438_v7 = vshll.u32 %v8499_v6, %v2435_v17  ;;  %v2441_v62 = vshll.u32 %v8497_v42, %v2435_v17  ;;  %v2444_v57 = vshll.u32 %v8502_v44, %v2435_v17 }
 0x240   : > { %v6872_v61 = vsub.s32 %v2377_v16, %v2380_v29  ;;  %v2447_v23 = vshll.u32 %v8479_v53, %v2435_v17  ;;  %v2450_v25 = vshll.u32 %v8496_v13, %v2435_v17  ;;  %vm2453_vm5 = vcmp.lt.s32.totalorder %v2434_v3, 1 }
 0x241   : > { %v2439_v22 = vshrl.u32 %v8497_v42, %v2436_v58  ;;  %v2442_v63 = vshrl.u32 %v8502_v44, %v2436_v58  ;;  %v2445_v35 = vshrl.u32 %v8479_v53, %v2436_v58  ;;  %v2448_v48 = vshrl.u32 %v8496_v13, %v2436_v58 }
 0x242   : > { %v2065_v49 = vpop.f32.mrb[8].mxu0  ;;  %v2383_v43 = vsub.s32 0, %v6872_v61  ;;  %v2451_v18 = vshrl.u32 %v8478_v39, %v2436_v58  ;;  %v2437_v40 = vshrl.u32 %v8499_v6, %v2436_v58  ;;  %vm2454_vm8 = vcmp.lt.s32.totalorder %v2434_v3, 2 }
 0x243   : > { %v6854_v10 = vadd.f32 %v6709_v12, %v2065_v49  ;;  %v4551_v34 = vpop.f32.mrb[9].mxu0  ;;  %v2440_v19 = vor.u32 %v2439_v22, %v2438_v7  ;;  %v2443_v2 = vor.u32 %v2442_v63, %v2441_v62  ;;  %v2446_v49 = vor.u32 %v2445_v35, %v2444_v57 }
 0x244   : > { %v4452_v60 = vmin.u32 %v2383_v43, %v6872_v61  ;;  %v2449_v26 = vor.u32 %v2448_v48, %v2447_v23  ;;  %v2452_v16 = vor.u32 %v2451_v18, %v2450_v25  ;;  %vm2455_vm1 = vcmp.lt.s32.totalorder %v2434_v3, 3 }
 0x245   : > { %8595 = vst [vmem:[#allocation15_spill] sm:$0xff] %v6854_v10  ;;  %v2528_v4 = vand.u32 2139095040, %v6854_v10  ;;  %v2525_v46 = vand.u32 2147483647, %v6854_v10  ;;  %vm2456_vm12 = vcmp.lt.s32.totalorder %v2434_v3, 4  ;;  %v2461_v47 = vsel %vm2453_vm5, %v2440_v19, %v2443_v2 }
 0x246   : > { %v2385_v34 = vclz %v4452_v60  ;;  %v2458_v0 = vsel %vm2456_vm12, %v2446_v49, 2102212464  ;;  %v2462_v27 = vsel %vm2456_vm12, %v2449_v26, 920167782  ;;  %v2465_v1 = vsel %vm2453_vm5, %v2443_v2, %v2446_v49 }
 0x247   : > { %v2529_v21 = vshrl.u32 %v2528_v4, 23  ;;  %v2457_v4 = vsel %vm2453_vm5, %v2437_v40, %v2440_v19  ;;  %v2463_v50 = vsel %vm2455_vm1, %v2446_v49, %v2462_v27  ;;  %v2466_v55 = vsel %vm2456_vm12, %v2452_v16, 1326507024 }
 0x248   : > { %v4453_v51 = vadd.s32 4294967294, %v2385_v34  ;;  %v2459_v30 = vsel %vm2455_vm1, %v2443_v2, %v2458_v0  ;;  %v2464_v58 = vsel %vm2454_vm8, %v2461_v47, %v2463_v50  ;;  %v6899_v63 = vmul.f32 %v2191_v36, %v2189_v52 }
 0x249   : > { %v4459_v31 = vadd.s32 4294967169, %v2529_v21  ;;  %v2467_v21 = vsel %vm2455_vm1, %v2449_v26, %v2466_v55  ;;  %v6895_v43 = vmul.u32.u64.low %v6874_v45, %v2464_v58  ;;  %v6896_v22 = vmul.u32.u64.high %v6874_v45, %v2464_v58, %v6895_v43 }
 0x24a   : > { %vm4454_vm14 = vcmp.lt.s32.totalorder %v4453_v51, 0  ;;  %v2468_v57 = vsel %vm2454_vm8, %v2465_v1, %v2467_v21  ;;  %v2288_v23 = vor.u32 %v2287_v28, %v2286_v15  ;;  %v2292_v35 = vor.u32 4788187, %v2291_v33 }
 0x24b   : > { %v2535_v29 = vadd.s32 1, %v4459_v31  ;;  %v6891_v62 = vsel %vm4454_vm14, 0, %v4453_v51  ;;  %v6902_v48 = vmul.u32.u64.low %v6874_v45, %v2468_v57  ;;  %v6903_v25 = vmul.u32.u64.high %v6874_v45, %v2468_v57, %v6902_v48 }
 0x24c   : > { %v2393_v18 = vsub.s32 4294967266, %v6891_v62  ;;  %v2460_v60 = vsel %vm2454_vm8, %v2457_v4, %v2459_v30  ;;  %v2532_v19 = vand.u32 8388607, %v2525_v46  ;;  %v2479_v49 = vadd.s32 1, %v6896_v22 }
 0x24d   : > { %vm2536_vm6 = vcmp.gt.s32.totalorder %v2535_v29, 0  ;;  %v2193_v36 = vxor.u32 2147483648, %v6899_v63  ;;  %v2295_v52 = vcvt.s32.f32 %v2288_v23  ;;  %v2373_v15 = vadd.s32 %v6835_v20, %v6833_v59 }
 0x24e   : > { %v2537_v2 = vsel %vm2536_vm6, %v2535_v29, 0  ;;  %v2293_v28 = vand.u32 2147483647, %v2292_v35  ;;  %v2476_v33 = vmul.u32 %v6874_v45, %v2460_v60  ;;  %vm2478_vm0 = vc.u32 %v6903_v25, %v6895_v43 }
 0x24f   : > { %v2539_v26 = vand.u32 31, %v2537_v2  ;;  %v2394_v16 = vadd.s32 127, %v2393_v18  ;;  %v2480_v31 = vsel %vm2478_vm0, %v2479_v49, %v6896_v22  ;;  %v2533_v34 = vor.u32 8388608, %v2532_v19 }
 0x250   : > { %v2481_v47 = vadd.s32 %v2480_v31, %v2476_v33  ;;  %v2538_v20 = vshrl.u32 %v2537_v2, 5  ;;  %v6925_v30 = vmul.f32 %v2295_v52, %v2293_v28  ;;  %v2389_v57 = vsub.s32 32, %v6891_v62 }
 0x251   : > { %v2540_v3 = vsub.s32 32, %v2539_v26  ;;  %v2542_v40 = vshll.u32 %v8499_v6, %v2539_v26  ;;  %v2545_v0 = vshll.u32 %v8497_v42, %v2539_v26  ;;  %v2548_v45 = vshll.u32 %v8502_v44, %v2539_v26 }
 0x252   : > { %v2551_v1 = vshll.u32 %v8479_v53, %v2539_v26  ;;  %v2482_v4 = vadd.s32 536870912, %v2481_v47  ;;  %v2554_v21 = vshll.u32 %v8496_v13, %v2539_v26  ;;  %v2390_v22 = vshll.u32 %v6872_v61, %v6891_v62 }
 0x253   : > { %v2543_v51 = vshrl.u32 %v8497_v42, %v2540_v3  ;;  %v2546_v59 = vshrl.u32 %v8502_v44, %v2540_v3  ;;  %v2549_v27 = vshrl.u32 %v8479_v53, %v2540_v3  ;;  %v2552_v29 = vshrl.u32 %v8496_v13, %v2540_v3 }
 0x254   : > { %v6932_v23 = vshrl.u32 %v2482_v4, 30  ;;  %v2395_v48 = vshll.u32 %v2394_v16, 23  ;;  %vm2557_vm15 = vcmp.lt.s32.totalorder %v2538_v20, 1  ;;  %v2573_v60 = vshll.u32 %v2533_v34, 8 }
 0x255   : > { %v2070_v17 = vpop.f32.mrb[10].mxu0  ;;  %v2544_v50 = vor.u32 %v2543_v51, %v2542_v40  ;;  %v2547_v55 = vor.u32 %v2546_v59, %v2545_v0  ;;  %v2550_v58 = vor.u32 %v2549_v27, %v2548_v45  ;;  %v2553_v35 = vor.u32 %v2552_v29, %v2551_v1 }
 0x256   : > { %v4554_v7 = vpop.f32.mrb[11].mxu0  ;;  %v2484_v19 = vshll.u32 %v6932_v23, 30  ;;  %vm2560_vm2 = vcmp.lt.s32.totalorder %v2538_v20, 4  ;;  %v6938_v49 = vadd.f32 %v6709_v12, %v2070_v17  ;;  %v2541_v26 = vshrl.u32 %v8499_v6, %v2540_v3 }
 0x257   : > { %v2555_v7 = vshrl.u32 %v8478_v39, %v2540_v3  ;;  %v2565_v2 = vsel %vm2557_vm15, %v2544_v50, %v2547_v55  ;;  %vm2559_vm11 = vcmp.lt.s32.totalorder %v2538_v20, 3  ;;  %v2562_v61 = vsel %vm2560_vm2, %v2550_v58, 2102212464 }
 0x258   : > { %v2566_v62 = vsel %vm2560_vm2, %v2553_v35, 920167782  ;;  %v6941_v52 = vsub.s32 %v2481_v47, %v2484_v19  ;;  %vm2558_vm10 = vcmp.lt.s32.totalorder %v2538_v20, 2  ;;  %v2569_v33 = vsel %vm2557_vm15, %v2547_v55, %v2550_v58 }
 0x259   : > { %v2556_v18 = vor.u32 %v2555_v7, %v2554_v21  ;;  %v2567_v28 = vsel %vm2559_vm11, %v2550_v58, %v2566_v62  ;;  %v2391_v31 = vshrl.u32 %v2373_v15, %v2389_v57  ;;  %v2396_v34 = vor.u32 4788187, %v2395_v48 }
 0x25a   : > { %v2568_v40 = vsel %vm2558_vm10, %v2565_v2, %v2567_v28  ;;  %v2487_v0 = vsub.s32 0, %v6941_v52  ;;  %v2561_v3 = vsel %vm2557_vm15, %v2541_v26, %v2544_v50  ;;  %v2563_v59 = vsel %vm2559_vm11, %v2547_v55, %v2562_v61 }
 0x25b   : > { %v2570_v51 = vsel %vm2560_vm2, %v2556_v18, 1326507024  ;;  %v6951_v27 = vmul.u32.u64.low %v2573_v60, %v2568_v40  ;;  %v6952_v1 = vmul.u32.u64.high %v2573_v60, %v2568_v40, %v6951_v27  ;;  %v2632_v15 = vand.u32 2139095040, %v6938_v49 }
 0x25c   : > { %v2571_v47 = vsel %vm2559_vm11, %v2553_v35, %v2570_v51  ;;  %v4456_v4 = vmin.u32 %v2487_v0, %v6941_v52  ;;  %v8412_v21 = vand.u32 2147483647, %v6938_v49  ;;  %v2392_v7 = vor.u32 %v2391_v31, %v2390_v22 }
 0x25d   : > { %v2572_v45 = vsel %vm2558_vm10, %v2569_v33, %v2571_v47  ;;  %v2564_v50 = vsel %vm2558_vm10, %v2561_v3, %v2563_v59  ;;  %v2633_v55 = vshrl.u32 %v2632_v15, 23  ;;  %v2194_v48 = vsel %vm2111_vm7, %v2193_v36, %v6899_v63 }
 0x25e   : > { %v6956_v29 = vmul.u32.u64.low %v2573_v60, %v2572_v45  ;;  %v6957_v58 = vmul.u32.u64.high %v2573_v60, %v2572_v45, %v6956_v29  ;;  %v2489_v18 = vclz %v4456_v4  ;;  %v2297_v20 = vxor.u32 2147483648, %v6925_v30 }
 0x25f   : > { %v2397_v22 = vand.u32 2147483647, %v2396_v34  ;;  %v2583_v19 = vadd.s32 1, %v6952_v1  ;;  %v2580_v26 = vmul.u32 %v2573_v60, %v2564_v50  ;;  %v2636_v14 = vand.u32 8388607, %v8412_v21 }
 0x260   : > { %v4457_v2 = vadd.s32 4294967294, %v2489_v18  ;;  %vm2582_vm3 = vc.u32 %v6957_v58, %v6951_v27  ;;  %v2399_v61 = vcvt.s32.f32 %v2392_v7  ;;  %v2197_v36 = vsel %vm6966_vm4, %v6719_v9, %v2194_v48 }
 0x261   : > { %v2584_v62 = vsel %vm2582_vm3, %v2583_v19, %v6952_v1  ;;  %v2298_v60 = vsel %vm8447_vm13, %v2297_v20, %v6925_v30  ;;  %v2637_v51 = vor.u32 8388608, %v2636_v14  ;;  %4786 = vcosq.f32 %v2197_v36 }
 0x262   : > { %vm4458_vm5 = vcmp.lt.s32.totalorder %v4457_v2, 0  ;;  %v2585_v33 = vadd.s32 %v2584_v62, %v2580_v26  ;;  %vm6997_vm1 = vcmp.le.f32.partialorder %v2213_v54, 0.7853982  ;;  %4788 = vsinq.f32 %v2197_v36 }
 0x263   : > { %v6991_v31 = vsel %vm4458_vm5, 0, %v4457_v2  ;;  %v7004_v59 = vsel %vm6997_vm1, %v6728_v56, %v2298_v60  ;;  %v2477_v15 = vadd.s32 %v6895_v43, %v6903_v25  ;;  %v7012_v54 = vadd.s32 %v6951_v27, %v6957_v58 }
 0x264   : > { %v2497_v34 = vsub.s32 4294967266, %v6991_v31  ;;  %v2586_v40 = vadd.s32 536870912, %v2585_v33  ;;  %v2493_v29 = vsub.s32 32, %v6991_v31  ;;  %v7016_v50 = vshll.u32 %v2637_v51, 8 }
 0x265   : > { %v2494_v48 = vshll.u32 %v6941_v52, %v6991_v31  ;;  %vm8444_vm10 = vcmp.lt.s32.totalorder %v6761_v32, 0  ;;  %vm8442_vm3 = vcmp.lt.s32.totalorder %v6827_v24, 0  ;;  %vm7093_vm5 = vcmp.le.f32.partialorder %v2317_v11, 0.7853982 }
 0x266   : > { %v2498_v47 = vadd.s32 127, %v2497_v34  ;;  %v7006_v45 = vshrl.u32 %v2586_v40, 30  ;;  %v2495_v60 = vshrl.u32 %v2477_v15, %v2493_v29  ;;  %4790 = vcosq.f32 %v7004_v59 }
 0x267   : > { %4792 = vsinq.f32 %v7004_v59 }
 0x268   : > { %v2075_v16 = vpop.f32.mrb[12].mxu0  ;;  %8601 = vst [vmem:[#allocation8_spill] sm:$0xff] %v7006_v45  ;;  %v2588_v7 = vshll.u32 %v7006_v45, 30  ;;  %v2499_v25 = vshll.u32 %v2498_v47, 23 }
 0x269   : > { %v4557_v17 = vpop.f32.mrb[13].mxu0  ;;  %v6962_v57 = vadd.f32 %v6709_v12, %v2075_v16  ;;  %v4463_v12 = vadd.s32 4294967169, %v2633_v55  ;;  %v6989_v16 = vmul.f32 %v2399_v61, %v2397_v22 }
 0x26a   : > { %v7024_v27 = vsub.s32 %v2585_v33, %v2588_v7 }
 0x26b   : > { %8596 = vst [vmem:[#allocation2_spill] sm:$0xff] %v6962_v57  ;;  %v2639_v28 = vadd.s32 1, %v4463_v12  ;;  %v2736_v63 = vand.u32 2139095040, %v6962_v57  ;;  %v8411_v17 = vand.u32 2147483647, %v6962_v57  ;;  %v2401_v1 = vxor.u32 2147483648, %v6989_v16  ;;  %v7038_v51 = vpop.eup %4786 }
 0x26c   : > { %v2591_v52 = vsub.s32 0, %v7024_v27  ;;  %v7040_v47 = vpop.eup %4788 }
 0x26d   : > { %vm2640_vm8 = vcmp.gt.s32.totalorder %v2639_v28, 0  ;;  %v2737_v30 = vshrl.u32 %v2736_v63, 23  ;;  %v7020_v55 = vand.u32 8388607, %v8411_v17 }
 0x26e   : > { %v2641_v3 = vsel %vm2640_vm8, %v2639_v28, 0  ;;  %v4460_v31 = vmin.u32 %v2591_v52, %v7024_v27 }
 0x26f   : > { %v2643_v4 = vand.u32 31, %v2641_v3  ;;  %v2642_v18 = vshrl.u32 %v2641_v3, 5  ;;  %v4467_v43 = vadd.s32 4294967169, %v2737_v30  ;;  %v2500_v3 = vor.u32 4788187, %v2499_v25 }
 0x270   : > { %v2593_v7 = vclz %v4460_v31  ;;  %v2741_v52 = vor.u32 8388608, %v7020_v55 }
 0x271   : > { %v2644_v20 = vsub.s32 32, %v2643_v4  ;;  %v2646_v58 = vshll.u32 %v8499_v6, %v2643_v4  ;;  %v2649_v22 = vshll.u32 %v8497_v42, %v2643_v4  ;;  %v2652_v2 = vshll.u32 %v8502_v44, %v2643_v4 }
 0x272   : > { %v2655_v14 = vshll.u32 %v8479_v53, %v2643_v4  ;;  %v2658_v62 = vshll.u32 %v8496_v13, %v2643_v4  ;;  %v2743_v40 = vadd.s32 1, %v4467_v43  ;;  %vm2661_vm12 = vcmp.lt.s32.totalorder %v2642_v18, 1 }
 0x273   : > { %v2647_v19 = vshrl.u32 %v8497_v42, %v2644_v20  ;;  %v2650_v12 = vshrl.u32 %v8502_v44, %v2644_v20  ;;  %v2653_v26 = vshrl.u32 %v8479_v53, %v2644_v20  ;;  %v2656_v61 = vshrl.u32 %v8496_v13, %v2644_v20 }
 0x274   : > { %v2659_v33 = vshrl.u32 %v8478_v39, %v2644_v20  ;;  %vm2664_vm14 = vcmp.lt.s32.totalorder %v2642_v18, 4  ;;  %v2645_v4 = vshrl.u32 %v8499_v6, %v2644_v20  ;;  %vm2663_vm6 = vcmp.lt.s32.totalorder %v2642_v18, 3 }
 0x275   : > { %v2648_v28 = vor.u32 %v2647_v19, %v2646_v58  ;;  %v2651_v63 = vor.u32 %v2650_v12, %v2649_v22  ;;  %v2654_v36 = vor.u32 %v2653_v26, %v2652_v2  ;;  %v2657_v34 = vor.u32 %v2656_v61, %v2655_v14 }
 0x276   : > { %v2660_v30 = vor.u32 %v2659_v33, %v2658_v62  ;;  %v2496_v2 = vor.u32 %v2495_v60, %v2494_v48  ;;  %v4461_v25 = vadd.s32 4294967294, %v2593_v7  ;;  %vm2662_vm0 = vcmp.lt.s32.totalorder %v2642_v18, 2 }
 0x277   : > { %v2666_v58 = vsel %vm2664_vm14, %v2654_v36, 2102212464  ;;  %v2669_v15 = vsel %vm2661_vm12, %v2648_v28, %v2651_v63  ;;  %v2670_v29 = vsel %vm2664_vm14, %v2657_v34, 920167782  ;;  %v2673_v19 = vsel %vm2661_vm12, %v2651_v63, %v2654_v36 }
 0x278   : > { %v2674_v43 = vsel %vm2664_vm14, %v2660_v30, 1326507024  ;;  %v2671_v26 = vsel %vm2663_vm6, %v2654_v36, %v2670_v29  ;;  %v2665_v14 = vsel %vm2661_vm12, %v2645_v4, %v2648_v28  ;;  %v2667_v61 = vsel %vm2663_vm6, %v2651_v63, %v2666_v58 }
 0x279   : > { %v2675_v20 = vsel %vm2663_vm6, %v2657_v34, %v2674_v43  ;;  %vm4462_vm15 = vcmp.lt.s32.totalorder %v4461_v25, 0  ;;  %v2672_v62 = vsel %vm2662_vm0, %v2669_v15, %v2671_v26  ;;  %vm2744_vm2 = vcmp.gt.s32.totalorder %v2743_v40, 0 }
 0x27a   : > { %v2676_v33 = vsel %vm2662_vm0, %v2673_v19, %v2675_v20  ;;  %v2501_v31 = vand.u32 2147483647, %v2500_v3  ;;  %v2596_v17 = vsel %vm4462_vm15, 0, %v4461_v25  ;;  %v2668_v36 = vsel %vm2662_vm0, %v2665_v14, %v2667_v61 }
 0x27b   : > { %v7048_v21 = vmul.u32.u64.low %v7016_v50, %v2676_v33  ;;  %v7049_v30 = vmul.u32.u64.high %v7016_v50, %v2676_v33, %v7048_v21  ;;  %v2597_v48 = vsub.s32 32, %v2596_v17  ;;  %v2601_v60 = vsub.s32 4294967266, %v2596_v17 }
 0x27c   : > { %v2745_v7 = vsel %vm2744_vm2, %v2743_v40, 0  ;;  %v2503_v55 = vcvt.s32.f32 %v2496_v2  ;;  %v7052_v18 = vmul.u32.u64.low %v7016_v50, %v2672_v62  ;;  %v7053_v28 = vmul.u32.u64.high %v7016_v50, %v2672_v62, %v7052_v18 }
 0x27d   : > { %v2747_v63 = vand.u32 31, %v2745_v7  ;;  %v2598_v34 = vshll.u32 %v7024_v27, %v2596_v17  ;;  %v2599_v3 = vshrl.u32 %v7012_v54, %v2597_v48  ;;  %v2602_v4 = vadd.s32 127, %v2601_v60  ;;  %v7082_v60 = vld [vmem:[%s8324_s4] ss:$0 sm:$0xff] }
 0x27e   : > { %v7058_v58 = vshll.u32 %v2741_v52, 8  ;;  %v7060_v15 = vmul.f32 %v2503_v55, %v2501_v31  ;;  %v2684_v21 = vmul.u32 %v7016_v50, %v2668_v36  ;;  %v7063_v29 = vshrl.u32 %v2745_v7, 5 }
 0x27f   : > { %v2748_v40 = vsub.s32 32, %v2747_v63  ;;  %v2600_v19 = vor.u32 %v2599_v3, %v2598_v34  ;;  %v2603_v43 = vshll.u32 %v2602_v4, 23  ;;  %vm2686_vm11 = vc.u32 %v7049_v30, %v7052_v18 }
 0x280   : > { %v2687_v17 = vadd.s32 1, %v7053_v28  ;;  %v2753_v27 = vshll.u32 %v8497_v42, %v2747_v63  ;;  %v2756_v50 = vshll.u32 %v8502_v44, %v2747_v63  ;;  %v2759_v52 = vshll.u32 %v8479_v53, %v2747_v63 }
 0x281   : > { %v2080_v22 = vpop.f32.mrb[14].mxu0  ;;  %v2751_v54 = vshrl.u32 %v8497_v42, %v2748_v40  ;;  %v2754_v2 = vshrl.u32 %v8502_v44, %v2748_v40  ;;  %v2604_v25 = vor.u32 4788187, %v2603_v43  ;;  %v2757_v26 = vshrl.u32 %v8479_v53, %v2748_v40 }
 0x282   : > { %v4560_v12 = vpop.f32.mrb[15].mxu0  ;;  %v2688_v14 = vsel %vm2686_vm11, %v2687_v17, %v7053_v28  ;;  %v2760_v62 = vshrl.u32 %v8496_v13, %v2748_v40  ;;  %v2505_v33 = vxor.u32 2147483648, %v7060_v15  ;;  %v7085_v36 = vadd.f32 %v7082_v60, %v2080_v22 }
 0x283   : > { %v2750_v12 = vshll.u32 %v8499_v6, %v2747_v63  ;;  %v2755_v20 = vor.u32 %v2754_v2, %v2753_v27  ;;  %v2689_v31 = vadd.s32 %v2688_v14, %v2684_v21  ;;  %v2758_v48 = vor.u32 %v2757_v26, %v2756_v50 }
 0x284   : > { %v2749_v7 = vshrl.u32 %v8499_v6, %v2748_v40  ;;  %v2761_v55 = vor.u32 %v2760_v62, %v2759_v52  ;;  %v2762_v28 = vshll.u32 %v8496_v13, %v2747_v63  ;;  %v2763_v34 = vshrl.u32 %v8478_v39, %v2748_v40 }
 0x285   : > { %v2752_v61 = vor.u32 %v2751_v54, %v2750_v12  ;;  %v2607_v4 = vcvt.s32.f32 %v2600_v19  ;;  %v2690_v21 = vadd.s32 536870912, %v2689_v31  ;;  %vm2765_vm8 = vcmp.lt.s32.totalorder %v7063_v29, 1 }
 0x286   : > { %vm2768_vm12 = vcmp.lt.s32.totalorder %v7063_v29, 4  ;;  %v2605_v43 = vand.u32 2147483647, %v2604_v25  ;;  %v2764_v12 = vor.u32 %v2763_v34, %v2762_v28  ;;  %vm2766_vm14 = vcmp.lt.s32.totalorder %v7063_v29, 2 }
 0x287   : > { %v2770_v17 = vsel %vm2768_vm12, %v2758_v48, 2102212464  ;;  %v2773_v54 = vsel %vm2765_vm8, %v2752_v61, %v2755_v20  ;;  %v7099_v27 = vshrl.u32 %v2690_v21, 30  ;;  %vm2767_vm6 = vcmp.lt.s32.totalorder %v7063_v29, 3 }
 0x288   : > { %v2774_v11 = vsel %vm2768_vm12, %v2761_v55, 920167782  ;;  %v2769_v40 = vsel %vm2765_vm8, %v2749_v7, %v2752_v61  ;;  %v2777_v2 = vsel %vm2765_vm8, %v2755_v20, %v2758_v48  ;;  %v2778_v50 = vsel %vm2768_vm12, %v2764_v12, 1326507024 }
 0x289   : > { %8604 = vst [vmem:[#allocation7_spill] sm:$0xff] %v7099_v27  ;;  %v2775_v19 = vsel %vm2767_vm6, %v2758_v48, %v2774_v11  ;;  %v2692_v26 = vshll.u32 %v7099_v27, 30  ;;  %v2771_v52 = vsel %vm2767_vm6, %v2755_v20, %v2770_v17  ;;  %v2779_v14 = vsel %vm2767_vm6, %v2761_v55, %v2778_v50 }
 0x28a   : > { %v2776_v25 = vsel %vm2766_vm14, %v2773_v54, %v2775_v19  ;;  %v2608_v62 = vmul.f32 %v2607_v4, %v2605_v43  ;;  %v2780_v28 = vsel %vm2766_vm14, %v2777_v2, %v2779_v14  ;;  %v2402_v61 = vsel %vm8444_vm10, %v2401_v1, %v6989_v16 }
 0x28b   : > { %v7109_v34 = vmul.u32.u64.low %v7058_v58, %v2776_v25  ;;  %v7110_v21 = vmul.u32.u64.high %v7058_v58, %v2776_v25, %v7109_v34  ;;  %v7117_v48 = vsub.s32 %v2689_v31, %v2692_v26  ;;  %vm7126_vm0 = vcmp.le.f32.partialorder %v2421_v38, 0.7853982 }
 0x28c   : > { %v7120_v20 = vmul.u32.u64.low %v7058_v58, %v2780_v28  ;;  %v7121_v7 = vmul.u32.u64.high %v7058_v58, %v2780_v28, %v7120_v20  ;;  %v8605_v55 = vmov 0  ;;  %vm8441_vm15 = vcmp.lt.s32.totalorder %v6854_v10, 0 }
 0x28d   : > { %v8606_v55 = vsel %vm7126_vm0, 4294967295, %v8605_v55  ;;  %v2772_v4 = vsel %vm2766_vm14, %v2769_v40, %v2771_v52  ;;  %v2506_v16 = vsel %vm8442_vm3, %v2505_v33, %v7060_v15  ;;  %v2695_v1 = vsub.s32 0, %v7117_v48  ;;  %v3463_v20 = vld [vmem:[%s8325_s5 + $0x10] sm:$0xff] }
 0x28e   : > { %8607 = vst [vmem:[#allocation16_spill] sm:$0xff] %v8606_v55  ;;  %v2840_v31 = vand.u32 2139095040, %v7085_v36  ;;  %v2405_v38 = vsel %vm7093_vm5, %v6761_v32, %v2402_v61  ;;  %v2609_v43 = vxor.u32 2147483648, %v2608_v62  ;;  %v2791_v12 = vadd.s32 1, %v7110_v21  ;;  %v3461_v61 = vld [vmem:[%s8325_s5] sm:$0xff] }
 0x28f   : > { %v4464_v59 = vmin.u32 %v2695_v1, %v7117_v48  ;;  %v2788_v17 = vmul.u32 %v7058_v58, %v2772_v4  ;;  %vm2790_vm2 = vc.u32 %v7121_v7, %v7109_v34  ;;  %v2509_v33 = vsel %vm7126_vm0, %v6827_v24, %v2506_v16  ;;  %v7194_v4 = vpop.eup %4790 }
 0x290   : > { %v2841_v15 = vshrl.u32 %v2840_v31, 23  ;;  %v2792_v54 = vsel %vm2790_vm2, %v2791_v12, %v7110_v21  ;;  %v2195_v11 = vsub.s32 4, %v6775_v8  ;;  %4794 = vcosq.f32 %v2405_v38 }
 0x291   : > { %v2793_v40 = vadd.s32 %v2792_v54, %v2788_v17  ;;  %4796 = vsinq.f32 %v2405_v38  ;;  %vm7157_vm11 = vcmp.le.f32.partialorder %v2525_v46, 0.7853982  ;;  %v8608_v58 = vmov 0  ;;  %v3462_v46 = vld [vmem:[%s8325_s5 + $0x8] sm:$0xff]  ;;  %v7196_v38 = vpop.eup %4792 }
 0x292   : > { %v2085_v22 = vpop.f32.mrb[16].mxu0  ;;  %v4471_v19 = vadd.s32 4294967169, %v2841_v15  ;;  %v8609_v58 = vsel %vm7157_vm11, 4294967295, %v8608_v58  ;;  %v2610_v2 = vsel %vm8441_vm15, %v2609_v43, %v2608_v62  ;;  %4798 = vcosq.f32 %v2509_v33  ;;  %v3464_v62 = vld [vmem:[%s8325_s5 + $0x18] sm:$0xff] }
 0x293   : > { %v4563_v63 = vpop.f32.mrb[17].mxu0  ;;  %v7144_v29 = vadd.f32 %v7082_v60, %v2085_v22  ;;  %v2697_v22 = vclz %v4464_v59  ;;  %8610 = vst [vmem:[#allocation28_spill] sm:$0xff] %v8609_v58  ;;  %v2794_v52 = vadd.s32 536870912, %v2793_v40  ;;  %4800 = vsinq.f32 %v2509_v33 }
 0x294   : > { %v8413_v63 = vand.u32 2147483647, %v7085_v36  ;;  %v2847_v25 = vadd.s32 1, %v4471_v19  ;;  %v2685_v14 = vadd.s32 %v7052_v18, %v7049_v30  ;;  %v7179_v21 = vsel %vm2111_vm7, %v2195_v11, %v6775_v8  ;;  %v3468_v19 = vld [vmem:[%s8325_s5 + $0x38] sm:$0xff] }
 0x295   : > { %v2944_v50 = vand.u32 2139095040, %v7144_v29  ;;  %v4465_v26 = vadd.s32 4294967294, %v2697_v22  ;;  %v7184_v30 = vsel %vm7157_vm11, %v6854_v10, %v2610_v2  ;;  %v7186_v18 = vshrl.u32 %v2794_v52, 30  ;;  %v3466_v22 = vld [vmem:[%s8325_s5 + $0x28] sm:$0xff] }
 0x296   : > { %v7168_v28 = vand.u32 8388607, %v8413_v63  ;;  %vm2848_vm12 = vcmp.gt.s32.totalorder %v2847_v25, 0  ;;  %v4582_v31 = vpack.c.bf16 %v3464_v62, %v3462_v46  ;;  %v7203_v15 = vadd.s32 %v7109_v34, %v7121_v7 }
 0x297   : > { %vm4466_vm8 = vcmp.lt.s32.totalorder %v4465_v26, 0  ;;  %8611 = vst [vmem:[#allocation17_spill] sm:$0xff] %v7186_v18  ;;  %v2849_v16 = vsel %vm2848_vm12, %v2847_v25, 0  ;;  %v2945_v1 = vshrl.u32 %v2944_v50, 23  ;;  %v2796_v59 = vshll.u32 %v7186_v18, 30 }
 0x298   : > { %v2700_v8 = vsel %vm4466_vm8, 0, %v4465_v26  ;;  %v2845_v33 = vor.u32 8388608, %v7168_v28  ;;  %v2851_v54 = vand.u32 31, %v2849_v16  ;;  %4583 = vmatprep.subr.bf16.mxu1 %v4582_v31  ;;  %v4584_v11 = vpack.c.bf16 %v3463_v20, %v3461_v61 }
 0x299   : > { %v2701_v43 = vsub.s32 32, %v2700_v8  ;;  %v2705_v12 = vsub.s32 4294967266, %v2700_v8  ;;  %v7212_v50 = vsub.s32 %v2793_v40, %v2796_v59  ;;  %v4586_v34 = vpack.c.bf16 %v3468_v19, %v3466_v22 }
 0x29a   : > { %v2702_v7 = vshll.u32 %v7117_v48, %v2700_v8  ;;  %v2852_v25 = vsub.s32 32, %v2851_v54  ;;  %v4475_v28 = vadd.s32 4294967169, %v2945_v1  ;;  %4585 = vmatpush1.bf16.msra.mxu1 %v4584_v11  ;;  %v7216_v46 = vpop.eup %4794  ;;  %v2854_v20 = vshll.u32 %v8499_v6, %v2851_v54 }
 0x29b   : > { %v2706_v2 = vadd.s32 127, %v2705_v12  ;;  %v2703_v52 = vshrl.u32 %v2685_v14, %v2701_v43  ;;  %v2799_v61 = vsub.s32 0, %v7212_v50  ;;  %v2857_v31 = vshll.u32 %v8497_v42, %v2851_v54  ;;  %4587 = vmatprep.subr.bf16.mxu1 %v4586_v34  ;;  %v7223_v12 = vpop.eup %4796 }
 0x29c   : > { %v2855_v48 = vshrl.u32 %v8497_v42, %v2852_v25  ;;  %v2858_v14 = vshrl.u32 %v8502_v44, %v2852_v25  ;;  %v2860_v8 = vshll.u32 %v8502_v44, %v2851_v54  ;;  %v2861_v1 = vshrl.u32 %v8479_v53, %v2852_v25  ;;  %v7229_v59 = vpop.eup %4798 }
 0x29d   : > { %v2707_v62 = vshll.u32 %v2706_v2, 23  ;;  %8612 = vst [vmem:[#allocation27_spill] sm:$0xff] %v7229_v59  ;;  %v4468_v11 = vmin.u32 %v2799_v61, %v7212_v50  ;;  %v2850_v22 = vshrl.u32 %v2849_v16, 5  ;;  %v2863_v19 = vshll.u32 %v8479_v53, %v2851_v54  ;;  %v7234_v34 = vpop.eup %4800 }
 0x29e   : > { %v2864_v2 = vshrl.u32 %v8496_v13, %v2852_v25  ;;  %8613 = vst [vmem:[#allocation3_spill] sm:$0xff] %v7234_v34  ;;  %v2856_v17 = vor.u32 %v2855_v48, %v2854_v20  ;;  %v2859_v26 = vor.u32 %v2858_v14, %v2857_v31  ;;  %v2862_v18 = vor.u32 %v2861_v1, %v2860_v8 }
 0x29f   : > { %v2708_v63 = vor.u32 4788187, %v2707_v62  ;;  %v2801_v27 = vclz %v4468_v11  ;;  %v2866_v10 = vshll.u32 %v8496_v13, %v2851_v54  ;;  %v2704_v59 = vor.u32 %v2703_v52, %v2702_v7 }
 0x2a0   : > { %v2865_v58 = vor.u32 %v2864_v2, %v2863_v19  ;;  %v2853_v61 = vshrl.u32 %v8499_v6, %v2852_v25  ;;  %v2885_v16 = vshll.u32 %v2845_v33, 8  ;;  %v2951_v45 = vadd.s32 1, %v4475_v28 }
 0x2a1   : > { %v4469_v55 = vadd.s32 4294967294, %v2801_v27  ;;  %vm2869_vm7 = vcmp.lt.s32.totalorder %v2850_v22, 1  ;;  %vm2872_vm14 = vcmp.lt.s32.totalorder %v2850_v22, 4  ;;  %v2709_v34 = vand.u32 2147483647, %v2708_v63 }
 0x2a2   : > { %vm2871_vm6 = vcmp.lt.s32.totalorder %v2850_v22, 3  ;;  %v2877_v62 = vsel %vm2869_vm7, %v2856_v17, %v2859_v26  ;;  %v2878_v20 = vsel %vm2872_vm14, %v2865_v58, 920167782  ;;  %vm2870_vm8 = vcmp.lt.s32.totalorder %v2850_v22, 2 }
 0x2a3   : > { %vm4470_vm2 = vcmp.lt.s32.totalorder %v4469_v55, 0  ;;  %v2874_v31 = vsel %vm2872_vm14, %v2862_v18, 2102212464  ;;  %v2879_v54 = vsel %vm2871_vm6, %v2862_v18, %v2878_v20  ;;  %v2881_v33 = vsel %vm2869_vm7, %v2859_v26, %v2862_v18  ;;  %v3465_v18 = vld [vmem:[%s8325_s5 + $0x20] sm:$0xff] }
 0x2a4   : > { %v2804_v48 = vsel %vm4470_vm2, 0, %v4469_v55  ;;  %v2880_v7 = vsel %vm2870_vm8, %v2877_v62, %v2879_v54  ;;  %v2711_v27 = vcvt.s32.f32 %v2704_v59  ;;  %v2873_v63 = vsel %vm2869_vm7, %v2853_v61, %v2856_v17  ;;  %v3467_v17 = vld [vmem:[%s8325_s5 + $0x30] sm:$0xff] }
 0x2a5   : > { %v2875_v28 = vsel %vm2871_vm6, %v2859_v26, %v2874_v31  ;;  %v7246_v8 = vmul.u32.u64.low %v2885_v16, %v2880_v7  ;;  %v7247_v1 = vmul.u32.u64.high %v2885_v16, %v2880_v7, %v7246_v8  ;;  %v2806_v55 = vshll.u32 %v7212_v50, %v2804_v48 }
 0x2a6   : > { %v8614_v2 = vand.u32 2147483647, %v7144_v29  ;;  %v2876_v61 = vsel %vm2870_vm8, %v2873_v63, %v2875_v28  ;;  %vm2952_vm12 = vcmp.gt.s32.totalorder %v2951_v45, 0  ;;  %4802 = vcosq.f32 %v7184_v30 }
 0x2a7   : > { %vm8428_vm7 = vcmp.lt.s32.totalorder %v6938_v49, 0  ;;  %v2895_v62 = vadd.s32 1, %v7247_v1  ;;  %v2953_v20 = vsel %vm2952_vm12, %v2951_v45, 0  ;;  %v4588_v31 = vpack.c.bf16 %v3467_v17, %v3465_v18 }
 0x2a8   : > { %v2948_v50 = vand.u32 8388607, %v8614_v2  ;;  %4804 = vsinq.f32 %v7184_v30  ;;  %v2955_v54 = vand.u32 31, %v2953_v20  ;;  %v2954_v28 = vshrl.u32 %v2953_v20, 5 }
 0x2a9   : > { %v7221_v40 = vpop.f32.mrb[18].mxu0  ;;  %4589 = vmatpush1.bf16.msra.mxu1 %v4588_v31 }
 0x2aa   : > { %v4566_v43 = vpop.f32.mrb[19].mxu0  ;;  %v2956_v30 = vsub.s32 32, %v2955_v54  ;;  %v2958_v35 = vshll.u32 %v8499_v6, %v2955_v54  ;;  %vm2976_vm12 = vcmp.lt.s32.totalorder %v2954_v28, 4 }
 0x2ab   : > { %v2867_v43 = vshrl.u32 %v8478_v39, %v2852_v25  ;;  %v2809_v25 = vsub.s32 4294967266, %v2804_v48 }
 0x2ac   : > { %v2968_v2 = vshrl.u32 %v8496_v13, %v2956_v30 }
 0x2ad   : > { %v2868_v24 = vor.u32 %v2867_v43, %v2866_v10  ;;  %v2805_v10 = vsub.s32 32, %v2804_v48  ;;  %v2810_v19 = vadd.s32 127, %v2809_v25  ;;  %v8615_v48 = vsel %vm6966_vm4, 0, %v7179_v21 }
 0x2ae   : > { %v7273_v7 = vadd.s32 3, %v8615_v48  ;;  %v2961_v21 = vshll.u32 %v8497_v42, %v2955_v54 }
 0x2af   : > { %v2882_v52 = vsel %vm2872_vm14, %v2868_v24, 1326507024  ;;  %v2807_v11 = vshrl.u32 %v7203_v15, %v2805_v10  ;;  %v2811_v15 = vshll.u32 %v2810_v19, 23  ;;  %v2967_v19 = vshll.u32 %v8479_v53, %v2955_v54 }
 0x2b0   : > { %v2883_v14 = vsel %vm2871_vm6, %v2865_v58, %v2882_v52  ;;  %v2712_v58 = vmul.f32 %v2711_v27, %v2709_v34  ;;  %v2949_v52 = vor.u32 8388608, %v2948_v50  ;;  %vm8440_vm6 = vcmp.lt.s32.totalorder %v6962_v57, 0 }
 0x2b1   : > { %v2884_v24 = vsel %vm2870_vm8, %v2881_v33, %v2883_v14  ;;  %v2808_v43 = vor.u32 %v2807_v11, %v2806_v55  ;;  %v2812_v34 = vor.u32 4788187, %v2811_v15  ;;  %v2892_v33 = vmul.u32 %v2885_v16, %v2876_v61 }
 0x2b2   : > { %v7259_v26 = vmul.u32.u64.low %v2885_v16, %v2884_v24  ;;  %v7260_v59 = vmul.u32.u64.high %v2885_v16, %v2884_v24, %v7259_v26  ;;  %v2713_v22 = vxor.u32 2147483648, %v2712_v58  ;;  %v2959_v16 = vshrl.u32 %v8497_v42, %v2956_v30 }
 0x2b3   : > { %v2813_v27 = vand.u32 2147483647, %v2812_v34  ;;  %v2815_v45 = vcvt.s32.f32 %v2808_v43  ;;  %v2962_v55 = vshrl.u32 %v8502_v44, %v2956_v30  ;;  %v2964_v11 = vshll.u32 %v8502_v44, %v2955_v54 }
 0x2b4   : > { %vm2894_vm14 = vc.u32 %v7260_v59, %v7246_v8  ;;  %v8616_v24 = vand.u32 2147483647, %v6938_v49  ;;  %v2965_v26 = vshrl.u32 %v8479_v53, %v2956_v30  ;;  %v2960_v50 = vor.u32 %v2959_v16, %v2958_v35 }
 0x2b5   : > { %v2896_v10 = vsel %vm2894_vm14, %v2895_v62, %v7247_v1  ;;  %v2816_v18 = vmul.f32 %v2815_v45, %v2813_v27  ;;  %v2963_v43 = vor.u32 %v2962_v55, %v2961_v21  ;;  %v2970_v15 = vshll.u32 %v8496_v13, %v2955_v54 }
 0x2b6   : > { %v2897_v63 = vadd.s32 %v2896_v10, %v2892_v33  ;;  %vm7286_vm4 = vcmp.le.f32.partialorder %v8616_v24, 0.7853982  ;;  %v2971_v61 = vshrl.u32 %v8478_v39, %v2956_v30  ;;  %v2966_v20 = vor.u32 %v2965_v26, %v2964_v11  ;;  %v7304_v10 = vpop.eup %4802 }
 0x2b7   : > { %v2969_v31 = vor.u32 %v2968_v2, %v2967_v19  ;;  %v2989_v34 = vshll.u32 %v2949_v52, 8  ;;  %v2714_v48 = vsel %vm8428_vm7, %v2713_v22, %v2712_v58  ;;  %v2957_v33 = vshrl.u32 %v8499_v6, %v2956_v30  ;;  %v7313_v58 = vpop.eup %4804 }
 0x2b8   : > { %v2898_v17 = vadd.s32 536870912, %v2897_v63  ;;  %v2972_v27 = vor.u32 %v2971_v61, %v2970_v15  ;;  %v7302_v45 = vadd.f32 %v7082_v60, %v7221_v40  ;;  %v8620_v54 = vand.u32 2147483647, %v6962_v57 }
 0x2b9   : > { %v8621_v35 = vmov 0  ;;  %v2817_v21 = vxor.u32 2147483648, %v2816_v18  ;;  %vm2973_vm8 = vcmp.lt.s32.totalorder %v2954_v28, 1  ;;  %vm2975_vm14 = vcmp.lt.s32.totalorder %v2954_v28, 3 }
 0x2ba   : > { %v7295_v62 = vshrl.u32 %v2898_v17, 30  ;;  %vm7308_vm2 = vcmp.le.f32.partialorder %v8620_v54, 0.7853982  ;;  %v2978_v22 = vsel %vm2976_vm12, %v2966_v20, 2102212464  ;;  %v2981_v30 = vsel %vm2973_vm8, %v2960_v50, %v2963_v43 }
 0x2bb   : > { %v2095_v25 = vpop.f32.mrb[20].mxu0  ;;  %v8622_v35 = vsel %vm7308_vm2, 4294967295, %v8621_v35  ;;  %v2982_v40 = vsel %vm2976_vm12, %v2969_v31, 920167782  ;;  %vm2974_vm7 = vcmp.lt.s32.totalorder %v2954_v28, 2  ;;  %v2977_v16 = vsel %vm2973_vm8, %v2957_v33, %v2960_v50 }
 0x2bc   : > { %v4569_v14 = vpop.f32.mrb[21].mxu0  ;;  %8619 = vst [vmem:[#allocation13_spill] sm:$0xff] %v7295_v62  ;;  %8623 = vst [vmem:[#allocation9_spill] sm:$0xff] %v8622_v35  ;;  %v2900_v52 = vshll.u32 %v7295_v62, 30  ;;  %v2983_v55 = vsel %vm2975_vm14, %v2966_v20, %v2982_v40  ;;  %v2979_v11 = vsel %vm2975_vm14, %v2963_v43, %v2978_v22  ;;  %v2985_v24 = vsel %vm2973_vm8, %v2963_v43, %v2966_v20 }
 0x2bd   : > { %v2984_v19 = vsel %vm2974_vm7, %v2981_v30, %v2983_v55  ;;  %v2986_v17 = vsel %vm2976_vm12, %v2972_v27, 1326507024  ;;  %v2717_v54 = vsel %vm7286_vm4, %v6938_v49, %v2714_v48  ;;  %v8430_v50 = vand.u32 2147483647, %v7302_v45 }
 0x2be   : > { %v7315_v14 = vsub.s32 %v2897_v63, %v2900_v52  ;;  %v2987_v2 = vsel %vm2975_vm14, %v2969_v31, %v2986_v17  ;;  %v7319_v15 = vmul.u32.u64.low %v2989_v34, %v2984_v19  ;;  %v7320_v61 = vmul.u32.u64.high %v2989_v34, %v2984_v19, %v7319_v15 }
 0x2bf   : > { %v2988_v63 = vsel %vm2974_vm7, %v2985_v24, %v2987_v2  ;;  %v3048_v33 = vand.u32 2139095040, %v7302_v45  ;;  %v2818_v43 = vsel %vm8440_vm6, %v2817_v21, %v2816_v18  ;;  %v2980_v52 = vsel %vm2974_vm7, %v2977_v16, %v2979_v11 }
 0x2c0   : > { %v2903_v26 = vsub.s32 0, %v7315_v14  ;;  %v7331_v27 = vmul.u32.u64.low %v2989_v34, %v2988_v63  ;;  %v7332_v31 = vmul.u32.u64.high %v2989_v34, %v2988_v63, %v7331_v27  ;;  %v7336_v30 = vadd.f32 %v7082_v60, %v2095_v25 }
 0x2c1   : > { %v3049_v22 = vshrl.u32 %v3048_v33, 23  ;;  %v7339_v48 = vand.u32 3, %v7273_v7  ;;  %4806 = vcosq.f32 %v2717_v54  ;;  %v2999_v55 = vadd.s32 1, %v7320_v61 }
 0x2c2   : > { %v4472_v20 = vmin.u32 %v2903_v26, %v7315_v14  ;;  %v2821_v21 = vsel %vm7308_vm2, %v6962_v57, %v2818_v43  ;;  %v3052_v28 = vand.u32 8388607, %v8430_v50  ;;  %v3152_v25 = vand.u32 2139095040, %v7336_v30 }
 0x2c3   : > { %v4479_v19 = vadd.s32 4294967169, %v3049_v22  ;;  %4808 = vsinq.f32 %v2717_v54  ;;  %v2996_v7 = vmul.u32 %v2989_v34, %v2980_v52  ;;  %vm2998_vm7 = vc.u32 %v7332_v31, %v7319_v15 }
 0x2c4   : > { %v2905_v40 = vclz %v4472_v20  ;;  %v2893_v11 = vadd.s32 %v7246_v8, %v7260_v59  ;;  %v3000_v24 = vsel %vm2998_vm7, %v2999_v55, %v7320_v61  ;;  %v3153_v26 = vshrl.u32 %v3152_v25, 23 }
 0x2c5   : > { %v3055_v17 = vadd.s32 1, %v4479_v19  ;;  %4810 = vcosq.f32 %v2821_v21  ;;  %v3001_v2 = vadd.s32 %v3000_v24, %v2996_v7  ;;  %v2206_v63 = vxor.u32 2147483648, %v7040_v47 }
 0x2c6   : > { %v4473_v16 = vadd.s32 4294967294, %v2905_v40  ;;  %v3053_v43 = vor.u32 8388608, %v3052_v28  ;;  %v8429_v54 = vand.u32 2147483647, %v7336_v30  ;;  %v4483_v52 = vadd.s32 4294967169, %v3153_v26 }
 0x2c7   : > { %vm3056_vm12 = vcmp.gt.s32.totalorder %v3055_v17, 0  ;;  %v3002_v27 = vadd.s32 536870912, %v3001_v2  ;;  %4812 = vsinq.f32 %v2821_v21  ;;  %v7356_v8 = vadd.s32 %v7319_v15, %v7332_v31 }
 0x2c8   : > { %vm4474_vm8 = vcmp.lt.s32.totalorder %v4473_v16, 0  ;;  %v3057_v59 = vsel %vm3056_vm12, %v3055_v17, 0  ;;  %vm2205_vm14 = vcmp.eq.s32.totalorder %v7339_v48, 0  ;;  %v7362_v28 = vshll.u32 %v3053_v43, 8 }
 0x2c9   : > { %v2908_v33 = vsel %vm4474_vm8, 0, %v4473_v16  ;;  %v7360_v55 = vshrl.u32 %v3002_v27, 30  ;;  %v3059_v19 = vand.u32 31, %v3057_v59  ;;  %v7366_v25 = vand.u32 8388607, %v8429_v54 }
 0x2ca   : > { %v2909_v34 = vsub.s32 32, %v2908_v33  ;;  %v2913_v20 = vsub.s32 4294967266, %v2908_v33  ;;  %v2910_v61 = vshll.u32 %v7315_v14, %v2908_v33  ;;  %v7371_v15 = vsel %vm2205_vm14, %v7038_v51, %v2206_v63 }
 0x2cb   : > { %8624 = vst [vmem:[#allocation19_spill] sm:$0xff] %v7360_v55  ;;  %v7373_v31 = vpop.eup %4806  ;;  %v3004_v7 = vshll.u32 %v7360_v55, 30  ;;  %v3058_v17 = vshrl.u32 %v3057_v59, 5  ;;  %v3060_v26 = vsub.s32 32, %v3059_v19  ;;  %v3062_v33 = vshll.u32 %v8499_v6, %v3059_v19 }
 0x2cc   : > { %v2911_v22 = vshrl.u32 %v2893_v11, %v2909_v34  ;;  %v2914_v40 = vadd.s32 127, %v2913_v20  ;;  %8625 = vst [vmem:[#allocation29_spill] sm:$0xff] %v7373_v31  ;;  %v3159_v11 = vadd.s32 1, %v4483_v52  ;;  %v3065_v43 = vshll.u32 %v8497_v42, %v3059_v19 }
 0x2cd   : > { %v7378_v34 = vpop.eup %4808  ;;  %v7380_v63 = vsub.s32 %v3001_v2, %v3004_v7  ;;  %v3068_v54 = vshll.u32 %v8502_v44, %v3059_v19  ;;  %v3069_v52 = vshrl.u32 %v8479_v53, %v3060_v26  ;;  %v3071_v59 = vshll.u32 %v8479_v53, %v3059_v19 }
 0x2ce   : > { %v2912_v16 = vor.u32 %v2911_v22, %v2910_v61  ;;  %v2915_v14 = vshll.u32 %v2914_v40, 23  ;;  %8626 = vst [vmem:[#allocation31_spill] sm:$0xff] %v7378_v34  ;;  %v3063_v61 = vshrl.u32 %v8497_v42, %v3060_v26  ;;  %v3066_v22 = vshrl.u32 %v8502_v44, %v3060_v26 }
 0x2cf   : > { %v7387_v40 = vpop.eup %4810  ;;  %v3007_v50 = vsub.s32 0, %v7380_v63  ;;  %v3074_v2 = vshll.u32 %v8496_v13, %v3059_v19  ;;  %vm2208_vm7 = vcmp.eq.s32.totalorder %v7339_v48, 2  ;;  %v3070_v18 = vor.u32 %v3069_v52, %v3068_v54 }
 0x2d0   : > { %v2916_v20 = vor.u32 4788187, %v2915_v14  ;;  %v2919_v27 = vcvt.s32.f32 %v2912_v16  ;;  %8627 = vst [vmem:[#allocation21_spill] sm:$0xff] %v7387_v40  ;;  %v3072_v14 = vshrl.u32 %v8496_v13, %v3060_v26  ;;  %v3064_v16 = vor.u32 %v3063_v61, %v3062_v33 }
 0x2d1   : > { %v3067_v7 = vor.u32 %v3066_v22, %v3065_v43  ;;  %v3075_v55 = vshrl.u32 %v8478_v39, %v3060_v26  ;;  %v4476_v62 = vmin.u32 %v3007_v50, %v7380_v63  ;;  %vm3160_vm8 = vcmp.gt.s32.totalorder %v3159_v11, 0 }
 0x2d2   : > { %v3073_v35 = vor.u32 %v3072_v14, %v3071_v59  ;;  %v2209_v40 = vxor.u32 2147483648, %v7038_v51  ;;  %vm8446_vm12 = vcmp.lt.s32.totalorder %v7085_v36, 0  ;;  %vm3077_vm14 = vcmp.lt.s32.totalorder %v3058_v17, 1 }
 0x2d3   : > { %v7368_v21 = vpop.f32.mrb[22].mxu0  ;;  %v3076_v31 = vor.u32 %v3075_v55, %v3074_v2  ;;  %vm3080_vm6 = vcmp.lt.s32.totalorder %v3058_v17, 4  ;;  %v3009_v19 = vclz %v4476_v62  ;;  %v3061_v33 = vshrl.u32 %v8499_v6, %v3060_v26 }
 0x2d4   : > { %v4572_v24 = vpop.f32.mrb[23].mxu0  ;;  %vm3079_vm15 = vcmp.lt.s32.totalorder %v3058_v17, 3  ;;  %v3082_v54 = vsel %vm3080_vm6, %v3070_v18, 2102212464  ;;  %v3085_v43 = vsel %vm3077_vm14, %v3064_v16, %v3067_v7  ;;  %v3086_v61 = vsel %vm3080_vm6, %v3073_v35, 920167782 }
 0x2d5   : > { %v2917_v24 = vand.u32 2147483647, %v2916_v20  ;;  %v7396_v20 = vpop.eup %4812  ;;  %v3089_v50 = vsel %vm3077_vm14, %v3067_v7, %v3070_v18  ;;  %v3090_v22 = vsel %vm3080_vm6, %v3076_v31, 1326507024  ;;  %v4477_v52 = vadd.s32 4294967294, %v3009_v19 }
 0x2d6   : > { %8628 = vst [vmem:[#allocation4_spill] sm:$0xff] %v7396_v20  ;;  %vm3078_vm3 = vcmp.lt.s32.totalorder %v3058_v17, 2  ;;  %v3087_v51 = vsel %vm3079_vm15, %v3070_v18, %v3086_v61  ;;  %v3157_v59 = vor.u32 8388608, %v7366_v25  ;;  %v3081_v20 = vsel %vm3077_vm14, %v3061_v33, %v3064_v16 }
 0x2d7   : > { %v2920_v57 = vmul.f32 %v2919_v27, %v2917_v24  ;;  %v3083_v27 = vsel %vm3079_vm15, %v3067_v7, %v3082_v54  ;;  %v3091_v55 = vsel %vm3079_vm15, %v3073_v35, %v3090_v22  ;;  %vm4478_vm10 = vcmp.lt.s32.totalorder %v4477_v52, 0 }
 0x2d8   : > { %v3088_v62 = vsel %vm3078_vm3, %v3085_v43, %v3087_v51  ;;  %v3092_v26 = vsel %vm3078_vm3, %v3089_v50, %v3091_v55  ;;  %v3161_v24 = vsel %vm3160_vm8, %v3159_v11, 0  ;;  %v3012_v2 = vsel %vm4478_vm10, 0, %v4477_v52 }
 0x2d9   : > { %v2921_v14 = vxor.u32 2147483648, %v2920_v57  ;;  %v7405_v34 = vmul.u32.u64.low %v7362_v28, %v3092_v26  ;;  %v7406_v31 = vmul.u32.u64.high %v7362_v28, %v3092_v26, %v7405_v34  ;;  %v7411_v18 = vsel %vm2208_vm7, %v2209_v40, %v7040_v47 }
 0x2da   : > { %v3013_v25 = vsub.s32 32, %v3012_v2  ;;  %v3017_v16 = vsub.s32 4294967266, %v3012_v2  ;;  %v3084_v35 = vsel %vm3078_vm3, %v3081_v20, %v3083_v27  ;;  %v7414_v7 = vshrl.u32 %v3161_v24, 5 }
 0x2db   : > { %v7417_v19 = vmul.u32.u64.low %v7362_v28, %v3088_v62  ;;  %v7418_v33 = vmul.u32.u64.high %v7362_v28, %v3088_v62, %v7417_v19  ;;  %v3163_v11 = vand.u32 31, %v3161_v24  ;;  %v7421_v54 = vshll.u32 %v3157_v59, 8 }
 0x2dc   : > { %v2922_v47 = vsel %vm8446_vm12, %v2921_v14, %v2920_v57  ;;  %v3014_v40 = vshll.u32 %v7380_v63, %v3012_v2  ;;  %v3015_v17 = vshrl.u32 %v7356_v8, %v3013_v25  ;;  %v3018_v20 = vadd.s32 127, %v3017_v16 }
 0x2dd   : > { %v3100_v61 = vmul.u32 %v7362_v28, %v3084_v35  ;;  %v3164_v50 = vsub.s32 32, %v3163_v11  ;;  %vm3181_vm10 = vcmp.lt.s32.totalorder %v7414_v7, 1  ;;  %v7433_v22 = vadd.f32 %v7082_v60, %v7368_v21 }
 0x2de   : > { %v3016_v52 = vor.u32 %v3015_v17, %v3014_v40  ;;  %v3019_v51 = vshll.u32 %v3018_v20, 23  ;;  %vm3102_vm3 = vc.u32 %v7406_v31, %v7417_v19  ;;  %v3166_v57 = vshll.u32 %v8499_v6, %v3163_v11 }
 0x2df   : > { %vm3182_vm15 = vcmp.lt.s32.totalorder %v7414_v7, 2  ;;  %v8629_v8 = vand.u32 2147483647, %v7085_v36  ;;  %v3103_v63 = vadd.s32 1, %v7418_v33  ;;  %v3167_v21 = vshrl.u32 %v8497_v42, %v3164_v50 }
 0x2e0   : > { %v3169_v59 = vshll.u32 %v8497_v42, %v3163_v11  ;;  %v3170_v14 = vshrl.u32 %v8502_v44, %v3164_v50  ;;  %v3020_v27 = vor.u32 4788187, %v3019_v51  ;;  %v3172_v55 = vshll.u32 %v8502_v44, %v3163_v11 }
 0x2e1   : > { %vm7441_vm6 = vcmp.le.f32.partialorder %v8629_v8, 0.7853982  ;;  %v3173_v62 = vshrl.u32 %v8479_v53, %v3164_v50  ;;  %v3175_v26 = vshll.u32 %v8479_v53, %v3163_v11  ;;  %vm2204_vm7 = vcmp.lt.s32.totalorder %v7339_v48, 2 }
 0x2e2   : > { %v7423_v34 = vpop.f32.mrb[24].mxu0  ;;  %v3104_v24 = vsel %vm3102_vm3, %v3103_v63, %v7418_v33  ;;  %v3168_v2 = vor.u32 %v3167_v21, %v3166_v57  ;;  %v3171_v25 = vor.u32 %v3170_v14, %v3169_v59  ;;  %v3176_v16 = vshrl.u32 %v8496_v13, %v3164_v50 }
 0x2e3   : > { %v4575_v43 = vpop.f32.mrb[25].mxu0  ;;  %vm8455_vm8 = vcmp.lt.s32.totalorder %v7144_v29, 0  ;;  %v3021_v35 = vand.u32 2147483647, %v3020_v27  ;;  %v3023_v40 = vcvt.s32.f32 %v3016_v52  ;;  %v3105_v17 = vadd.s32 %v3104_v24, %v3100_v61 }
 0x2e4   : > { %v3174_v20 = vor.u32 %v3173_v62, %v3172_v55  ;;  %v3177_v43 = vor.u32 %v3176_v16, %v3175_v26  ;;  %v3178_v51 = vshll.u32 %v8496_v13, %v3163_v11  ;;  %v3179_v8 = vshrl.u32 %v8478_v39, %v3164_v50 }
 0x2e5   : > { %vm3184_vm14 = vcmp.lt.s32.totalorder %v7414_v7, 4  ;;  %vm2201_vm12 = vweird.f32 %v6719_v9  ;;  %v3024_v33 = vmul.f32 %v3023_v40, %v3021_v35  ;;  %v3106_v57 = vadd.s32 536870912, %v3105_v17 }
 0x2e6   : > { %v3165_v63 = vshrl.u32 %v8499_v6, %v3164_v50  ;;  %v3186_v21 = vsel %vm3184_vm14, %v3174_v20, 2102212464  ;;  %v8632_v52 = vand.u32 2147483647, %v7144_v29  ;;  %v3180_v11 = vor.u32 %v3179_v8, %v3178_v51 }
 0x2e7   : > { %vm3183_vm13 = vcmp.lt.s32.totalorder %v7414_v7, 3  ;;  %v3189_v59 = vsel %vm3181_vm10, %v3168_v2, %v3171_v25  ;;  %v3190_v14 = vsel %vm3184_vm14, %v3177_v43, 920167782  ;;  %v7474_v27 = vshrl.u32 %v3106_v57, 30 }
 0x2e8   : > { %vm7465_vm3 = vcmp.le.f32.partialorder %v8632_v52, 0.7853982  ;;  %v3185_v50 = vsel %vm3181_vm10, %v3165_v63, %v3168_v2  ;;  %v3187_v55 = vsel %vm3183_vm13, %v3171_v25, %v3186_v21  ;;  %v3191_v62 = vsel %vm3183_vm13, %v3174_v20, %v3190_v14 }
 0x2e9   : > { %v3025_v26 = vxor.u32 2147483648, %v3024_v33  ;;  %v3192_v24 = vsel %vm3182_vm15, %v3189_v59, %v3191_v62  ;;  %v3193_v16 = vsel %vm3181_vm10, %v3171_v25, %v3174_v20  ;;  %v3194_v35 = vsel %vm3184_vm14, %v3180_v11, 1326507024 }
 0x2ea   : > { %v2925_v40 = vsel %vm7441_vm6, %v7085_v36, %v2922_v47  ;;  %v3108_v51 = vshll.u32 %v7474_v27, 30  ;;  %v3195_v8 = vsel %vm3183_vm13, %v3177_v43, %v3194_v35  ;;  %v8449_v2 = vand.u32 2147483647, %v7433_v22 }
 0x2eb   : > { %v3196_v57 = vsel %vm3182_vm15, %v3193_v16, %v3195_v8  ;;  %v7492_v63 = vmul.u32.u64.low %v7421_v54, %v3192_v24  ;;  %v7493_v21 = vmul.u32.u64.high %v7421_v54, %v3192_v24, %v7492_v63  ;;  %v2211_v25 = vsel %vm2204_vm7, %v7371_v15, %v7411_v18 }
 0x2ec   : > { %v7499_v20 = vsub.s32 %v3105_v17, %v3108_v51  ;;  %v3188_v47 = vsel %vm3182_vm15, %v3185_v50, %v3187_v55  ;;  %v7504_v43 = vmul.u32.u64.low %v7421_v54, %v3196_v57  ;;  %v7505_v52 = vmul.u32.u64.high %v7421_v54, %v3196_v57, %v7504_v43 }
 0x2ed   : > { %4814 = vcosq.f32 %v2925_v40  ;;  %v3026_v11 = vsel %vm8455_vm8, %v3025_v26, %v3024_v33  ;;  %v3256_v59 = vand.u32 2139095040, %v7433_v22  ;;  %v3260_v15 = vand.u32 8388607, %v8449_v2 }
 0x2ee   : > { %v3111_v48 = vsub.s32 0, %v7499_v20  ;;  %v7516_v18 = vadd.f32 %v7082_v60, %v7423_v34  ;;  %v2212_v7 = vsel %vm2201_vm12, nan, %v2211_v25  ;;  %4816 = vsinq.f32 %v2925_v40 }
 0x2ef   : > { %v3204_v17 = vmul.u32 %v7421_v54, %v3188_v47  ;;  %v3207_v33 = vadd.s32 1, %v7493_v21  ;;  %v3257_v50 = vshrl.u32 %v3256_v59, 23  ;;  %4495 = vmatmul.mubr.msk.f32.vlgmr.msra.gmra.mrb[0].mxu1 %vm1939_vm9, %v2212_v7  ;;  %v3029_v55 = vsel %vm7465_vm3, %v7144_v29, %v3026_v11 }
 0x2f0   : > { %8635 = vst [vmem:[#allocation12_spill] sm:$0xff] %v7516_v18  ;;  %v4480_v62 = vmin.u32 %v3111_v48, %v7499_v20  ;;  %vm3206_vm13 = vc.u32 %v7505_v52, %v7492_v63  ;;  %3590 = vmatprep.mubr.f32.mxu1 %v8529_v37  ;;  %v8636_v9 = vsub.s32 4, %v6805_v5  ;;  %vm8637_vm12 = vcmp.lt.s32.totalorder %v6728_v56, 0 }
 0x2f1   : > { %v3208_v54 = vsel %vm3206_vm13, %v3207_v33, %v7493_v21  ;;  %v4487_v34 = vadd.s32 4294967169, %v3257_v50  ;;  %v3261_v26 = vor.u32 8388608, %v3260_v15  ;;  %v8448_v24 = vand.u32 2147483647, %v7516_v18 }
 0x2f2   : > { %v2300_v60 = vsel %vm8637_vm12, %v8636_v9, %v6805_v5  ;;  %v3101_v16 = vadd.s32 %v7417_v19, %v7406_v31  ;;  %v3113_v35 = vclz %v4480_v62  ;;  %v3209_v40 = vadd.s32 %v3208_v54, %v3204_v17 }
 0x2f3   : > { %v3360_v51 = vand.u32 2139095040, %v7516_v18  ;;  %4818 = vcosq.f32 %v3029_v55  ;;  %v3263_v8 = vadd.s32 1, %v4487_v34  ;;  %v7541_v57 = vand.u32 8388607, %v8448_v24 }
 0x2f4   : > { %v2302_v5 = vsel %vm6997_vm1, 0, %v2300_v60  ;;  %4820 = vsinq.f32 %v3029_v55  ;;  %v4481_v21 = vadd.s32 4294967294, %v3113_v35  ;;  %v3210_v25 = vadd.s32 536870912, %v3209_v40 }
 0x2f5   : > { %v3361_v47 = vshrl.u32 %v3360_v51, 23  ;;  %v7546_v43 = vadd.s32 %v7492_v63, %v7505_v52  ;;  %vm3264_vm10 = vcmp.gt.s32.totalorder %v3263_v8, 0  ;;  %v7548_v31 = vshll.u32 %v3261_v26, 8 }
 0x2f6   : > { %vm4482_vm15 = vcmp.lt.s32.totalorder %v4481_v21, 0  ;;  %v7551_v11 = vshrl.u32 %v3210_v25, 30  ;;  %v3265_v59 = vsel %vm3264_vm10, %v3263_v8, 0  ;;  %v7553_v48 = vadd.s32 3, %v2302_v5 }
 0x2f7   : > { %v7555_v0 = vpop.eup %4814  ;;  %v3116_v15 = vsel %vm4482_vm15, 0, %v4481_v21  ;;  %v3267_v7 = vand.u32 31, %v3265_v59  ;;  %v7557_v17 = vadd.s32 4294967169, %v3361_v47  ;;  %v3266_v55 = vshrl.u32 %v3265_v59, 5 }
 0x2f8   : > { %8638 = vst [vmem:[#allocation14_spill] sm:$0xff] %v7551_v11  ;;  %v3117_v52 = vsub.s32 32, %v3116_v15  ;;  %v3121_v33 = vsub.s32 4294967266, %v3116_v15  ;;  %v3212_v50 = vshll.u32 %v7551_v11, 30  ;;  %v7561_v62 = vpop.eup %4816  ;;  %v3118_v9 = vshll.u32 %v7499_v20, %v3116_v15 }
 0x2f9   : > { %v3268_v60 = vsub.s32 32, %v3267_v7  ;;  %v3270_v54 = vshll.u32 %v8499_v6, %v3267_v7  ;;  %v3273_v34 = vshll.u32 %v8497_v42, %v3267_v7  ;;  %v3276_v8 = vshll.u32 %v8502_v44, %v3267_v7 }
 0x2fa   : > { %v3119_v26 = vshrl.u32 %v3101_v16, %v3117_v52  ;;  %v3122_v35 = vadd.s32 127, %v3121_v33  ;;  %v7566_v51 = vsub.s32 %v3209_v40, %v3212_v50  ;;  %v3279_v47 = vshll.u32 %v8479_v53, %v3267_v7 }
 0x2fb   : > { %v3271_v5 = vshrl.u32 %v8497_v42, %v3268_v60  ;;  %v3274_v21 = vshrl.u32 %v8502_v44, %v3268_v60  ;;  %v3277_v25 = vshrl.u32 %v8479_v53, %v3268_v60  ;;  %v3280_v24 = vshrl.u32 %v8496_v13, %v3268_v60 }
 0x2fc   : > { %v3120_v20 = vor.u32 %v3119_v26, %v3118_v9  ;;  %v3123_v59 = vshll.u32 %v3122_v35, 23  ;;  %v3215_v15 = vsub.s32 0, %v7566_v51  ;;  %vm8454_vm1 = vcmp.lt.s32.totalorder %v7302_v45, 0 }
 0x2fd   : > { %v7575_v16 = vpop.eup %4818  ;;  %v3269_v40 = vshrl.u32 %v8499_v6, %v3268_v60  ;;  %v3272_v52 = vor.u32 %v3271_v5, %v3270_v54  ;;  %v3275_v33 = vor.u32 %v3274_v21, %v3273_v34  ;;  %v3278_v50 = vor.u32 %v3277_v25, %v3276_v8 }
 0x2fe   : > { %v7579_v2 = vpop.eup %4820  ;;  %v8639_v19 = vand.u32 2147483647, %v7302_v45  ;;  %v3124_v26 = vor.u32 4788187, %v3123_v59  ;;  %v4484_v35 = vmin.u32 %v3215_v15, %v7566_v51  ;;  %v3281_v63 = vor.u32 %v3280_v24, %v3279_v47 }
 0x2ff   : > { %v3282_v14 = vshll.u32 %v8496_v13, %v3267_v7  ;;  %v3127_v11 = vcvt.s32.f32 %v3120_v20  ;;  %v3283_v18 = vshrl.u32 %v8478_v39, %v3268_v60  ;;  %vm3285_vm14 = vcmp.lt.s32.totalorder %v3266_v55, 1 }
 0x300   : > { %vm7583_vm7 = vcmp.le.f32.partialorder %v8639_v19, 0.7853982  ;;  %vm3286_vm13 = vcmp.lt.s32.totalorder %v3266_v55, 2  ;;  %v3125_v54 = vand.u32 2147483647, %v3124_v26  ;;  %v3217_v34 = vclz %v4484_v35 }
 0x301   : > { %vm3287_vm12 = vcmp.lt.s32.totalorder %v3266_v55, 3  ;;  %vm3288_vm10 = vcmp.lt.s32.totalorder %v3266_v55, 4  ;;  %v3284_v8 = vor.u32 %v3283_v18, %v3282_v14  ;;  %v3293_v5 = vsel %vm3285_vm14, %v3272_v52, %v3275_v33 }
 0x302   : > { %v3290_v19 = vsel %vm3288_vm10, %v3278_v50, 2102212464  ;;  %v3294_v21 = vsel %vm3288_vm10, %v3281_v63, 920167782  ;;  %v3128_v25 = vmul.f32 %v3127_v11, %v3125_v54  ;;  %v4485_v59 = vadd.s32 4294967294, %v3217_v34 }
 0x303   : > { %v3289_v24 = vsel %vm3285_vm14, %v3269_v40, %v3272_v52  ;;  %v3295_v7 = vsel %vm3287_vm12, %v3278_v50, %v3294_v21  ;;  %v3291_v47 = vsel %vm3287_vm12, %v3275_v33, %v3290_v19  ;;  %v3297_v20 = vsel %vm3285_vm14, %v3275_v33, %v3278_v50 }
 0x304   : > { %v3296_v60 = vsel %vm3286_vm13, %v3293_v5, %v3295_v7  ;;  %v3298_v15 = vsel %vm3288_vm10, %v3284_v8, 1326507024  ;;  %v3129_v26 = vxor.u32 2147483648, %v3128_v25  ;;  %vm4486_vm15 = vcmp.lt.s32.totalorder %v4485_v59, 0 }
 0x305   : > { %v3299_v14 = vsel %vm3287_vm12, %v3281_v63, %v3298_v15  ;;  %v2313_v18 = vxor.u32 2147483648, %v7194_v4  ;;  %v3220_v35 = vsel %vm4486_vm15, 0, %v4485_v59  ;;  %v3292_v50 = vsel %vm3286_vm13, %v3289_v24, %v3291_v47 }
 0x306   : > { %v3300_v11 = vsel %vm3286_vm13, %v3297_v20, %v3299_v14  ;;  %v7600_v40 = vmul.u32.u64.low %v7548_v31, %v3296_v60  ;;  %v7601_v52 = vmul.u32.u64.high %v7548_v31, %v3296_v60, %v7600_v40  ;;  %v3130_v54 = vsel %vm8454_vm1, %v3129_v26, %v3128_v25 }
 0x307   : > { %v3221_v34 = vsub.s32 32, %v3220_v35  ;;  %v3225_v33 = vsub.s32 4294967266, %v3220_v35  ;;  %v3133_v63 = vsel %vm7583_vm7, %v7302_v45, %v3130_v54  ;;  %v3367_v5 = vadd.s32 1, %v7557_v17 }
 0x308   : > { %v7611_v8 = vmul.u32.u64.low %v7548_v31, %v3300_v11  ;;  %v7612_v19 = vmul.u32.u64.high %v7548_v31, %v3300_v11, %v7611_v8  ;;  %v3222_v21 = vshll.u32 %v7566_v51, %v3220_v35  ;;  %v8642_v25 = vsub.s32 4, %v6862_v41 }
 0x309   : > { %v3223_v59 = vshrl.u32 %v7546_v43, %v3221_v34  ;;  %v3226_v7 = vadd.s32 127, %v3225_v33  ;;  %vm8643_vm14 = vcmp.lt.s32.totalorder %v6761_v32, 0  ;;  %v3308_v24 = vmul.u32 %v7548_v31, %v3292_v50 }
 0x30a   : > { %v7622_v55 = vsel %vm8643_vm14, %v8642_v25, %v6862_v41  ;;  %v3311_v47 = vadd.s32 1, %v7601_v52  ;;  %vm3368_vm13 = vcmp.gt.s32.totalorder %v3367_v5, 0  ;;  %v8644_v60 = vor.u32 8388608, %v7541_v57 }
 0x30b   : > { %4822 = vcosq.f32 %v3133_v63  ;;  %v3224_v51 = vor.u32 %v3223_v59, %v3222_v21  ;;  %v3227_v43 = vshll.u32 %v3226_v7, 23  ;;  %v3369_v20 = vsel %vm3368_vm13, %v3367_v5, 0 }
 0x30c   : > { %v7628_v17 = vshll.u32 %v8644_v60, 8  ;;  %4824 = vsinq.f32 %v3133_v63  ;;  %vm8456_vm12 = vcmp.lt.s32.totalorder %v7336_v30, 0  ;;  %vm3310_vm10 = vc.u32 %v7612_v19, %v7600_v40 }
 0x30d   : > { %v3371_v41 = vand.u32 31, %v3369_v20  ;;  %v7634_v31 = vand.u32 3, %v7553_v48  ;;  %v8645_v15 = vand.u32 2147483647, %v7336_v30  ;;  %v3228_v26 = vor.u32 4788187, %v3227_v43 }
 0x30e   : > { %v3312_v14 = vsel %vm3310_vm10, %v3311_v47, %v7601_v52  ;;  %v3370_v35 = vshrl.u32 %v3369_v20, 5  ;;  %v2406_v11 = vsel %vm7093_vm5, 0, %v7622_v55  ;;  %v3231_v54 = vcvt.s32.f32 %v3224_v51 }
 0x30f   : > { %vm7638_vm15 = vcmp.le.f32.partialorder %v8645_v15, 0.7853982  ;;  %v3313_v34 = vadd.s32 %v3312_v14, %v3308_v24  ;;  %v3372_v33 = vsub.s32 32, %v3371_v41  ;;  %v3374_v48 = vshll.u32 %v8499_v6, %v3371_v41 }
 0x310   : > { %v3229_v50 = vand.u32 2147483647, %v3228_v26  ;;  %v3377_v63 = vshll.u32 %v8497_v42, %v3371_v41  ;;  %v3380_v8 = vshll.u32 %v8502_v44, %v3371_v41  ;;  %v3383_v5 = vshll.u32 %v8479_v53, %v3371_v41 }
 0x311   : > { %v3314_v21 = vadd.s32 536870912, %v3313_v34  ;;  %v3375_v52 = vshrl.u32 %v8497_v42, %v3372_v33  ;;  %v3378_v59 = vshrl.u32 %v8502_v44, %v3372_v33  ;;  %v3386_v3 = vshll.u32 %v8496_v13, %v3371_v41 }
 0x312   : > { %v3232_v7 = vmul.f32 %v3231_v54, %v3229_v50  ;;  %v3381_v25 = vshrl.u32 %v8479_v53, %v3372_v33  ;;  %v3384_v55 = vshrl.u32 %v8496_v13, %v3372_v33  ;;  %v3387_v24 = vshrl.u32 %v8478_v39, %v3372_v33 }
 0x313   : > { %v7656_v47 = vshrl.u32 %v3314_v21, 30  ;;  %v3373_v60 = vshrl.u32 %v8499_v6, %v3372_v33  ;;  %v3376_v51 = vor.u32 %v3375_v52, %v3374_v48  ;;  %v3379_v43 = vor.u32 %v3378_v59, %v3377_v63 }
 0x314   : > { %v3233_v20 = vxor.u32 2147483648, %v3232_v7  ;;  %v3382_v15 = vor.u32 %v3381_v25, %v3380_v8  ;;  %v3385_v42 = vor.u32 %v3384_v55, %v3383_v5  ;;  %vm3389_vm5 = vcmp.lt.s32.totalorder %v3370_v35, 1 }
 0x315   : > { %vm2308_vm14 = vcmp.lt.s32.totalorder %v7634_v31, 2  ;;  %v3316_v44 = vshll.u32 %v7656_v47, 30  ;;  %v3388_v41 = vor.u32 %v3387_v24, %v3386_v3  ;;  %vm3391_vm13 = vcmp.lt.s32.totalorder %v3370_v35, 3  ;;  %v7662_v39 = vpop.eup %4822 }
 0x316   : > { %vm3392_vm10 = vcmp.lt.s32.totalorder %v3370_v35, 4  ;;  %vm2305_vm1 = vweird.f32 %v6728_v56  ;;  %v3234_v53 = vsel %vm8456_vm12, %v3233_v20, %v3232_v7  ;;  %v3393_v13 = vsel %vm3389_vm5, %v3373_v60, %v3376_v51  ;;  %v7669_v14 = vpop.eup %4824 }
 0x317   : > { %v3394_v6 = vsel %vm3392_vm10, %v3382_v15, 2102212464  ;;  %v3397_v26 = vsel %vm3389_vm5, %v3376_v51, %v3379_v43  ;;  %v3237_v54 = vsel %vm7638_vm15, %v7336_v30, %v3234_v53  ;;  %v7674_v33 = vsub.s32 %v3313_v34, %v3316_v44 }
 0x318   : > { %v3395_v48 = vsel %vm3391_vm13, %v3379_v43, %v3394_v6  ;;  %v3398_v50 = vsel %vm3392_vm10, %v3385_v42, 920167782  ;;  %vm3390_vm8 = vcmp.lt.s32.totalorder %v3370_v35, 2  ;;  %v3401_v8 = vsel %vm3389_vm5, %v3379_v43, %v3382_v15 }
 0x319   : > { %v3399_v63 = vsel %vm3391_vm13, %v3382_v15, %v3398_v50  ;;  %vm2309_vm12 = vcmp.eq.s32.totalorder %v7634_v31, 0  ;;  %4826 = vcosq.f32 %v3237_v54  ;;  %v3319_v5 = vsub.s32 0, %v7674_v33 }
 0x31a   : > { %v3400_v21 = vsel %vm3390_vm8, %v3397_v26, %v3399_v63  ;;  %v3402_v52 = vsel %vm3392_vm10, %v3388_v41, 1326507024  ;;  %v3396_v59 = vsel %vm3390_vm8, %v3393_v13, %v3395_v48  ;;  %v8648_v24 = vxor.u32 2147483648, %v7196_v38 }
 0x31b   : > { %v3403_v34 = vsel %vm3391_vm13, %v3385_v42, %v3402_v52  ;;  %v7685_v3 = vmul.u32.u64.low %v7628_v17, %v3400_v21  ;;  %v7686_v7 = vmul.u32.u64.high %v7628_v17, %v3400_v21, %v7685_v3  ;;  %v4488_v25 = vmin.u32 %v3319_v5, %v7674_v33  ;;  %v8651_v5 = vld [vmem:[#allocation3_spill] sm:$0xff] }
 0x31c   : > { %v3404_v55 = vsel %vm3390_vm8, %v3401_v8, %v3403_v34  ;;  %v2311_v60 = vsel %vm2309_vm12, %v7194_v4, %v8648_v24  ;;  %vm2312_vm5 = vcmp.eq.s32.totalorder %v7634_v31, 2  ;;  %v2410_v20 = vadd.s32 3, %v2406_v11 }
 0x31d   : > { %v7694_v51 = vmul.u32.u64.low %v7628_v17, %v3404_v55  ;;  %v7695_v43 = vmul.u32.u64.high %v7628_v17, %v3404_v55, %v7694_v51  ;;  %v2314_v35 = vsel %vm2312_vm5, %v2313_v18, %v7196_v38  ;;  %v3321_v15 = vclz %v4488_v25 }
 0x31e   : > { %v2315_v42 = vsel %vm2308_vm14, %v2311_v60, %v2314_v35  ;;  %v2414_v44 = vxor.u32 2147483648, %v7223_v12  ;;  %v2417_v41 = vxor.u32 2147483648, %v7216_v46  ;;  %v3415_v53 = vadd.s32 1, %v7686_v7 }
 0x31f   : > { %v2316_v13 = vsel %vm2305_vm1, nan, %v2315_v42  ;;  %v2411_v6 = vand.u32 3, %v2410_v20  ;;  %v2507_v26 = vsub.s32 4, %v6932_v23  ;;  %4828 = vsinq.f32 %v3237_v54  ;;  %v8649_v54 = vld [vmem:[#allocation26_spill] sm:$0xff]  ;;  %v8655_v20 = vld [vmem:[#allocation15_spill] sm:$0xff] }
 0x320   : > { %v3309_v4 = vadd.s32 %v7600_v40, %v7612_v19  ;;  %v4489_v38 = vadd.s32 4294967294, %v3321_v15  ;;  %4496 = vmatmul.mubr.msk.f32.gmra.mrb[2].mxu1 %vm1939_vm9, %v2316_v13  ;;  %vm2409_vm8 = vweird.f32 %v6761_v32  ;;  %v3412_v18 = vmul.u32 %v7628_v17, %v3396_v59  ;;  %v8654_v32 = vld [vmem:[#allocation27_spill] sm:$0xff] }
 0x321   : > { %vm3414_vm12 = vc.u32 %v7695_v43, %v7685_v3  ;;  %3596 = vmatprep.mubr.f32.mxu1 %v8529_v37  ;;  %vm2412_vm14 = vcmp.lt.s32.totalorder %v2411_v6, 2  ;;  %vm2413_vm1 = vcmp.eq.s32.totalorder %v2411_v6, 0  ;;  %vm2416_vm10 = vcmp.eq.s32.totalorder %v2411_v6, 2  ;;  %v8658_v6 = vld [vmem:[#allocation7_spill] sm:$0xff] }
 0x322   : > { %vm4490_vm13 = vcmp.lt.s32.totalorder %v4489_v38, 0  ;;  %v3416_v56 = vsel %vm3414_vm12, %v3415_v53, %v7686_v7  ;;  %v2415_v31 = vsel %vm2413_vm1, %v7216_v46, %v2414_v44  ;;  %v2418_v11 = vsel %vm2416_vm10, %v2417_v41, %v7223_v12  ;;  %v8653_v12 = vld [vmem:[#allocation8_spill] sm:$0xff] }
 0x323   : > { %v3324_v40 = vsel %vm4490_vm13, 0, %v4489_v38  ;;  %v3417_v19 = vadd.s32 %v3416_v56, %v3412_v18  ;;  %vm8650_vm5 = vcmp.lt.s32.totalorder %v8649_v54, 0  ;;  %v7721_v48 = vpop.eup %4826  ;;  %v2419_v8 = vsel %vm2412_vm14, %v2415_v31, %v2418_v11 }
 0x324   : > { %v2508_v17 = vsel %vm8650_vm5, %v2507_v26, %v6932_v23  ;;  %v3325_v50 = vsub.s32 32, %v3324_v40  ;;  %v3329_v63 = vsub.s32 4294967266, %v3324_v40  ;;  %v2518_v21 = vxor.u32 2147483648, %v8651_v5 }
 0x325   : > { %v3418_v52 = vadd.s32 536870912, %v3417_v19  ;;  %v2420_v46 = vsel %vm2409_vm8, nan, %v2419_v8  ;;  %v2510_v34 = vsel %vm7126_vm0, 0, %v2508_v17  ;;  %vm2513_vm12 = vweird.f32 %v8649_v54 }
 0x326   : > { %v2611_v7 = vsub.s32 4, %v8653_v12  ;;  %v3326_v23 = vshll.u32 %v7674_v33, %v3324_v40  ;;  %v3327_v25 = vshrl.u32 %v3309_v4, %v3325_v50  ;;  %v3330_v55 = vadd.s32 127, %v3329_v63  ;;  %4497 = vmatmul.mubr.msk.f32.gmra.mrb[4].mxu1 %vm1939_vm9, %v2420_v46 }
 0x327   : > { %v2514_v24 = vadd.s32 3, %v2510_v34  ;;  %v7733_v60 = vadd.s32 %v7685_v3, %v7695_v43  ;;  %v7735_v51 = vshrl.u32 %v3418_v52, 30  ;;  %3602 = vmatprep.mubr.f32.mxu1 %v8529_v37  ;;  %v2521_v35 = vxor.u32 2147483648, %v8654_v32 }
 0x328   : > { %vm8656_vm0 = vcmp.lt.s32.totalorder %v8655_v20, 0  ;;  %v3328_v42 = vor.u32 %v3327_v25, %v3326_v23  ;;  %v3331_v33 = vshll.u32 %v3330_v55, 23  ;;  %v2622_v13 = vxor.u32 2147483648, %v7313_v58  ;;  %v8663_v55 = vld [vmem:[#allocation17_spill] sm:$0xff] }
 0x329   : > { %v2612_v15 = vsel %vm8656_vm0, %v2611_v7, %v8653_v12  ;;  %v2515_v44 = vand.u32 3, %v2514_v24  ;;  %v3420_v3 = vshll.u32 %v7735_v51, 30  ;;  %v2715_v26 = vsub.s32 4, %v8658_v6  ;;  %v7748_v4 = vpop.eup %4828 }
 0x32a   : > { %v2614_v53 = vsel %vm7157_vm11, 0, %v2612_v15  ;;  %v8659_v38 = vand.u32 2147483647, %v7433_v22  ;;  %v3332_v56 = vor.u32 4788187, %v3331_v33  ;;  %v3335_v31 = vcvt.s32.f32 %v3328_v42  ;;  %v8665_v42 = vld [vmem:[#allocation29_spill] sm:$0xff] }
 0x32b   : > { %v2618_v43 = vadd.s32 3, %v2614_v53  ;;  %vm2517_vm11 = vcmp.eq.s32.totalorder %v2515_v44, 0  ;;  %v2625_v40 = vxor.u32 2147483648, %v7304_v10  ;;  %v7757_v11 = vsub.s32 %v3417_v19, %v3420_v3  ;;  %v8669_v53 = vld [vmem:[#allocation4_spill] sm:$0xff] }
 0x32c   : > { %vm7752_vm14 = vcmp.le.f32.partialorder %v8659_v38, 0.7853982  ;;  %v2519_v17 = vsel %vm2517_vm11, %v8654_v32, %v2518_v21  ;;  %vm2520_vm1 = vcmp.eq.s32.totalorder %v2515_v44, 2  ;;  %v3333_v63 = vand.u32 2147483647, %v3332_v56  ;;  %v8672_v56 = vld [vmem:[#allocation21_spill] sm:$0xff] }
 0x32d   : > { %v2619_v50 = vand.u32 3, %v2618_v43  ;;  %vm2516_vm13 = vcmp.lt.s32.totalorder %v2515_v44, 2  ;;  %v2522_v8 = vsel %vm2520_vm1, %v2521_v35, %v8651_v5  ;;  %vm8662_vm10 = vcmp.lt.s32.totalorder %v6938_v49, 0  ;;  %v8664_v35 = vld [vmem:[#allocation31_spill] sm:$0xff]  ;;  %v8667_v44 = vld [vmem:[#allocation2_spill] sm:$0xff] }
 0x32e   : > { %v2716_v52 = vsel %vm8662_vm10, %v2715_v26, %v8658_v6  ;;  %v3423_v46 = vsub.s32 0, %v7757_v11  ;;  %v2523_v59 = vsel %vm2516_vm13, %v2519_v17, %v2522_v8  ;;  %vm2617_vm5 = vweird.f32 %v8655_v20  ;;  %v8671_v26 = vld [vmem:[#allocation13_spill] sm:$0xff] }
 0x32f   : > { %vm2621_vm0 = vcmp.eq.s32.totalorder %v2619_v50, 0  ;;  %v3336_v19 = vmul.f32 %v3335_v31, %v3333_v63  ;;  %v2524_v21 = vsel %vm2513_vm12, nan, %v2523_v59  ;;  %vm2624_vm11 = vcmp.eq.s32.totalorder %v2619_v50, 2 }
 0x330   : > { %v2623_v34 = vsel %vm2621_vm0, %v7304_v10, %v2622_v13  ;;  %vm2721_vm8 = vweird.f32 %v6938_v49  ;;  %v4492_v5 = vmin.u32 %v3423_v46, %v7757_v11  ;;  %4498 = vmatmul.mubr.msk.f32.gmra.mrb[6].mxu1 %vm1939_vm9, %v2524_v21  ;;  %vm2620_vm1 = vcmp.lt.s32.totalorder %v2619_v50, 2  ;;  %v8674_v49 = vld [vmem:[#allocation19_spill] sm:$0xff] }
 0x331   : > { %v2626_v12 = vsel %vm2624_vm11, %v2625_v40, %v7313_v58  ;;  %v2718_v7 = vsel %vm7286_vm4, 0, %v2716_v52  ;;  %v3337_v23 = vxor.u32 2147483648, %v3336_v19  ;;  %3608 = vmatprep.mubr.f32.mxu1 %v8529_v37  ;;  %v2819_v10 = vsub.s32 4, %v8663_v55 }
 0x332   : > { %v2627_v54 = vsel %vm2620_vm1, %v2623_v34, %v2626_v12  ;;  %v2722_v25 = vadd.s32 3, %v2718_v7  ;;  %v3425_v24 = vclz %v4492_v5  ;;  %v2726_v15 = vxor.u32 2147483648, %v8664_v35 }
 0x333   : > { %v2628_v32 = vsel %vm2617_vm5, nan, %v2627_v54  ;;  %v2729_v33 = vxor.u32 2147483648, %v8665_v42  ;;  %vm8666_vm12 = vcmp.lt.s32.totalorder %v7433_v22, 0  ;;  %vm8668_vm4 = vcmp.lt.s32.totalorder %v8667_v44, 0 }
 0x334   : > { %v3338_v58 = vsel %vm8666_vm12, %v3337_v23, %v3336_v19  ;;  %v2723_v1 = vand.u32 3, %v2722_v25  ;;  %v2820_v41 = vsel %vm8668_vm4, %v2819_v10, %v8663_v55  ;;  %v2830_v3 = vxor.u32 2147483648, %v8669_v53  ;;  %4499 = vmatmul.mubr.msk.f32.gmra.mrb[8].mxu1 %vm1939_vm9, %v2628_v32 }
 0x335   : > { %v3341_v43 = vsel %vm7752_vm14, %v7433_v22, %v3338_v58  ;;  %v4493_v20 = vadd.s32 4294967294, %v3425_v24  ;;  %v2822_v6 = vsel %vm7308_vm2, 0, %v2820_v41  ;;  %v2923_v38 = vsub.s32 4, %v8671_v26  ;;  %3614 = vmatprep.mubr.f32.mxu1 %v8529_v37 }
 0x336   : > { %4830 = vcosq.f32 %v3341_v43  ;;  %vm2725_vm13 = vcmp.eq.s32.totalorder %v2723_v1, 0  ;;  %vm2728_vm10 = vcmp.eq.s32.totalorder %v2723_v1, 2  ;;  %vm2825_vm5 = vweird.f32 %v8667_v44 }
 0x337   : > { %v2833_v31 = vxor.u32 2147483648, %v8672_v56  ;;  %vm4494_vm0 = vcmp.lt.s32.totalorder %v4493_v20, 0  ;;  %vm2724_vm11 = vcmp.lt.s32.totalorder %v2723_v1, 2  ;;  %v2727_v40 = vsel %vm2725_vm13, %v8665_v42, %v2726_v15 }
 0x338   : > { %v2730_v17 = vsel %vm2728_vm10, %v2729_v33, %v8664_v35  ;;  %v3428_v50 = vsel %vm4494_vm0, 0, %v4493_v20  ;;  %v2826_v8 = vadd.s32 3, %v2822_v6  ;;  %vm8673_vm2 = vcmp.lt.s32.totalorder %v7085_v36, 0 }
 0x339   : > { %v2731_v63 = vsel %vm2724_vm11, %v2727_v40, %v2730_v17  ;;  %v2924_v52 = vsel %vm8673_vm2, %v2923_v38, %v8671_v26  ;;  %4832 = vsinq.f32 %v3341_v43  ;;  %v3429_v46 = vsub.s32 32, %v3428_v50  ;;  %v8676_v38 = vld [vmem:[#allocation12_spill] sm:$0xff] }
 0x33a   : > { %v3433_v59 = vsub.s32 4294967266, %v3428_v50  ;;  %v2732_v19 = vsel %vm2721_vm8, nan, %v2731_v63  ;;  %v3430_v21 = vshll.u32 %v7757_v11, %v3428_v50  ;;  %v2827_v34 = vand.u32 3, %v2826_v8 }
 0x33b   : > { %4500 = vmatmul.mubr.msk.f32.gmra.mrb[10].mxu1 %vm1939_vm9, %v2732_v19  ;;  %v2926_v5 = vsel %vm7441_vm6, 0, %v2924_v52  ;;  %v2934_v12 = vxor.u32 2147483648, %v7561_v62  ;;  %v3431_v7 = vshrl.u32 %v7733_v60, %v3429_v46  ;;  %v2937_v25 = vxor.u32 2147483648, %v7555_v0  ;;  %v8681_v46 = vld [vmem:[#allocation14_spill] sm:$0xff] }
 0x33c   : > { %v3434_v23 = vadd.s32 127, %v3433_v59  ;;  %3620 = vmatprep.mubr.f32.mxu1 %v8529_v37  ;;  %v2930_v54 = vadd.s32 3, %v2926_v5  ;;  %vm2828_vm1 = vcmp.lt.s32.totalorder %v2827_v34, 2  ;;  %vm2829_vm8 = vcmp.eq.s32.totalorder %v2827_v34, 0 }
 0x33d   : > { %vm2832_vm12 = vcmp.eq.s32.totalorder %v2827_v34, 2  ;;  %v3027_v11 = vsub.s32 4, %v8674_v49  ;;  %v3432_v55 = vor.u32 %v3431_v7, %v3430_v21  ;;  %v2831_v28 = vsel %vm2829_vm8, %v8672_v56, %v2830_v3 }
 0x33e   : > { %v3435_v10 = vshll.u32 %v3434_v23, 23  ;;  %v2834_v24 = vsel %vm2832_vm12, %v2833_v31, %v8669_v53  ;;  %vm2929_vm6 = vweird.f32 %v7085_v36  ;;  %v2931_v60 = vand.u32 3, %v2930_v54 }
 0x33f   : > { %v2835_v32 = vsel %vm2828_vm1, %v2831_v28, %v2834_v24  ;;  %vm8675_vm4 = vcmp.lt.s32.totalorder %v7144_v29, 0  ;;  %v3439_v42 = vcvt.s32.f32 %v3432_v55  ;;  %v3038_v44 = vxor.u32 2147483648, %v7579_v2 }
 0x340   : > { %v3028_v35 = vsel %vm8675_vm4, %v3027_v11, %v8674_v49  ;;  %v3436_v15 = vor.u32 4788187, %v3435_v10  ;;  %v2836_v33 = vsel %vm2825_vm5, nan, %v2835_v32  ;;  %v7823_v1 = vpop.eup %4830  ;;  %vm2932_vm13 = vcmp.lt.s32.totalorder %v2931_v60, 2 }
 0x341   : > { %v3030_v58 = vsel %vm7465_vm3, 0, %v3028_v35  ;;  %4501 = vmatmul.mubr.msk.f32.gmra.mrb[12].mxu1 %vm1939_vm9, %v2836_v33  ;;  %vm2933_vm10 = vcmp.eq.s32.totalorder %v2931_v60, 0  ;;  %vm2936_vm0 = vcmp.eq.s32.totalorder %v2931_v60, 2  ;;  %v3041_v13 = vxor.u32 2147483648, %v7575_v16 }
 0x342   : > { %v3034_v41 = vadd.s32 3, %v3030_v58  ;;  %v3437_v53 = vand.u32 2147483647, %v3436_v15  ;;  %3626 = vmatprep.mubr.f32.mxu1 %v8529_v37  ;;  %v2935_v3 = vsel %vm2933_vm10, %v7555_v0, %v2934_v12  ;;  %v2938_v43 = vsel %vm2936_vm0, %v2937_v25, %v7561_v62 }
 0x343   : > { %v2939_v20 = vsel %vm2932_vm13, %v2935_v3, %v2938_v43  ;;  %v3131_v6 = vsub.s32 4, %v7474_v27  ;;  %v7832_v26 = vpop.eup %4832  ;;  %v8677_v56 = vand.u32 2147483647, %v8676_v38  ;;  %vm3359_vm5 = vcmp.lt.s32.totalorder %v8676_v38, 0 }
 0x344   : > { %v3035_v61 = vand.u32 3, %v3034_v41  ;;  %v3440_v0 = vmul.f32 %v3439_v42, %v3437_v53  ;;  %v2940_v62 = vsel %vm2929_vm6, nan, %v2939_v20  ;;  %vm8680_vm8 = vcmp.lt.s32.totalorder %v7302_v45, 0 }
 0x345   : > { %vm7836_vm3 = vcmp.le.f32.partialorder %v8677_v56, 0.7853982  ;;  %4502 = vmatmul.mubr.msk.f32.gmra.mrb[14].mxu1 %vm1939_vm9, %v2940_v62  ;;  %v3132_v40 = vsel %vm8680_vm8, %v3131_v6, %v7474_v27  ;;  %vm3033_vm12 = vweird.f32 %v7144_v29  ;;  %v3235_v59 = vsub.s32 4, %v8681_v46 }
 0x346   : > { %vm3036_vm11 = vcmp.lt.s32.totalorder %v3035_v61, 2  ;;  %vm3037_vm2 = vcmp.eq.s32.totalorder %v3035_v61, 0  ;;  %vm3040_vm1 = vcmp.eq.s32.totalorder %v3035_v61, 2  ;;  %v3441_v17 = vxor.u32 2147483648, %v3440_v0  ;;  %3632 = vmatprep.mubr.f32.mxu1 %v8529_v37 }
 0x347   : > { %v3039_v50 = vsel %vm3037_vm2, %v7575_v16, %v3038_v44  ;;  %v3042_v63 = vsel %vm3040_vm1, %v3041_v13, %v7579_v2  ;;  %v3134_v36 = vsel %vm7583_vm7, 0, %v3132_v40  ;;  %v3142_v21 = vxor.u32 2147483648, %v7669_v14 }
 0x348   : > { %v3043_v8 = vsel %vm3036_vm11, %v3039_v50, %v3042_v63  ;;  %v3138_v52 = vadd.s32 3, %v3134_v36  ;;  %v3442_v19 = vsel %vm3359_vm5, %v3441_v17, %v3440_v0  ;;  %v3145_v34 = vxor.u32 2147483648, %v7662_v39 }
 0x349   : > { %v3044_v27 = vsel %vm3033_vm12, nan, %v3043_v8  ;;  %v3445_v2 = vsel %vm7836_vm3, %v8676_v38, %v3442_v19  ;;  %vm3137_vm7 = vweird.f32 %v7302_v45  ;;  %vm8682_vm6 = vcmp.lt.s32.totalorder %v7336_v30, 0 }
 0x34a   : > { %4503 = vmatmul.mubr.msk.f32.gmra.mrb[16].mxu1 %vm1939_vm9, %v3044_v27  ;;  %v3139_v29 = vand.u32 3, %v3138_v52  ;;  %v3236_v16 = vsel %vm8682_vm6, %v3235_v59, %v8681_v46  ;;  %4834 = vcosq.f32 %v3445_v2  ;;  %vm3241_vm4 = vweird.f32 %v7336_v30 }
 0x34b   : > { %3638 = vmatprep.mubr.f32.mxu1 %v8529_v37  ;;  %v3238_v9 = vsel %vm7638_vm15, 0, %v3236_v16  ;;  %v3339_v5 = vsub.s32 4, %v7656_v47  ;;  %4836 = vsinq.f32 %v3445_v2  ;;  %vm8683_vm11 = vcmp.lt.s32.totalorder %v7433_v22, 0 }
 0x34c   : > { %vm3140_vm13 = vcmp.lt.s32.totalorder %v3139_v29, 2  ;;  %vm3141_vm10 = vcmp.eq.s32.totalorder %v3139_v29, 0  ;;  %vm3144_vm0 = vcmp.eq.s32.totalorder %v3139_v29, 2  ;;  %v3242_v23 = vadd.s32 3, %v3238_v9 }
 0x34d   : > { %v3143_v12 = vsel %vm3141_vm10, %v7662_v39, %v3142_v21  ;;  %v3146_v7 = vsel %vm3144_vm0, %v3145_v34, %v7669_v14  ;;  %v3340_v54 = vsel %vm8683_vm11, %v3339_v5, %v7656_v47  ;;  %v3246_v57 = vxor.u32 2147483648, %v7748_v4 }
 0x34e   : > { %v3147_v25 = vsel %vm3140_vm13, %v3143_v12, %v3146_v7  ;;  %v3249_v49 = vxor.u32 2147483648, %v7721_v48  ;;  %v3342_v11 = vsel %vm7752_vm14, 0, %v3340_v54  ;;  %v3243_v10 = vand.u32 3, %v3242_v23 }
 0x34f   : > { %v3148_v55 = vsel %vm3137_vm7, nan, %v3147_v25  ;;  %v3346_v39 = vadd.s32 3, %v3342_v11  ;;  %v3443_v14 = vsub.s32 4, %v7735_v51  ;;  %v3350_v28 = vxor.u32 2147483648, %v7832_v26 }
 0x350   : > { %4504 = vmatmul.mubr.msk.f32.gmra.mrb[18].mxu1 %vm1939_vm9, %v3148_v55  ;;  %v3353_v47 = vxor.u32 2147483648, %v7823_v1  ;;  %v3471_v24 = vlaneseq  ;;  %vm3244_vm15 = vcmp.lt.s32.totalorder %v3243_v10, 2  ;;  %vm3245_vm2 = vcmp.eq.s32.totalorder %v3243_v10, 0 }
 0x351   : > { %3644 = vmatprep.mubr.f32.mxu1 %v8529_v37  ;;  %vm3248_vm1 = vcmp.eq.s32.totalorder %v3243_v10, 2  ;;  %v3347_v18 = vand.u32 3, %v3346_v39  ;;  %v4962_v32 = vmov 81   ;;  %v3247_v45 = vsel %vm3245_vm2, %v7721_v48, %v3246_v57 }
 0x352   : > { %4722 = vset.pattern.permute.xlu0 %v4962_v32  ;;  %v3250_v60 = vsel %vm3248_vm1, %v3249_v49, %v7748_v4  ;;  %v3444_v35 = vsel %vm3359_vm5, %v3443_v14, %v7735_v51  ;;  %v3472_v15 = vshrl.u32 %v3471_v24, 7  ;;  %4723 = vset.pattern.permute.xlu1 %v4962_v32  ;;  %v3469_v51 = vld [vmem:[%s8326_s6] sm:$0x3]  ;;  %vm3345_vm5 = vweird.f32 %v7433_v22 }
 0x353   : > { %v3251_v42 = vsel %vm3244_vm15, %v3247_v45, %v3250_v60  ;;  %vm3348_vm14 = vcmp.lt.s32.totalorder %v3347_v18, 2  ;;  %vm3349_vm8 = vcmp.eq.s32.totalorder %v3347_v18, 0  ;;  %vm3352_vm12 = vcmp.eq.s32.totalorder %v3347_v18, 2 }
 0x354   : > { %v3252_v33 = vsel %vm3241_vm4, nan, %v3251_v42  ;;  %v3351_v58 = vsel %vm3349_vm8, %v7823_v1, %v3350_v28  ;;  %v3354_v48 = vsel %vm3352_vm12, %v3353_v47, %v7832_v26  ;;  %v3446_v4 = vsel %vm7836_vm3, 0, %v3444_v35  ;;  %v4835_v41 = vpop.eup %4834 }
 0x355   : > { %4505 = vmatmul.mubr.msk.f32.gmra.mrb[20].mxu1 %vm1939_vm9, %v3252_v33  ;;  %v3355_v53 = vsel %vm3348_vm14, %v3351_v58, %v3354_v48  ;;  %v3450_v3 = vadd.s32 3, %v3446_v4  ;;  %v3473_v30 = vsub.s32 0, %v3472_v15  ;;  %v4837_v43 = vpop.eup %4836  ;;  %v3457_v44 = vxor.u32 2147483648, %v4835_v41 }
 0x356   : > { %3650 = vmatprep.mubr.f32.mxu1 %v8529_v37  ;;  %v3356_v1 = vsel %vm3345_vm5, nan, %v3355_v53  ;;  %v3454_v61 = vxor.u32 2147483648, %v4837_v43  ;;  %vm3449_vm4 = vweird.f32 %v8676_v38  ;;  %v3477_v31 = vsub.s32 1, %v3472_v15 }
 0x357   : > { %v3451_v20 = vand.u32 3, %v3450_v3  ;;  %v7906_v13 = vrot.slane %v3469_v51, %v3473_v30  ;;  %v4964_v25 = vmov 83   ;;  %v4965_v30 = vmov 82  }
 0x358   : > { %v7912_v0 = vrot.slane %v3469_v51, %v3477_v31 }
 0x359   : > { %4506 = vmatmul.mubr.msk.f32.gmra.mrb[22].mxu1 %vm1939_vm9, %v3356_v1  ;;  %vm3453_vm3 = vcmp.eq.s32.totalorder %v3451_v20, 0  ;;  %vm3456_vm7 = vcmp.eq.s32.totalorder %v3451_v20, 2  ;;  %vm3452_vm6 = vcmp.lt.s32.totalorder %v3451_v20, 2 }
 0x35a   : > { %3656 = vmatprep.mubr.f32.mxu1 %v8529_v37  ;;  %v3455_v22 = vsel %vm3453_vm3, %v4835_v41, %v3454_v61  ;;  %v3458_v6 = vsel %vm3456_vm7, %v3457_v44, %v4837_v43 }
 0x35b   : > { %v3459_v26 = vsel %vm3452_vm6, %v3455_v22, %v3458_v6 }
 0x35c   : > { %v3460_v56 = vsel %vm3449_vm4, nan, %v3459_v26 }
 0x35d   : > { %4507 = vmatmul.mubr.msk.f32.gmra.mrb[24].mxu1 %vm1939_vm9, %v3460_v56  ;;  %vm4236_vm9 = vcmask 654336  }
 0x3c2   : > { %v7914_v62 = vpop.f32.mrb[0].mxu1 }
 0x3c3   : > { %v3588_v40 = vpop.f32.mrb[1].mxu1 }
 0x3c4   : > { %v7917_v17 = vadd.f32 %v3588_v40, %v7912_v0 }
 0x3c6   : > { %3821 = vperm.xlu0 %4722, %v7917_v17   ;;  %3676 = vrot.lane.b32.xlu1 %v7917_v17, %s4963_s20  ;;  %v3780_v61 = vmul.f32 1.442695, %v7917_v17 }
 0x3f3   : > { %v7922_v37 = vpop.f32.mrb[2].mxu1 }
 0x3f4   : > { %v3594_v38 = vpop.f32.mrb[3].mxu1 }
 0x3f5   : > { %v7925_v50 = vadd.f32 %v3594_v38, %v7912_v0 }
 0x3f7   : > { %3825 = vperm.xlu1 %4723, %v7925_v50   ;;  %3678 = vrot.lane.b32.xlu0 %v7925_v50, %s4963_s20  ;;  %v3782_v52 = vmul.f32 1.442695, %v7925_v50 }
 0x3f9   : > { %v7930_v63 = vpop.f32.mrb[4].mxu1  ;;  %4838 = vpow2.f32 %v3782_v52 }
 0x3fa   : > { %v3600_v36 = vpop.f32.mrb[5].mxu1 }
 0x3fb   : > { %v7933_v8 = vadd.f32 %v3600_v36, %v7912_v0 }
 0x3fd   : > { %3680 = vrot.lane.b32.xlu1 %v7933_v8, %s4963_s20  ;;  %v3784_v27 = vmul.f32 1.442695, %v7933_v8 }
 0x3ff   : > { %4840 = vpow2.f32 %v3784_v27 }
 0x401   : > { %3829 = vperm.xlu1 %4723, %v7933_v8  }
 0x403   : > { %v7939_v46 = vpop.f32.mrb[6].mxu1  ;;  %v4839_v5 = vpop.eup %4838 }
 0x404   : > { %v3606_v59 = vpop.f32.mrb[7].mxu1  ;;  %v3807_v7 = vmul.f32 -0.5, %v4839_v5 }
 0x405   : > { %v7942_v19 = vadd.f32 %v3606_v59, %v7912_v0 }
 0x407   : > { %3682 = vrot.lane.b32.xlu0 %v7942_v19, %s4963_s20  ;;  %v7947_v21 = vpop.f32.mrb[8].mxu1  ;;  %v3786_v6 = vmul.f32 1.442695, %v7942_v19 }
 0x408   : > { %v3612_v34 = vpop.f32.mrb[9].mxu1 }
 0x409   : > { %v7950_v2 = vadd.f32 %v3612_v34, %v7912_v0  ;;  %v4841_v23 = vpop.eup %4840 }
 0x40a   : > { %v3808_v49 = vmul.f32 -0.5, %v4841_v23 }
 0x40b   : > { %3833 = vperm.xlu0 %4722, %v7942_v19   ;;  %3684 = vrot.lane.b32.xlu1 %v7950_v2, %s4963_s20  ;;  %v3788_v60 = vmul.f32 1.442695, %v7950_v2 }
 0x40d   : > { %4842 = vpow2.f32 %v3788_v60 }
 0x40e   : > { %v7955_v29 = vpop.f32.mrb[10].mxu1 }
 0x40f   : > { %v3618_v16 = vpop.f32.mrb[11].mxu1  ;;  %3837 = vperm.xlu1 %4723, %v7950_v2  }
 0x410   : > { %v7958_v9 = vadd.f32 %v3618_v16, %v7912_v0 }
 0x412   : > { %3686 = vrot.lane.b32.xlu0 %v7958_v9, %s4963_s20  ;;  %v3790_v26 = vmul.f32 1.442695, %v7958_v9 }
 0x413   : > { %4724 = vset.pattern.permute.xlu1 %v4964_v25 }
 0x414   : > { %v7963_v12 = vpop.f32.mrb[12].mxu1  ;;  %3911 = vperm.xlu1 %4724, %v3807_v7  }
 0x415   : > { %v3624_v54 = vpop.f32.mrb[13].mxu1 }
 0x416   : > { %3841 = vperm.xlu0 %4722, %v7958_v9   ;;  %v7973_v10 = vadd.f32 %v3624_v54, %v7912_v0 }
 0x417   : > { %v4843_v3 = vpop.eup %4842 }
 0x418   : > { %v7967_v57 = vpop.f32.mrb[14].mxu1  ;;  %3916 = vperm.xlu1 %4724, %v3808_v49   ;;  %v3792_v42 = vmul.f32 1.442695, %v7973_v10  ;;  %v3810_v43 = vmul.f32 -0.5, %v4843_v3 }
 0x419   : > { %v3630_v11 = vpop.f32.mrb[15].mxu1 }
 0x41a   : > { %v7970_v55 = vadd.f32 %v3630_v11, %v7912_v0  ;;  %4844 = vpow2.f32 %v3792_v42 }
 0x41c   : > { %3690 = vrot.lane.b32.xlu0 %v7970_v55, %s4963_s20  ;;  %3688 = vrot.lane.b32.xlu1 %v7973_v10, %s4963_s20  ;;  %v3794_v31 = vmul.f32 1.442695, %v7970_v55 }
 0x41d   : > { %v7977_v39 = vpop.f32.mrb[16].mxu1  ;;  %4725 = vset.pattern.permute.xlu1 %v4962_v32 }
 0x41e   : > { %8684 = vst [vmem:[#allocation20_spill] sm:$0xff] %v7977_v39  ;;  %v3636_v14 = vpop.f32.mrb[17].mxu1 }
 0x41f   : > { %v7987_v24 = vadd.f32 %v3636_v14, %v7912_v0 }
 0x420   : > { %3849 = vperm.xlu0 %4722, %v7970_v55   ;;  %3845 = vperm.xlu1 %4725, %v7973_v10  }
 0x421   : > { %8685 = vst [vmem:[#allocation32_spill] sm:$0xff] %v7987_v24  ;;  %v3796_v51 = vmul.f32 1.442695, %v7987_v24 }
 0x423   : > { %v7983_v28 = vpop.f32.mrb[18].mxu1  ;;  %4846 = vpow2.f32 %v3796_v51 }
 0x424   : > { %v3642_v47 = vpop.f32.mrb[19].mxu1  ;;  %3692 = vrot.lane.b32.xlu1 %v7987_v24, %s4963_s20  ;;  %v4845_v1 = vpop.eup %4844  ;;  %4848 = vpow2.f32 %v3780_v61 }
 0x425   : > { %v7990_v18 = vadd.f32 %v3642_v47, %v7912_v0  ;;  %v3812_v44 = vmul.f32 -0.5, %v4845_v1  ;;  %4850 = vpow2.f32 %v3786_v6 }
 0x426   : > { %4852 = vpow2.f32 %v3790_v26 }
 0x427   : > { %8686 = vst [vmem:[#allocation33_spill] sm:$0xff] %v7990_v18  ;;  %3694 = vrot.lane.b32.xlu0 %v7990_v18, %s4963_s20  ;;  %4854 = vpow2.f32 %v3794_v31  ;;  %v3798_v38 = vmul.f32 1.442695, %v7990_v18 }
 0x428   : > { %v7996_v45 = vpop.f32.mrb[20].mxu1  ;;  %3853 = vperm.xlu1 %4725, %v7987_v24  }
 0x429   : > { %8687 = vst [vmem:[#allocation24_spill] sm:$0xff] %v7996_v45  ;;  %v3648_v35 = vpop.f32.mrb[21].mxu1  ;;  %4856 = vpow2.f32 %v3798_v38 }
 0x42a   : > { %v8005_v33 = vadd.f32 %v3648_v35, %v7912_v0 }
 0x42b   : > { %3857 = vperm.xlu0 %4722, %v7990_v18  }
 0x42c   : > { %v8001_v15 = vpop.f32.mrb[22].mxu1  ;;  %8689 = vst [vmem:[#allocation25_spill] sm:$0xff] %v8005_v33  ;;  %3696 = vrot.lane.b32.xlu1 %v8005_v33, %s4963_s20  ;;  %v3800_v23 = vmul.f32 1.442695, %v8005_v33 }
 0x42d   : > { %8688 = vst [vmem:[#allocation5_spill] sm:$0xff] %v8001_v15  ;;  %v3654_v58 = vpop.f32.mrb[23].mxu1  ;;  %v4847_v20 = vpop.eup %4846 }
 0x42e   : > { %v8008_v48 = vadd.f32 %v3654_v58, %v7912_v0  ;;  %v3814_v22 = vmul.f32 -0.5, %v4847_v20 }
 0x430   : > { %8690 = vst [vmem:[#allocation18_spill] sm:$0xff] %v8008_v48  ;;  %3698 = vrot.lane.b32.xlu0 %v8008_v48, %s4963_s20  ;;  %v8014_v4 = vpop.f32.mrb[24].mxu1  ;;  %3861 = vperm.xlu1 %4725, %v8005_v33   ;;  %v3802_v27 = vmul.f32 1.442695, %v8008_v48 }
 0x431   : > { %8691 = vst [vmem:[#allocation6_spill] sm:$0xff] %v8014_v4  ;;  %v3660_v41 = vpop.f32.mrb[25].mxu1 }
 0x432   : > { %v8020_v53 = vadd.f32 %v3660_v41, %v7912_v0  ;;  %v4849_v0 = vpop.eup %4848  ;;  %4858 = vpow2.f32 %v3802_v27 }
 0x433   : > { %v3806_v36 = vmul.f32 -0.5, %v4849_v0  ;;  %v4851_v52 = vpop.eup %4850 }
 0x434   : > { %3865 = vperm.xlu0 %4722, %v8008_v48   ;;  %8692 = vst [vmem:[#allocation30_spill] sm:$0xff] %v8020_v53  ;;  %3700 = vrot.lane.b32.xlu1 %v8020_v53, %s4963_s20  ;;  %v3809_v34 = vmul.f32 -0.5, %v4851_v52  ;;  %v4853_v16 = vpop.eup %4852  ;;  %v3804_v11 = vmul.f32 1.442695, %v8020_v53 }
 0x435   : > { %4726 = vset.pattern.permute.xlu1 %v4964_v25  ;;  %v3811_v7 = vmul.f32 -0.5, %v4853_v16  ;;  %v4855_v54 = vpop.eup %4854 }
 0x436   : > { %v3813_v49 = vmul.f32 -0.5, %v4855_v54  ;;  %v4857_v14 = vpop.eup %4856 }
 0x437   : > { %v3815_v47 = vmul.f32 -0.5, %v4857_v14 }
 0x438   : > { %4727 = vset.pattern.permute.xlu0 %v4965_v30  ;;  %3926 = vperm.xlu1 %4726, %v3810_v43   ;;  %v3677_v56 = vpop.permute.xlu1 %3676 }
 0x439   : > { %4088 = vperm.xlu0 %4727, %v7917_v17   ;;  %v3715_v40 = vsub.f32 %v7917_v17, %v3677_v56 }
 0x43b   : > { %v3728_v59 = vmul.f32 0.5, %v3715_v40 }
 0x43c   : > { %3936 = vperm.xlu1 %4726, %v3812_v44   ;;  %v4859_v60 = vpop.eup %4858 }
 0x43d   : > { %4100 = vperm.xlu0 %4727, %v7942_v19   ;;  %v3741_v5 = vmul.f32 1.442695, %v3728_v59  ;;  %v3817_v42 = vmul.f32 -0.5, %v4859_v60 }
 0x43f   : > { %4860 = vpow2.f32 %v3741_v5 }
 0x440   : > { %3946 = vperm.xlu1 %4726, %v3814_v22   ;;  %4862 = vpow2.f32 %v3800_v23 }
 0x441   : > { %4108 = vperm.xlu0 %4727, %v7958_v9   ;;  %4864 = vpow2.f32 %v3804_v11  ;;  %v8065_v11 = vld [vmem:[%s8327_s7] ss:$0 sm:$0xff] }
 0x444   : > { %4728 = vset.pattern.permute.xlu1 %v4965_v30 }
 0x445   : > { %4116 = vperm.xlu0 %4727, %v7970_v55   ;;  %4092 = vperm.xlu1 %4728, %v7925_v50   ;;  %v8053_v41 = vpop.permute.xlu0 %3821 }
 0x449   : > { %4124 = vperm.xlu0 %4727, %v7990_v18   ;;  %4096 = vperm.xlu1 %4728, %v7933_v8   ;;  %v4861_v35 = vpop.eup %4860 }
 0x44a   : > { %v4863_v58 = vpop.eup %4862  ;;  %v3767_v51 = vmul.f32 0.3989423, %v4861_v35 }
 0x44b   : > { %v3816_v3 = vmul.f32 -0.5, %v4863_v58  ;;  %v4865_v43 = vpop.eup %4864 }
 0x44d   : > { %4132 = vperm.xlu0 %4727, %v8008_v48   ;;  %4104 = vperm.xlu1 %4728, %v7950_v2  }
 0x451   : > { %4729 = vset.pattern.permute.xlu0 %v4964_v25  ;;  %4112 = vperm.xlu1 %4728, %v7973_v10  }
 0x452   : > { %3906 = vperm.xlu0 %4729, %v3806_v36  }
 0x455   : > { %4120 = vperm.xlu1 %4728, %v7987_v24  }
 0x456   : > { %3921 = vperm.xlu0 %4729, %v3809_v34  }
 0x459   : > { %4128 = vperm.xlu1 %4728, %v8005_v33  }
 0x45a   : > { %3931 = vperm.xlu0 %4729, %v3811_v7  }
 0x45d   : > { %4730 = vset.pattern.permute.xlu1 %v4962_v32  ;;  %v3818_v32 = vmul.f32 -0.5, %v4865_v43 }
 0x45e   : > { %3941 = vperm.xlu0 %4729, %v3813_v49   ;;  %3869 = vperm.xlu1 %4730, %v8020_v53  }
 0x462   : > { %3951 = vperm.xlu0 %4729, %v3815_v47   ;;  %4731 = vset.pattern.permute.xlu1 %v4965_v30 }
 0x463   : > { %4136 = vperm.xlu1 %4731, %v8020_v53  }
 0x466   : > { %3961 = vperm.xlu0 %4729, %v3817_v42  }
 0x467   : > { %4732 = vset.pattern.permute.xlu1 %v4964_v25 }
 0x468   : > { %3956 = vperm.xlu1 %4732, %v3816_v3  }
 0x469   : > { %v3679_v1 = vpop.permute.xlu0 %3678 }
 0x46a   : > { %4010 = vperm.xlu0 %4729, %v3767_v51   ;;  %v3716_v44 = vsub.f32 %v7925_v50, %v3679_v1 }
 0x46c   : > { %3966 = vperm.xlu1 %4732, %v3818_v32   ;;  %v3729_v20 = vmul.f32 0.5, %v3716_v44 }
 0x46e   : > { %v3743_v61 = vmul.f32 1.442695, %v3729_v20 }
 0x470   : > { %4866 = vpow2.f32 %v3743_v61 }
 0x476   : > { %v3826_v22 = vpop.permute.xlu1 %3825 }
 0x477   : > { %v3879_v47 = vsub.f32 %v3826_v22, %v8065_v11 }
 0x479   : > { %v3683_v6 = vpop.permute.xlu0 %3682  ;;  %v3892_v51 = vmul.f32 %v3879_v47, %v3879_v47 }
 0x47a   : > { %v3718_v26 = vsub.f32 %v7942_v19, %v3683_v6  ;;  %v4867_v56 = vpop.eup %4866  ;;  %v3681_v31 = vpop.permute.xlu1 %3680 }
 0x47b   : > { %v3717_v0 = vsub.f32 %v7933_v8, %v3681_v31  ;;  %v3768_v25 = vmul.f32 0.3989423, %v4867_v56 }
 0x47c   : > { %v3731_v40 = vmul.f32 0.5, %v3718_v26 }
 0x47d   : > { %v3730_v38 = vmul.f32 0.5, %v3717_v0  ;;  %4015 = vperm.xlu1 %4732, %v3768_v25  }
 0x47e   : > { %v3747_v36 = vmul.f32 1.442695, %v3731_v40 }
 0x47f   : > { %v3745_v52 = vmul.f32 1.442695, %v3730_v38 }
 0x480   : > { %4868 = vpow2.f32 %v3747_v36  ;;  %v3830_v59 = vpop.permute.xlu1 %3829 }
 0x481   : > { %4870 = vpow2.f32 %v3745_v52  ;;  %v3880_v3 = vsub.f32 %v3830_v59, %v8065_v11 }
 0x483   : > { %v3893_v61 = vmul.f32 %v3880_v3, %v3880_v3 }
 0x484   : > { %v3685_v27 = vpop.permute.xlu1 %3684 }
 0x485   : > { %v3719_v34 = vsub.f32 %v7950_v2, %v3685_v27 }
 0x487   : > { %v3732_v16 = vmul.f32 0.5, %v3719_v34 }
 0x489   : > { %v3749_v7 = vmul.f32 1.442695, %v3732_v16 }
 0x48a   : > { %v4869_v5 = vpop.eup %4868  ;;  %v8060_v23 = vpop.permute.xlu0 %3833 }
 0x48b   : > { %v3770_v54 = vmul.f32 0.3989423, %v4869_v5  ;;  %v4871_v49 = vpop.eup %4870  ;;  %4872 = vpow2.f32 %v3749_v7 }
 0x48c   : > { %v3769_v14 = vmul.f32 0.3989423, %v4871_v49 }
 0x48d   : > { %4025 = vperm.xlu1 %4732, %v3770_v54  }
 0x48e   : > { %v3838_v60 = vpop.permute.xlu1 %3837  ;;  %v3687_v35 = vpop.permute.xlu0 %3686  ;;  %4020 = vperm.xlu0 %4729, %v3769_v14  }
 0x48f   : > { %v3720_v42 = vsub.f32 %v7958_v9, %v3687_v35 }
 0x491   : > { %v3733_v58 = vmul.f32 0.5, %v3720_v42 }
 0x493   : > { %v3751_v43 = vmul.f32 1.442695, %v3733_v58  ;;  %v8072_v1 = vpop.permute.xlu1 %3911 }
 0x494   : > { %v8075_v44 = vmul.f32 %v8072_v1, %v3892_v51 }
 0x495   : > { %v8070_v32 = vpop.permute.xlu0 %3841  ;;  %4874 = vpow2.f32 %v3751_v43  ;;  %v4873_v20 = vpop.eup %4872 }
 0x496   : > { %v3771_v26 = vmul.f32 0.3989423, %v4873_v20 }
 0x497   : > { %v8077_v6 = vpop.permute.xlu1 %3916 }
 0x498   : > { %v8081_v31 = vmul.f32 %v8077_v6, %v3893_v61  ;;  %4030 = vperm.xlu0 %4729, %v3771_v26  }
 0x499   : > { %v3691_v22 = vpop.permute.xlu0 %3690 }
 0x49a   : > { %v3722_v56 = vsub.f32 %v7970_v55, %v3691_v22 }
 0x49b   : > { %v3689_v40 = vpop.permute.xlu1 %3688 }
 0x49c   : > { %v3735_v0 = vmul.f32 0.5, %v3722_v56  ;;  %v3721_v38 = vsub.f32 %v7973_v10, %v3689_v40 }
 0x49e   : > { %v3755_v25 = vmul.f32 1.442695, %v3735_v0  ;;  %v3734_v52 = vmul.f32 0.5, %v3721_v38 }
 0x49f   : > { %v8084_v36 = vpop.permute.xlu0 %3849  ;;  %v4875_v59 = vpop.eup %4874 }
 0x4a0   : > { %4876 = vpow2.f32 %v3755_v25  ;;  %v3846_v27 = vpop.permute.xlu1 %3845  ;;  %v3753_v34 = vmul.f32 1.442695, %v3734_v52  ;;  %v3772_v16 = vmul.f32 0.3989423, %v4875_v59  ;;  %v3885_v4 = vsub.f32 %v8084_v36, %v8065_v11 }
 0x4a2   : > { %4878 = vpow2.f32 %v3753_v34  ;;  %4035 = vperm.xlu1 %4732, %v3772_v16  }
 0x4a3   : > { %v3695_v5 = vpop.permute.xlu0 %3694 }
 0x4a4   : > { %v3724_v7 = vsub.f32 %v7990_v18, %v3695_v5  ;;  %v3693_v54 = vpop.permute.xlu1 %3692  ;;  %v3882_v5 = vsub.f32 %v3838_v60, %v8065_v11 }
 0x4a5   : > { %v3723_v14 = vsub.f32 %v7987_v24, %v3693_v54 }
 0x4a6   : > { %v3737_v49 = vmul.f32 0.5, %v3724_v7 }
 0x4a7   : > { %v3736_v35 = vmul.f32 0.5, %v3723_v14 }
 0x4a8   : > { %v3759_v47 = vmul.f32 1.442695, %v3737_v49  ;;  %v3854_v58 = vpop.permute.xlu1 %3853 }
 0x4a9   : > { %v3757_v3 = vmul.f32 1.442695, %v3736_v35 }
 0x4aa   : > { %v8088_v42 = vpop.permute.xlu0 %3857  ;;  %v4877_v51 = vpop.eup %4876  ;;  %4880 = vpow2.f32 %v3759_v47 }
 0x4ab   : > { %v3774_v43 = vmul.f32 0.3989423, %v4877_v51  ;;  %4882 = vpow2.f32 %v3757_v3  ;;  %v3895_v51 = vmul.f32 %v3882_v5, %v3882_v5  ;;  %v3884_v3 = vsub.f32 %v3846_v27, %v8065_v11 }
 0x4ac   : > { %v3697_v61 = vpop.permute.xlu1 %3696  ;;  %v4879_v22 = vpop.eup %4878 }
 0x4ad   : > { %4045 = vperm.xlu0 %4729, %v3774_v43   ;;  %v3725_v56 = vsub.f32 %v8005_v33, %v3697_v61  ;;  %v3773_v0 = vmul.f32 0.3989423, %v4879_v22 }
 0x4ae   : > { %v3699_v20 = vpop.permute.xlu0 %3698 }
 0x4af   : > { %v3726_v26 = vsub.f32 %v8008_v48, %v3699_v20  ;;  %v3738_v25 = vmul.f32 0.5, %v3725_v56  ;;  %4040 = vperm.xlu1 %4732, %v3773_v0   ;;  %v3886_v56 = vsub.f32 %v3854_v58, %v8065_v11  ;;  %v8116_v58 = vld [vmem:[%s8328_s8] ss:$0 sm:$0xff] }
 0x4b0   : > { %v8092_v38 = vpop.permute.xlu1 %3861 }
 0x4b1   : > { %v3739_v40 = vmul.f32 0.5, %v3726_v26  ;;  %v3761_v34 = vmul.f32 1.442695, %v3738_v25  ;;  %v3897_v26 = vmul.f32 %v3884_v3, %v3884_v3 }
 0x4b3   : > { %v3763_v52 = vmul.f32 1.442695, %v3739_v40  ;;  %v8094_v59 = vpop.permute.xlu0 %3865 }
 0x4b4   : > { %v4881_v16 = vpop.eup %4880  ;;  %v3701_v54 = vpop.permute.xlu1 %3700 }
 0x4b5   : > { %4884 = vpow2.f32 %v3763_v52  ;;  %v3776_v7 = vmul.f32 0.3989423, %v4881_v16  ;;  %v4883_v49 = vpop.eup %4882  ;;  %v3727_v14 = vsub.f32 %v8020_v53, %v3701_v54  ;;  %v3899_v16 = vmul.f32 %v3886_v56, %v3886_v56 }
 0x4b6   : > { %4886 = vpow2.f32 %v3761_v34  ;;  %v3775_v35 = vmul.f32 0.3989423, %v4883_v49 }
 0x4b7   : > { %4055 = vperm.xlu0 %4729, %v3776_v7   ;;  %v3740_v43 = vmul.f32 0.5, %v3727_v14 }
 0x4b8   : > { %v4089_v47 = vpop.permute.xlu0 %4088  ;;  %v8099_v20 = vpop.permute.xlu1 %3926  ;;  %4050 = vperm.xlu1 %4732, %v3775_v35  }
 0x4b9   : > { %v3765_v61 = vmul.f32 1.442695, %v3740_v43  ;;  %v8102_v60 = vmul.f32 %v8099_v20, %v3895_v51 }
 0x4bb   : > { %4888 = vpow2.f32 %v3765_v61 }
 0x4bc   : > { %v8104_v22 = vpop.permute.xlu0 %4100  ;;  %v3937_v0 = vpop.permute.xlu1 %3936 }
 0x4bd   : > { %v8107_v25 = vmul.f32 %v3937_v0, %v3897_v26 }
 0x4bf   : > { %v4885_v40 = vpop.eup %4884 }
 0x4c0   : > { %v4887_v52 = vpop.eup %4886  ;;  %v8109_v27 = vpop.permute.xlu0 %4108  ;;  %v3778_v34 = vmul.f32 0.3989423, %v4885_v40 }
 0x4c1   : > { %v3777_v5 = vmul.f32 0.3989423, %v4887_v52  ;;  %v3947_v7 = vpop.permute.xlu1 %3946 }
 0x4c2   : > { %4065 = vperm.xlu0 %4729, %v3778_v34   ;;  %v8111_v54 = vmul.f32 %v3947_v7, %v3899_v16  ;;  %v3878_v34 = vsub.f32 %v8053_v41, %v8065_v11  ;;  %v4145_v16 = vsub.f32 %v4089_v47, %v8116_v58 }
 0x4c3   : > { %4060 = vperm.xlu1 %4732, %v3777_v5  }
 0x4c4   : > { %v4117_v49 = vpop.permute.xlu0 %4116  ;;  %v4158_v53 = vmul.f32 %v4145_v16, %v4145_v16  ;;  %v3898_v16 = vmul.f32 %v3885_v4, %v3885_v4  ;;  %v3889_v4 = vsub.f32 %v8094_v59, %v8065_v11 }
 0x4c5   : > { %v4152_v14 = vsub.f32 %v4117_v49, %v8116_v58  ;;  %v4889_v35 = vpop.eup %4888  ;;  %v4093_v51 = vpop.permute.xlu1 %4092  ;;  %v3891_v49 = vmul.f32 %v3878_v34, %v3878_v34 }
 0x4c6   : > { %4733 = vset.pattern.permute.xlu0 %v4965_v30  ;;  %v3779_v43 = vmul.f32 0.3989423, %v4889_v35 }
 0x4c8   : > { %v4125_v3 = vpop.permute.xlu0 %4124  ;;  %4070 = vperm.xlu1 %4732, %v3779_v43  }
 0x4c9   : > { %v4154_v61 = vsub.f32 %v4125_v3, %v8116_v58  ;;  %v8121_v26 = vpop.permute.xlu1 %4096 }
 0x4cc   : > { %v4133_v56 = vpop.permute.xlu0 %4132 }
 0x4cd   : > { %v4156_v40 = vsub.f32 %v4133_v56, %v8116_v58  ;;  %v8124_v52 = vpop.permute.xlu1 %4104 }
 0x4d1   : > { %v3907_v30 = vpop.permute.xlu0 %3906  ;;  %v4113_v5 = vpop.permute.xlu1 %4112 }
 0x4d2   : > { %v4151_v3 = vsub.f32 %v4113_v5, %v8116_v58  ;;  %v3969_v43 = vmul.f32 %v3907_v30, %v3891_v49  ;;  %v4171_v56 = vmul.f32 %v4158_v53, %v3907_v30  ;;  %v3887_v5 = vsub.f32 %v8088_v42, %v8065_v11 }
 0x4d3   : > { %v4165_v49 = vmul.f32 %v4152_v14, %v4152_v14 }
 0x4d4   : > { %v4164_v33 = vmul.f32 %v4151_v3, %v4151_v3  ;;  %v3982_v15 = vmul.f32 1.442695, %v3969_v43  ;;  %v4184_v24 = vmul.f32 1.442695, %v4171_v56 }
 0x4d5   : > { %v8129_v35 = vpop.permute.xlu0 %3921  ;;  %v4121_v48 = vpop.permute.xlu1 %4120 }
 0x4d6   : > { %v4153_v45 = vsub.f32 %v4121_v48, %v8116_v58  ;;  %v8135_v41 = vmul.f32 %v4164_v33, %v3937_v0  ;;  %4890 = vpow2.f32 %v3982_v15  ;;  %v4167_v0 = vmul.f32 %v4154_v61, %v4154_v61 }
 0x4d7   : > { %4892 = vpow2.f32 %v4184_v24  ;;  %v4169_v15 = vmul.f32 %v4156_v40, %v4156_v40  ;;  %v4146_v24 = vsub.f32 %v4093_v51, %v8116_v58 }
 0x4d8   : > { %v4166_v34 = vmul.f32 %v4153_v45, %v4153_v45  ;;  %v3900_v45 = vmul.f32 %v3887_v5, %v3887_v5 }
 0x4d9   : > { %v8137_v47 = vpop.permute.xlu0 %3931  ;;  %v4129_v18 = vpop.permute.xlu1 %4128 }
 0x4da   : > { %v8141_v39 = vmul.f32 %v4166_v34, %v3947_v7  ;;  %v8144_v53 = vsub.f32 %v4129_v18, %v8116_v58  ;;  %v3902_v18 = vmul.f32 %v3889_v4, %v3889_v4 }
 0x4dd   : > { %v3942_v36 = vpop.permute.xlu0 %3941  ;;  %v8152_v30 = vpop.permute.xlu1 %3869 }
 0x4de   : > { %v8146_v33 = vmul.f32 %v3942_v36, %v3898_v16  ;;  %v8148_v48 = vmul.f32 %v4165_v49, %v3942_v36  ;;  %v3587_v49 = vadd.f32 %v7914_v62, %v7906_v13  ;;  %v4159_v36 = vmul.f32 %v4146_v24, %v4146_v24 }
 0x4e0   : > { %v4891_v61 = vpop.eup %4890  ;;  %v4172_v62 = vmul.f32 %v4159_v36, %v8072_v1 }
 0x4e1   : > { %v3952_v42 = vpop.permute.xlu0 %3951  ;;  %v4893_v16 = vpop.eup %4892 }
 0x4e2   : > { %v8154_v7 = vmul.f32 %v3952_v42, %v3900_v45  ;;  %v8156_v14 = vmul.f32 %v4167_v0, %v3952_v42  ;;  %v4137_v43 = vpop.permute.xlu1 %4136  ;;  %v3984_v0 = vmul.f32 1.442695, %v8075_v44  ;;  %v4186_v42 = vmul.f32 1.442695, %v4172_v62 }
 0x4e3   : > { %v8164_v59 = vsub.f32 %v4137_v43, %v8116_v58  ;;  %v3986_v62 = vmul.f32 1.442695, %v8081_v31  ;;  %v4150_v31 = vsub.f32 %v8109_v27, %v8116_v58 }
 0x4e4   : > { %4894 = vpow2.f32 %v3984_v0 }
 0x4e5   : > { %v3962_v3 = vpop.permute.xlu0 %3961  ;;  %4896 = vpow2.f32 %v4186_v42 }
 0x4e6   : > { %v8159_v56 = vmul.f32 %v3962_v3, %v3902_v18  ;;  %v8161_v34 = vmul.f32 %v4169_v15, %v3962_v3  ;;  %v3881_v18 = vsub.f32 %v8060_v23, %v8065_v11  ;;  %v4148_v3 = vsub.f32 %v8104_v22, %v8116_v58 }
 0x4e7   : > { %v8189_v15 = vpop.permute.xlu1 %3956  ;;  %v3593_v22 = vadd.f32 %v7922_v37, %v7906_v13 }
 0x4e8   : > { %v3894_v1 = vmul.f32 %v3881_v18, %v3881_v18  ;;  %v4161_v43 = vmul.f32 %v4148_v3, %v4148_v3  ;;  %v3990_v18 = vmul.f32 1.442695, %v8102_v60  ;;  %v3599_v60 = vadd.f32 %v7930_v63, %v7906_v13 }
 0x4e9   : > { %v4011_v5 = vpop.permute.xlu0 %4010 }
 0x4ea   : > { %v4073_v45 = vmul.f32 %v4891_v61, %v4011_v5  ;;  %v4210_v40 = vmul.f32 %v4893_v16, %v4011_v5  ;;  %v3972_v61 = vmul.f32 %v8129_v35, %v3894_v1  ;;  %v4174_v16 = vmul.f32 %v4161_v43, %v8129_v35 }
 0x4eb   : > { %v8196_v44 = vpop.permute.xlu1 %3966  ;;  %v4163_v43 = vmul.f32 %v4150_v31, %v4150_v31 }
 0x4ec   : > { %v4223_v51 = vmul.f32 %v4073_v45, %v3587_v49  ;;  %v4250_v4 = vmul.f32 %v4210_v40, %v7917_v17  ;;  %v4147_v17 = vsub.f32 %v8121_v26, %v8116_v58  ;;  %v3988_v36 = vmul.f32 1.442695, %v3972_v61 }
 0x4ed   : > { %v4149_v45 = vsub.f32 %v8124_v52, %v8116_v58  ;;  %v4190_v40 = vmul.f32 1.442695, %v4174_v16  ;;  %v3883_v52 = vsub.f32 %v8070_v32, %v8065_v11  ;;  %v4176_v58 = vmul.f32 %v4163_v43, %v8137_v47 }
 0x4ee   : > { %4237 = vst.msk [vmem:[%s8172_s27] sm:$0xff] %vm4236_vm9, %v4223_v51  ;;  %4263 = vst.msk [vmem:[%s8178_s30] sm:$0xff] %vm4236_vm9, %v4250_v4  ;;  %v4160_v24 = vmul.f32 %v4147_v17, %v4147_v17  ;;  %v4895_v5 = vpop.eup %4894  ;;  %4898 = vpow2.f32 %v3988_v36 }
 0x4ef   : > { %v4897_v49 = vpop.eup %4896  ;;  %v4162_v42 = vmul.f32 %v4149_v45, %v4149_v45  ;;  %4900 = vpow2.f32 %v4190_v40  ;;  %v3896_v1 = vmul.f32 %v3883_v52, %v3883_v52  ;;  %v4194_v40 = vmul.f32 1.442695, %v4176_v58 }
 0x4f0   : > { %v4173_v23 = vmul.f32 %v4160_v24, %v8077_v6  ;;  %4902 = vpow2.f32 %v3986_v62 }
 0x4f1   : > { %v4175_v37 = vmul.f32 %v4162_v42, %v8099_v20  ;;  %v3605_v20 = vadd.f32 %v7939_v46, %v7906_v13  ;;  %v3974_v27 = vmul.f32 %v8137_v47, %v3896_v1  ;;  %v4198_v42 = vmul.f32 1.442695, %v8148_v48 }
 0x4f2   : > { %v4188_v35 = vmul.f32 1.442695, %v4173_v23  ;;  %v4200_v1 = vmul.f32 1.442695, %v8141_v39  ;;  %v3890_v39 = vsub.f32 %v8152_v30, %v8065_v11 }
 0x4f3   : > { %v3992_v63 = vmul.f32 1.442695, %v3974_v27  ;;  %v4004_v27 = vmul.f32 1.442695, %v8159_v56 }
 0x4f4   : > { %4904 = vpow2.f32 %v4188_v35 }
 0x4f5   : > { %4906 = vpow2.f32 %v3990_v18 }
 0x4f8   : > { %v4899_v3 = vpop.eup %4898 }
 0x4f9   : > { %v4901_v17 = vpop.eup %4900 }
 0x4fa   : > { %v4903_v61 = vpop.eup %4902 }
 0x4fc   : > { %v4016_v26 = vpop.permute.xlu1 %4015 }
 0x4fd   : > { %v4074_v51 = vmul.f32 %v4895_v5, %v4016_v26  ;;  %v4211_v4 = vmul.f32 %v4897_v49, %v4016_v26 }
 0x4fe   : > { %v4905_v5 = vpop.eup %4904 }
 0x4ff   : > { %v4224_v0 = vmul.f32 %v4074_v51, %v3593_v22  ;;  %v4251_v6 = vmul.f32 %v4211_v4, %v7925_v50  ;;  %v4192_v50 = vmul.f32 1.442695, %v4175_v37  ;;  %v4907_v47 = vpop.eup %4906  ;;  %v3611_v4 = vadd.f32 %v7947_v21, %v7906_v13 }
 0x500   : > { %v3994_v37 = vmul.f32 1.442695, %v8107_v25  ;;  %v4196_v21 = vmul.f32 1.442695, %v8135_v41  ;;  %v4000_v25 = vmul.f32 1.442695, %v8154_v7 }
 0x501   : > { %4238 = vst.msk [vmem:[%s8172_s27 + $0x8] sm:$0xff] %vm4236_vm9, %v4224_v0  ;;  %4264 = vst.msk [vmem:[%s8178_s30 + $0x8] sm:$0xff] %vm4236_vm9, %v4251_v6  ;;  %4908 = vpow2.f32 %v4192_v50  ;;  %v4202_v41 = vmul.f32 1.442695, %v8156_v14 }
 0x502   : > { %4910 = vpow2.f32 %v3992_v63  ;;  %v3641_v63 = vadd.f32 %v7983_v28, %v7906_v13 }
 0x503   : > { %4912 = vpow2.f32 %v4194_v40 }
 0x50c   : > { %v4026_v24 = vpop.permute.xlu1 %4025 }
 0x50d   : > { %v4076_v16 = vmul.f32 %v4899_v3, %v4026_v24  ;;  %v4213_v32 = vmul.f32 %v4901_v17, %v4026_v24  ;;  %v4021_v23 = vpop.permute.xlu0 %4020  ;;  %v3888_v17 = vsub.f32 %v8092_v38, %v8065_v11  ;;  %v4168_v38 = vmul.f32 %v8144_v53, %v8144_v53 }
 0x50e   : > { %v4075_v36 = vmul.f32 %v4903_v61, %v4021_v23  ;;  %v4212_v46 = vmul.f32 %v4905_v5, %v4021_v23  ;;  %v3623_v53 = vadd.f32 %v7963_v12, %v7906_v13  ;;  %v4206_v23 = vmul.f32 1.442695, %v8161_v34 }
 0x50f   : > { %v4226_v49 = vmul.f32 %v4076_v16, %v3605_v20  ;;  %v4253_v22 = vmul.f32 %v4213_v32, %v7942_v19  ;;  %v4909_v19 = vpop.eup %4908  ;;  %v3901_v7 = vmul.f32 %v3888_v17, %v3888_v17  ;;  %v4170_v12 = vmul.f32 %v8164_v59, %v8164_v59 }
 0x510   : > { %v4225_v26 = vmul.f32 %v4075_v36, %v3599_v60  ;;  %v4252_v45 = vmul.f32 %v4212_v46, %v7933_v8  ;;  %v3996_v8 = vmul.f32 1.442695, %v8146_v33  ;;  %v4911_v52 = vpop.eup %4910 }
 0x511   : > { %4240 = vst.msk [vmem:[%s8172_s27 + $0x18] sm:$0xff] %vm4236_vm9, %v4226_v49  ;;  %4266 = vst.msk [vmem:[%s8178_s30 + $0x18] sm:$0xff] %vm4236_vm9, %v4253_v22  ;;  %v4913_v31 = vpop.eup %4912 }
 0x512   : > { %4239 = vst.msk [vmem:[%s8172_s27 + $0x10] sm:$0xff] %vm4236_vm9, %v4225_v26  ;;  %4265 = vst.msk [vmem:[%s8178_s30 + $0x10] sm:$0xff] %vm4236_vm9, %v4252_v45  ;;  %4914 = vpow2.f32 %v3996_v8  ;;  %v4183_v26 = vmul.f32 %v4170_v12, %v8196_v44 }
 0x513   : > { %4916 = vpow2.f32 %v4198_v42 }
 0x514   : > { %4918 = vpow2.f32 %v3994_v37  ;;  %v4208_v42 = vmul.f32 1.442695, %v4183_v26  ;;  %v8695_v37 = vld [vmem:[#allocation32_spill] sm:$0xff] }
 0x515   : > { %4920 = vpow2.f32 %v4196_v21 }
 0x516   : > { %4922 = vpow2.f32 %v4000_v25 }
 0x517   : > { %v4031_v51 = vpop.permute.xlu0 %4030  ;;  %4924 = vpow2.f32 %v4202_v41  ;;  %v8697_v41 = vld [vmem:[#allocation24_spill] sm:$0xff] }
 0x518   : > { %v4077_v62 = vmul.f32 %v4907_v47, %v4031_v51  ;;  %v4214_v35 = vmul.f32 %v4909_v19, %v4031_v51  ;;  %v8693_v19 = vld [vmem:[#allocation20_spill] sm:$0xff] }
 0x519   : > { %v3635_v51 = vadd.f32 %v8693_v19, %v7906_v13 }
 0x51a   : > { %v4227_v0 = vmul.f32 %v4077_v62, %v3611_v4  ;;  %v4254_v6 = vmul.f32 %v4214_v35, %v7950_v2  ;;  %v3617_v2 = vadd.f32 %v7955_v29, %v7906_v13  ;;  %v3998_v29 = vmul.f32 1.442695, %v8111_v54 }
 0x51b   : > { %v3979_v54 = vmul.f32 %v8189_v15, %v3901_v7 }
 0x51c   : > { %4241 = vst.msk [vmem:[%s8172_s27 + $0x20] sm:$0xff] %vm4236_vm9, %v4227_v0  ;;  %4267 = vst.msk [vmem:[%s8178_s30 + $0x20] sm:$0xff] %vm4236_vm9, %v4254_v6  ;;  %v4915_v43 = vpop.eup %4914  ;;  %4926 = vpow2.f32 %v3998_v29  ;;  %v3647_v29 = vadd.f32 %v8697_v41, %v7906_v13 }
 0x51d   : > { %v4917_v24 = vpop.eup %4916  ;;  %4928 = vpow2.f32 %v4200_v1  ;;  %v4002_v49 = vmul.f32 1.442695, %v3979_v54 }
 0x51e   : > { %v4919_v16 = vpop.eup %4918  ;;  %4930 = vpow2.f32 %v4004_v27  ;;  %v8701_v27 = vld [vmem:[#allocation30_spill] sm:$0xff] }
 0x51f   : > { %v4921_v60 = vpop.eup %4920  ;;  %4932 = vpow2.f32 %v4206_v23 }
 0x520   : > { %v4923_v34 = vpop.eup %4922  ;;  %4934 = vpow2.f32 %v4002_v49 }
 0x521   : > { %v4036_v33 = vpop.permute.xlu1 %4035  ;;  %v4925_v46 = vpop.eup %4924 }
 0x522   : > { %v4078_v18 = vmul.f32 %v4911_v52, %v4036_v33  ;;  %v4215_v48 = vmul.f32 %v4913_v31, %v4036_v33 }
 0x524   : > { %v4228_v50 = vmul.f32 %v4078_v18, %v3617_v2  ;;  %v4255_v3 = vmul.f32 %v4215_v48, %v7958_v9  ;;  %v3629_v9 = vadd.f32 %v7967_v57, %v7906_v13  ;;  %v4181_v57 = vmul.f32 %v4168_v38, %v8189_v15  ;;  %v8696_v48 = vld [vmem:[#allocation5_spill] sm:$0xff] }
 0x525   : > { %v3903_v15 = vmul.f32 %v3890_v39, %v3890_v39  ;;  %v8699_v38 = vld [vmem:[#allocation25_spill] sm:$0xff] }
 0x526   : > { %4242 = vst.msk [vmem:[%s8172_s27 + $0x28] sm:$0xff] %vm4236_vm9, %v4228_v50  ;;  %4268 = vst.msk [vmem:[%s8178_s30 + $0x28] sm:$0xff] %vm4236_vm9, %v4255_v3  ;;  %v3653_v50 = vadd.f32 %v8696_v48, %v7906_v13 }
 0x527   : > { %v3981_v36 = vmul.f32 %v8196_v44, %v3903_v15  ;;  %v8694_v44 = vld [vmem:[#allocation33_spill] sm:$0xff] }
 0x529   : > { %v4006_v4 = vmul.f32 1.442695, %v3981_v36 }
 0x52c   : > { %v4046_v61 = vpop.permute.xlu0 %4045 }
 0x52d   : > { %v4080_v14 = vmul.f32 %v4915_v43, %v4046_v61  ;;  %v4217_v20 = vmul.f32 %v4917_v24, %v4046_v61 }
 0x52e   : > { %v4041_v58 = vpop.permute.xlu1 %4040 }
 0x52f   : > { %v4230_v32 = vmul.f32 %v4080_v14, %v3629_v9  ;;  %v4257_v5 = vmul.f32 %v4217_v20, %v7970_v55  ;;  %v4079_v11 = vmul.f32 %v4919_v16, %v4041_v58  ;;  %v4216_v30 = vmul.f32 %v4921_v60, %v4041_v58  ;;  %v8698_v9 = vld [vmem:[#allocation18_spill] sm:$0xff] }
 0x530   : > { %v4204_v55 = vmul.f32 1.442695, %v4181_v57  ;;  %v8700_v16 = vld [vmem:[#allocation6_spill] sm:$0xff] }
 0x531   : > { %4244 = vst.msk [vmem:[%s8172_s27 + $0x38] sm:$0xff] %vm4236_vm9, %v4230_v32  ;;  %4270 = vst.msk [vmem:[%s8178_s30 + $0x38] sm:$0xff] %vm4236_vm9, %v4257_v5  ;;  %v4229_v22 = vmul.f32 %v4079_v11, %v3623_v53  ;;  %v4256_v56 = vmul.f32 %v4216_v30, %v7973_v10  ;;  %v4927_v10 = vpop.eup %4926  ;;  %v3659_v57 = vadd.f32 %v8700_v16, %v7906_v13 }
 0x532   : > { %4936 = vpow2.f32 %v4204_v55  ;;  %v4929_v47 = vpop.eup %4928 }
 0x533   : > { %4243 = vst.msk [vmem:[%s8172_s27 + $0x30] sm:$0xff] %vm4236_vm9, %v4229_v22  ;;  %4269 = vst.msk [vmem:[%s8178_s30 + $0x30] sm:$0xff] %vm4236_vm9, %v4256_v56  ;;  %4938 = vpow2.f32 %v4006_v4  ;;  %v4931_v21 = vpop.eup %4930 }
 0x534   : > { %4940 = vpow2.f32 %v4208_v42  ;;  %v4933_v31 = vpop.eup %4932 }
 0x535   : > { %v4935_v33 = vpop.eup %4934 }
 0x536   : > { %v4056_v45 = vpop.permute.xlu0 %4055 }
 0x537   : > { %v4082_v59 = vmul.f32 %v4923_v34, %v4056_v45  ;;  %v4219_v40 = vmul.f32 %v4925_v46, %v4056_v45  ;;  %v4051_v62 = vpop.permute.xlu1 %4050 }
 0x538   : > { %v4081_v0 = vmul.f32 %v4927_v10, %v4051_v62  ;;  %v4218_v6 = vmul.f32 %v4929_v47, %v4051_v62 }
 0x539   : > { %v4232_v35 = vmul.f32 %v4082_v59, %v3641_v63  ;;  %v4259_v8 = vmul.f32 %v4219_v40, %v8694_v44 }
 0x53a   : > { %v4231_v28 = vmul.f32 %v4081_v0, %v3635_v51  ;;  %v4258_v52 = vmul.f32 %v4218_v6, %v8695_v37 }
 0x53b   : > { %4246 = vst.msk [vmem:[%s8172_s27 + $0x48] sm:$0xff] %vm4236_vm9, %v4232_v35  ;;  %4272 = vst.msk [vmem:[%s8178_s30 + $0x48] sm:$0xff] %vm4236_vm9, %v4259_v8 }
 0x53c   : > { %4245 = vst.msk [vmem:[%s8172_s27 + $0x40] sm:$0xff] %vm4236_vm9, %v4231_v28  ;;  %4271 = vst.msk [vmem:[%s8178_s30 + $0x40] sm:$0xff] %vm4236_vm9, %v4258_v52  ;;  %v4937_v18 = vpop.eup %4936 }
 0x53d   : > { %v4939_v20 = vpop.eup %4938 }
 0x53e   : > { %v4941_v39 = vpop.eup %4940 }
 0x541   : > { %v4066_v2 = vpop.permute.xlu0 %4065 }
 0x542   : > { %v4084_v3 = vmul.f32 %v4931_v21, %v4066_v2  ;;  %v4221_v25 = vmul.f32 %v4933_v31, %v4066_v2  ;;  %v4061_v17 = vpop.permute.xlu1 %4060 }
 0x543   : > { %v4083_v1 = vmul.f32 %v4935_v33, %v4061_v17  ;;  %v4220_v43 = vmul.f32 %v4937_v18, %v4061_v17 }
 0x544   : > { %v4234_v24 = vmul.f32 %v4084_v3, %v3653_v50  ;;  %v4261_v7 = vmul.f32 %v4221_v25, %v8698_v9 }
 0x545   : > { %v4233_v61 = vmul.f32 %v4083_v1, %v3647_v29  ;;  %v4260_v14 = vmul.f32 %v4220_v43, %v8699_v38 }
 0x546   : > { %4248 = vst.msk [vmem:[%s8172_s27 + $0x58] sm:$0xff] %vm4236_vm9, %v4234_v24  ;;  %4274 = vst.msk [vmem:[%s8178_s30 + $0x58] sm:$0xff] %vm4236_vm9, %v4261_v7 }
 0x547   : > { %4247 = vst.msk [vmem:[%s8172_s27 + $0x50] sm:$0xff] %vm4236_vm9, %v4233_v61  ;;  %4273 = vst.msk [vmem:[%s8178_s30 + $0x50] sm:$0xff] %vm4236_vm9, %v4260_v14  ;;  %v4071_v54 = vpop.permute.xlu1 %4070 }
 0x548   : > { %v4085_v32 = vmul.f32 %v4939_v20, %v4071_v54  ;;  %v4222_v5 = vmul.f32 %v4941_v39, %v4071_v54 }
 0x54a   : > { %v4235_v60 = vmul.f32 %v4085_v32, %v3659_v57  ;;  %v4262_v58 = vmul.f32 %v4222_v5, %v8701_v27 }
 0x54c   : > { %4249 = vst.msk [vmem:[%s8172_s27 + $0x60] sm:$0xff] %vm4236_vm9, %v4235_v60  ;;  %4275 = vst.msk [vmem:[%s8178_s30 + $0x60] sm:$0xff] %vm4236_vm9, %v4262_v58 }
 0x54d PF: > { %s21_s13 = sadd.s32 1, %s4949_s13  }
 0x54e   : > { %p18_p4 = scmp.ge.s32.totalorder %s21_s13, 4  }
 0x550   :  { %20 = sbr.rel (!%p18_p4) target bundleno = 1 (0x1), region = 98 }

</bundles_post_ra>
